<compile_context>
chip_gen: v6e
topology: v6e:2x2x1
jax: 0.10.0
libtpu: 0.0.40
codegen_flags: <defaults>
</compile_context>

<pallas_src>
import functools
import math

import jax
import jax.numpy as jnp
from jax import lax
from jax.experimental import pallas as pl
from jax.experimental.pallas import tpu as pltpu


def _round_up(x, m):
    return (x + m - 1) // m * m


def _vmem_capacity_bytes():
    """Physical per-core VMEM (generation aware); conservative 64 MiB (v7x) fallback."""
    try:
        info = pltpu.get_tpu_info()
        for name in ("vmem_capacity_bytes", "vmem_bytes", "vmem_size_bytes"):
            v = getattr(info, name, None)
            if v:
                return int(v)
    except Exception:
        pass
    return 64 * 1024 * 1024


# ------------------------------ Pallas kernel --------------------------------

def _gprgnn_kernel(x_ref, adj_ref, w1_ref, b1_ref, w2_ref, b2_ref, temp_ref,
                   logsm_ref, sm_ref, za_ref, zb_ref, hid_ref, *,
                   n_class, tm, adj_resident):
    """Grid = (K+1, num_row_tiles).  Phase 0: feature MLP.  Phases 1..K: propagation.
    Epilogue (phase K): masked log_softmax / softmax over the true class lanes."""
    k = pl.program_id(0)                      # phase
    i = pl.program_id(1)                      # node-row tile
    num_phases = pl.num_programs(0)           # K + 1
    rows = pl.ds(pl.multiple_of(i * tm, tm), tm)

    # ---- phase 0: z0 = relu(x @ W1 + b1) @ W2 + b2 ; hidden = temp[0] * z0 ----
    @pl.when(k == 0)
    def _init():
        h = jnp.dot(x_ref[...], w1_ref[...], preferred_element_type=jnp.float32)
        h = jnp.maximum(h + b1_ref[...], 0.0)
        z0 = jnp.dot(h, w2_ref[...], preferred_element_type=jnp.float32) + b2_ref[...]
        za_ref[rows, :] = z0.astype(za_ref.dtype)      # z^(0) lives in slot A (bf16)
        hid_ref[rows, :] = temp_ref[0] * z0             # f32 accumulator

    # ---- phases 1..K: z_k = A @ z_{k-1} ; hidden += temp[k] * z_k -------------
    def _prop(src_ref, dst_ref):
        if adj_resident:
            a_tile = adj_ref[rows, :]          # whole A resident in VMEM; slice row tile
        else:
            a_tile = adj_ref[...]              # streamed (TM, N_pad) row tile
        z_new = jnp.dot(a_tile, src_ref[...], preferred_element_type=jnp.float32)
        dst_ref[rows, :] = z_new.astype(dst_ref.dtype)
        hid_ref[rows, :] = hid_ref[rows, :] + temp_ref[k] * z_new

    parity = lax.rem(k, 2)

    @pl.when(jnp.logical_and(k > 0, parity == 1))
    def _odd():                               # odd k: read slot A, write slot B
        _prop(za_ref, zb_ref)

    @pl.when(jnp.logical_and(k > 0, parity == 0))
    def _even():                              # even k>0: read slot B, write slot A
        _prop(zb_ref, za_ref)

    # ---- epilogue on the last phase: fused log_softmax / softmax -------------
    @pl.when(k == num_phases - 1)
    def _epilogue():
        h = hid_ref[rows, :]
        lane = lax.broadcasted_iota(jnp.int32, h.shape, 1)
        h = jnp.where(lane < n_class, h, -1e30)       # mask padded class lanes
        m = jnp.max(h, axis=1, keepdims=True)
        s = jnp.sum(jnp.exp(h - m), axis=1, keepdims=True)
        logsm = (h - m) - jnp.log(s)
        logsm_ref[...] = logsm
        sm_ref[...] = jnp.exp(logsm)                  # softmax = exp(log_softmax)


# --------------------------------- wrapper ------------------------------------

def gprgnn_forward(x, adj, params):
    """x: [N, F] node features, adj: [N, N] dense GCN-normalized adjacency.
    params: w1 [F,H], b1 [H], w2 [H,C], b2 [C], temp [K+1] (PPR coefficients).
    Returns (log_softmax(out), softmax(out)), each [N, C]."""
    N, F = x.shape
    H = params["w1"].shape[1]
    C = params["w2"].shape[1]
    K = params["temp"].shape[0] - 1

    # lane-dense padding; N padded to 256 so TM=256 fills a full 256-row MXU pass.
    N_pad = _round_up(N, 256)
    TM = 256
    nT = N_pad // TM
    F_pad = _round_up(F, 128)
    H_pad = _round_up(H, 128)
    C_pad = _round_up(C, 128)

    prop_dtype = jnp.bfloat16          # adjacency and z stream; accumulation stays f32
    prop_bytes = 2

    # ---------------- VMEM budget & adjacency residency decision ----------------
    vmem_cap = _vmem_capacity_bytes()
    budget = int(vmem_cap * 0.85)
    fixed_bytes = (
        N_pad * C_pad * 4                                            # hid scratch (f32)
        + 2 * N_pad * C_pad * prop_bytes                             # za/zb scratch (bf16)
        + 2 * (F_pad * H_pad + H_pad * C_pad + H_pad + C_pad) * 4    # weights (2 bufs)
        + 2 * TM * F_pad * 4                                         # x tile (2 bufs)
        + 2 * 2 * TM * C_pad * 4                                     # 2 outputs (2 bufs)
        + (2 << 20)                                                  # compiler scratch slack
    )
    adj_resident_bytes = 2 * N_pad * N_pad * prop_bytes  # default double-buffered block
    # TODO(synk): pipeline_mode=pl.Buffered(1) on the resident spec would halve this and
    #             double the resident-A threshold (esp. on v7x's 64 MiB VMEM).
    adj_resident = fixed_bytes + adj_resident_bytes <= budget

    vmem_limit = min(int(vmem_cap * 0.9), 128 * 1024 * 1024)

    f32 = jnp.float32
    x_p = jnp.pad(x.astype(f32), ((0, N_pad - N), (0, F_pad - F)))
    adj_p = jnp.pad(adj.astype(f32), ((0, N_pad - N), (0, N_pad - N))).astype(prop_dtype)
    w1_p = jnp.pad(params["w1"].astype(f32), ((0, F_pad - F), (0, H_pad - H)))
    b1_p = jnp.pad(params["b1"].astype(f32).reshape(1, H), ((0, 0), (0, H_pad - H)))
    w2_p = jnp.pad(params["w2"].astype(f32), ((0, H_pad - H), (0, C_pad - C)))
    b2_p = jnp.pad(params["b2"].astype(f32).reshape(1, C), ((0, 0), (0, C_pad - C)))
    temp = params["temp"].astype(f32)

    const = lambda k, i: (0, 0)
    # x: only needed in phase 0; pin to the LAST visited tile afterwards -> no re-DMA.
    x_spec = pl.BlockSpec((TM, F_pad), lambda k, i: (jnp.where(k == 0, i, nT - 1), 0))

    if adj_resident:
        # Whole adjacency resident in VMEM for all K propagation phases (fetched once).
        adj_spec = pl.BlockSpec((N_pad, N_pad), const)
    else:
        # Streamed row tiles; pinned to tile 0 during phase 0 (exactly what phase 1's
        # first iteration needs, so nothing is wasted).  3-deep buffering keeps HBM busy.
        adj_map = lambda k, i: (jnp.where(k == 0, 0, i), 0)
        if hasattr(pl, "Buffered"):
            try:
                adj_spec = pl.BlockSpec((TM, N_pad), adj_map,
                                        pipeline_mode=pl.Buffered(3))
            except TypeError:
                adj_spec = pl.BlockSpec((TM, N_pad), adj_map)
        else:
            adj_spec = pl.BlockSpec((TM, N_pad), adj_map)

    out_spec = pl.BlockSpec((TM, C_pad), lambda k, i: (jnp.where(k == K, i, 0), 0))

    logsm_p, sm_p = pl.pallas_call(
        functools.partial(_gprgnn_kernel, n_class=C, tm=TM, adj_resident=adj_resident),
        out_shape=(jax.ShapeDtypeStruct((N_pad, C_pad), f32),
                   jax.ShapeDtypeStruct((N_pad, C_pad), f32)),
        grid_spec=pltpu.PrefetchScalarGridSpec(
            num_scalar_prefetch=0,
            grid=(K + 1, nT),
            in_specs=[
                x_spec,
                adj_spec,
                pl.BlockSpec((F_pad, H_pad), const),   # W1 (resident)
                pl.BlockSpec((1, H_pad), const),       # b1
                pl.BlockSpec((H_pad, C_pad), const),   # W2
                pl.BlockSpec((1, C_pad), const),       # b2
                pl.BlockSpec(memory_space=pltpu.MemorySpace.SMEM),  # temp scalars
            ],
            out_specs=(out_spec, out_spec),
            scratch_shapes=[
                pltpu.VMEM((N_pad, C_pad), prop_dtype),   # z slot A (bf16)
                pltpu.VMEM((N_pad, C_pad), prop_dtype),   # z slot B (bf16)
                pltpu.VMEM((N_pad, C_pad), f32),          # hidden accumulator (f32)
            ],
        ),
        # Both grid axes carry cross-iteration dependencies through the shared z/hidden
        # scratch, so they must stay sequential ("arbitrary") on a single core.
        compiler_params=pltpu.CompilerParams(
            dimension_semantics=("arbitrary", "arbitrary"),
            vmem_limit_bytes=vmem_limit),
    )(x_p, adj_p, w1_p, b1_p, w2_p, b2_p, temp)

    return logsm_p[:N, :C], sm_p[:N, :C]


# ------------------------- pure-JAX reference check ---------------------------

def _ref_forward(x, adj, params):
    hp = jax.lax.Precision.HIGHEST
    h = jax.nn.relu(jnp.dot(x, params["w1"], precision=hp) + params["b1"])
    z = jnp.dot(h, params["w2"], precision=hp) + params["b2"]
    temp = params["temp"]
    hidden = temp[0] * z
    for k in range(temp.shape[0] - 1):
        z = jnp.dot(adj, z, precision=hp)
        hidden = hidden + temp[k + 1] * z
    return jax.nn.log_softmax(hidden, axis=1), jax.nn.softmax(hidden, axis=1)


# ----------------------------------- main --------------------------------------

if __name__ == "__main__":
    N, F_IN, HIDDEN, C, K, ALPHA = 300, 100, 64, 8, 10, 0.1

    key = jax.random.PRNGKey(0)
    k_x, k_a, k_w1, k_b1, k_w2, k_b2 = jax.random.split(key, 6)

    x = jax.random.normal(k_x, (N, F_IN), jnp.float32)

    # Random undirected graph -> dense GCN-normalized adjacency (gcn_norm with
    # self-loops), i.e. D^-1/2 (A + I) D^-1/2.  The sparse edge_index scatter of the
    # original gcn_norm is done here as dense host-side preprocessing.
    a = (jax.random.uniform(k_a, (N, N)) < 0.03).astype(jnp.float32)
    a = jnp.maximum(a, a.T)
    eye = jnp.eye(N, dtype=jnp.float32)
    a = a * (1.0 - eye) + eye
    deg = jnp.sum(a, axis=0)
    d_inv_sqrt = jnp.where(deg > 0, 1.0 / jnp.sqrt(deg), 0.0)
    adj = d_inv_sqrt[:, None] * a * d_inv_sqrt[None, :]

    # torch.nn.Linear default init: U(-1/sqrt(fan_in), +1/sqrt(fan_in))
    def lin_init(kw, kb, fan_in, fan_out):
        bound = 1.0 / math.sqrt(fan_in)
        w = jax.random.uniform(kw, (fan_in, fan_out), jnp.float32, -bound, bound)
        b = jax.random.uniform(kb, (fan_out,), jnp.float32, -bound, bound)
        return w, b

    w1, b1 = lin_init(k_w1, k_b1, F_IN, HIDDEN)
    w2, b2 = lin_init(k_w2, k_b2, HIDDEN, C)

    # GPR_prop 'PPR' init: temp[k] = alpha*(1-alpha)^k, temp[K] = (1-alpha)^K
    temp = ALPHA * (1.0 - ALPHA) ** jnp.arange(K + 1, dtype=jnp.float32)
    temp = temp.at[K].set((1.0 - ALPHA) ** K)

    params = {"w1": w1, "b1": b1, "w2": w2, "b2": b2, "temp": temp}

    log_sm, sm = jax.jit(gprgnn_forward)(x, adj, params)
    jax.block_until_ready((log_sm, sm))

    ref_log_sm, ref_sm = _ref_forward(x, adj, params)
    assert log_sm.shape == (N, C) and sm.shape == (N, C)
    # Tolerances loosened vs. the f32 reference because the adjacency / propagated z
    # are carried in bfloat16 (f32 accumulation) per the performance review.
    assert jnp.allclose(log_sm, ref_log_sm, atol=5e-2, rtol=5e-2), \
        float(jnp.max(jnp.abs(log_sm - ref_log_sm)))
    assert jnp.allclose(sm, ref_sm, atol=2e-2, rtol=5e-2), \
        float(jnp.max(jnp.abs(sm - ref_sm)))

    print("KERNEL_OK")
</pallas_src>

<mosaic_0001>
module attributes {stable_mosaic.version = 11 : i64} {
  func.func @_gprgnn_kernel(%arg0: i32, %arg1: i32, %arg2: memref<256x128xf32, #tpu.memory_space<vmem>>, %arg3: memref<512x512xbf16, #tpu.memory_space<vmem>>, %arg4: memref<128x128xf32, #tpu.memory_space<vmem>>, %arg5: memref<1x128xf32, #tpu.memory_space<vmem>>, %arg6: memref<128x128xf32, #tpu.memory_space<vmem>>, %arg7: memref<1x128xf32, #tpu.memory_space<vmem>>, %arg8: memref<11xf32, #tpu.memory_space<smem>>, %arg9: memref<256x128xf32, #tpu.memory_space<vmem>>, %arg10: memref<256x128xf32, #tpu.memory_space<vmem>>, %arg11: memref<512x128xbf16, #tpu.memory_space<vmem>>, %arg12: memref<512x128xbf16, #tpu.memory_space<vmem>>, %arg13: memref<512x128xf32, #tpu.memory_space<vmem>>) attributes {dimension_semantics = [#tpu.dimension_semantics<arbitrary>, #tpu.dimension_semantics<arbitrary>], iteration_bounds = array<i64: 11, 2>, scalar_prefetch = 0 : i64, scratch_operands = 3 : i64, tpu.core_type = #tpu.core_type<tc>, window_params = [{transform_indices = @transform_0, window_bounds = array<i64: 256, 128>}, {pipeline_mode = #tpu.pipeline_mode<synchronous>, transform_indices = @transform_1, window_bounds = array<i64: 512, 512>}, {pipeline_mode = #tpu.pipeline_mode<synchronous>, transform_indices = @transform_2, window_bounds = array<i64: 128, 128>}, {pipeline_mode = #tpu.pipeline_mode<synchronous>, transform_indices = @transform_3, window_bounds = array<i64: 1, 128>}, {pipeline_mode = #tpu.pipeline_mode<synchronous>, transform_indices = @transform_4, window_bounds = array<i64: 128, 128>}, {pipeline_mode = #tpu.pipeline_mode<synchronous>, transform_indices = @transform_5, window_bounds = array<i64: 1, 128>}, {transform_indices = @transform_6, window_bounds = array<i64: 11>}, {transform_indices = @transform_7, window_bounds = array<i64: 256, 128>}, {transform_indices = @transform_8, window_bounds = array<i64: 256, 128>}]} {
    %c256_i32 = arith.constant 256 : i32
    %0 = arith.muli %arg1, %c256_i32 : i32
    %1 = tpu.assume_multiple %0, 256 : i32
    %c0_i32 = arith.constant 0 : i32
    %2 = arith.cmpi eq, %arg0, %c0_i32 : i32
    %3 = arith.extui %2 : i1 to i32
    %c0_i32_0 = arith.constant 0 : i32
    %4 = arith.cmpi ne, %3, %c0_i32_0 : i32
    scf.if %4 {
      %c0 = arith.constant 0 : index
      %c0_7 = arith.constant 0 : index
      %19 = vector.load %arg2[%c0, %c0_7] : memref<256x128xf32, #tpu.memory_space<vmem>>, vector<256x128xf32>
      %c0_8 = arith.constant 0 : index
      %c0_9 = arith.constant 0 : index
      %20 = vector.load %arg4[%c0_8, %c0_9] : memref<128x128xf32, #tpu.memory_space<vmem>>, vector<128x128xf32>
      %cst = arith.constant dense<0.000000e+00> : vector<256x128xf32>
      %21 = tpu.matmul %19, %20, %cst {dimension_numbers = #tpu.dot_dimension_numbers<[1], [0], [0], [1], [0, 0, 1, 1], [], []>} : vector<256x128xf32>, vector<128x128xf32>, vector<256x128xf32> -> vector<256x128xf32>
      %c0_10 = arith.constant 0 : index
      %c0_11 = arith.constant 0 : index
      %22 = vector.load %arg5[%c0_10, %c0_11] : memref<1x128xf32, #tpu.memory_space<vmem>>, vector<1x128xf32>
      %23 = vector.broadcast %22 : vector<1x128xf32> to vector<256x128xf32>
      %24 = arith.addf %21, %23 : vector<256x128xf32>
      %cst_12 = arith.constant 0.000000e+00 : f32
      %25 = vector.broadcast %cst_12 : f32 to vector<256x128xf32>
      %26 = arith.maximumf %24, %25 : vector<256x128xf32>
      %c0_13 = arith.constant 0 : index
      %c0_14 = arith.constant 0 : index
      %27 = vector.load %arg6[%c0_13, %c0_14] : memref<128x128xf32, #tpu.memory_space<vmem>>, vector<128x128xf32>
      %cst_15 = arith.constant dense<0.000000e+00> : vector<256x128xf32>
      %28 = tpu.matmul %26, %27, %cst_15 {dimension_numbers = #tpu.dot_dimension_numbers<[1], [0], [0], [1], [0, 0, 1, 1], [], []>} : vector<256x128xf32>, vector<128x128xf32>, vector<256x128xf32> -> vector<256x128xf32>
      %c0_16 = arith.constant 0 : index
      %c0_17 = arith.constant 0 : index
      %29 = vector.load %arg7[%c0_16, %c0_17] : memref<1x128xf32, #tpu.memory_space<vmem>>, vector<1x128xf32>
      %30 = vector.broadcast %29 : vector<1x128xf32> to vector<256x128xf32>
      %31 = arith.addf %28, %30 : vector<256x128xf32>
      %32 = arith.truncf %31 : vector<256x128xf32> to vector<256x128xbf16>
      %33 = arith.index_cast %1 : i32 to index
      %c0_18 = arith.constant 0 : index
      %34 = vector.load %arg11[%33, %c0_18] : memref<512x128xbf16, #tpu.memory_space<vmem>>, vector<256x128xbf16>
      tpu.vector_store %arg11[%33, %c0_18], %32 {strides = array<i32>} : memref<512x128xbf16, #tpu.memory_space<vmem>>, vector<256x128xbf16>,
      %c0_19 = arith.constant 0 : index
      %35 = memref.load %arg8[%c0_19] : memref<11xf32, #tpu.memory_space<smem>>
      %36 = vector.broadcast %35 : f32 to vector<256x128xf32>
      %37 = arith.mulf %36, %31 : vector<256x128xf32>
      %38 = arith.index_cast %1 : i32 to index
      %c0_20 = arith.constant 0 : index
      %39 = vector.load %arg13[%38, %c0_20] : memref<512x128xf32, #tpu.memory_space<vmem>>, vector<256x128xf32>
      tpu.vector_store %arg13[%38, %c0_20], %37 {strides = array<i32>} : memref<512x128xf32, #tpu.memory_space<vmem>>, vector<256x128xf32>,
    } else {
    }
    %c2_i32 = arith.constant 2 : i32
    %5 = arith.remsi %arg0, %c2_i32 : i32
    %c0_i32_1 = arith.constant 0 : i32
    %6 = arith.cmpi sgt, %arg0, %c0_i32_1 : i32
    %c1_i32 = arith.constant 1 : i32
    %7 = arith.cmpi eq, %5, %c1_i32 : i32
    %8 = arith.andi %6, %7 : i1
    %9 = arith.extui %8 : i1 to i32
    %c0_i32_2 = arith.constant 0 : i32
    %10 = arith.cmpi ne, %9, %c0_i32_2 : i32
    scf.if %10 {
      %19 = arith.index_cast %1 : i32 to index
      %c0 = arith.constant 0 : index
      %20 = vector.load %arg3[%19, %c0] : memref<512x512xbf16, #tpu.memory_space<vmem>>, vector<256x512xbf16>
      %c0_7 = arith.constant 0 : index
      %c0_8 = arith.constant 0 : index
      %21 = vector.load %arg11[%c0_7, %c0_8] : memref<512x128xbf16, #tpu.memory_space<vmem>>, vector<512x128xbf16>
      %cst = arith.constant dense<0.000000e+00> : vector<256x128xf32>
      %22 = tpu.matmul %20, %21, %cst {dimension_numbers = #tpu.dot_dimension_numbers<[1], [0], [0], [1], [0, 0, 1, 1], [], []>} : vector<256x512xbf16>, vector<512x128xbf16>, vector<256x128xf32> -> vector<256x128xf32>
      %23 = arith.truncf %22 : vector<256x128xf32> to vector<256x128xbf16>
      %24 = arith.index_cast %1 : i32 to index
      %c0_9 = arith.constant 0 : index
      %25 = vector.load %arg12[%24, %c0_9] : memref<512x128xbf16, #tpu.memory_space<vmem>>, vector<256x128xbf16>
      tpu.vector_store %arg12[%24, %c0_9], %23 {strides = array<i32>} : memref<512x128xbf16, #tpu.memory_space<vmem>>, vector<256x128xbf16>,
      %26 = arith.index_cast %1 : i32 to index
      %c0_10 = arith.constant 0 : index
      %27 = vector.load %arg13[%26, %c0_10] : memref<512x128xf32, #tpu.memory_space<vmem>>, vector<256x128xf32>
      %28 = arith.index_cast %arg0 : i32 to index
      %29 = memref.load %arg8[%28] : memref<11xf32, #tpu.memory_space<smem>>
      %30 = vector.broadcast %29 : f32 to vector<256x128xf32>
      %31 = arith.mulf %30, %22 : vector<256x128xf32>
      %32 = arith.addf %27, %31 : vector<256x128xf32>
      %33 = arith.index_cast %1 : i32 to index
      %c0_11 = arith.constant 0 : index
      %34 = vector.load %arg13[%33, %c0_11] : memref<512x128xf32, #tpu.memory_space<vmem>>, vector<256x128xf32>
      tpu.vector_store %arg13[%33, %c0_11], %32 {strides = array<i32>} : memref<512x128xf32, #tpu.memory_space<vmem>>, vector<256x128xf32>,
    } else {
    }
    %c0_i32_3 = arith.constant 0 : i32
    %11 = arith.cmpi sgt, %arg0, %c0_i32_3 : i32
    %c0_i32_4 = arith.constant 0 : i32
    %12 = arith.cmpi eq, %5, %c0_i32_4 : i32
    %13 = arith.andi %11, %12 : i1
    %14 = arith.extui %13 : i1 to i32
    %c0_i32_5 = arith.constant 0 : i32
    %15 = arith.cmpi ne, %14, %c0_i32_5 : i32
    scf.if %15 {
      %19 = arith.index_cast %1 : i32 to index
      %c0 = arith.constant 0 : index
      %20 = vector.load %arg3[%19, %c0] : memref<512x512xbf16, #tpu.memory_space<vmem>>, vector<256x512xbf16>
      %c0_7 = arith.constant 0 : index
      %c0_8 = arith.constant 0 : index
      %21 = vector.load %arg12[%c0_7, %c0_8] : memref<512x128xbf16, #tpu.memory_space<vmem>>, vector<512x128xbf16>
      %cst = arith.constant dense<0.000000e+00> : vector<256x128xf32>
      %22 = tpu.matmul %20, %21, %cst {dimension_numbers = #tpu.dot_dimension_numbers<[1], [0], [0], [1], [0, 0, 1, 1], [], []>} : vector<256x512xbf16>, vector<512x128xbf16>, vector<256x128xf32> -> vector<256x128xf32>
      %23 = arith.truncf %22 : vector<256x128xf32> to vector<256x128xbf16>
      %24 = arith.index_cast %1 : i32 to index
      %c0_9 = arith.constant 0 : index
      %25 = vector.load %arg11[%24, %c0_9] : memref<512x128xbf16, #tpu.memory_space<vmem>>, vector<256x128xbf16>
      tpu.vector_store %arg11[%24, %c0_9], %23 {strides = array<i32>} : memref<512x128xbf16, #tpu.memory_space<vmem>>, vector<256x128xbf16>,
      %26 = arith.index_cast %1 : i32 to index
      %c0_10 = arith.constant 0 : index
      %27 = vector.load %arg13[%26, %c0_10] : memref<512x128xf32, #tpu.memory_space<vmem>>, vector<256x128xf32>
      %28 = arith.index_cast %arg0 : i32 to index
      %29 = memref.load %arg8[%28] : memref<11xf32, #tpu.memory_space<smem>>
      %30 = vector.broadcast %29 : f32 to vector<256x128xf32>
      %31 = arith.mulf %30, %22 : vector<256x128xf32>
      %32 = arith.addf %27, %31 : vector<256x128xf32>
      %33 = arith.index_cast %1 : i32 to index
      %c0_11 = arith.constant 0 : index
      %34 = vector.load %arg13[%33, %c0_11] : memref<512x128xf32, #tpu.memory_space<vmem>>, vector<256x128xf32>
      tpu.vector_store %arg13[%33, %c0_11], %32 {strides = array<i32>} : memref<512x128xf32, #tpu.memory_space<vmem>>, vector<256x128xf32>,
    } else {
    }
    %c10_i32 = arith.constant 10 : i32
    %16 = arith.cmpi eq, %arg0, %c10_i32 : i32
    %17 = arith.extui %16 : i1 to i32
    %c0_i32_6 = arith.constant 0 : i32
    %18 = arith.cmpi ne, %17, %c0_i32_6 : i32
    scf.if %18 {
      %19 = arith.index_cast %1 : i32 to index
      %c0 = arith.constant 0 : index
      %20 = vector.load %arg13[%19, %c0] : memref<512x128xf32, #tpu.memory_space<vmem>>, vector<256x128xf32>
      %21 = tpu.iota {dimensions = array<i32: 1>} : vector<256x128xi32>
      %c8_i32 = arith.constant 8 : i32
      %22 = vector.broadcast %c8_i32 : i32 to vector<256x128xi32>
      %23 = arith.cmpi slt, %21, %22 : vector<256x128xi32>
      %cst = arith.constant -1.000000e+30 : f32
      %24 = vector.broadcast %cst : f32 to vector<256x128xf32>
      %25 = arith.select %23, %20, %24 : vector<256x128xi1>, vector<256x128xf32>
      %cst_7 = arith.constant dense<0xFF800000> : vector<256xf32>
      %26 = vector.multi_reduction <maximumf>, %25, %cst_7 [1] : vector<256x128xf32> to vector<256xf32>
      %27 = vector.shape_cast %26 : vector<256xf32> to vector<256x1xf32>
      %28 = vector.broadcast %27 : vector<256x1xf32> to vector<256x128xf32>
      %29 = arith.subf %25, %28 : vector<256x128xf32>
      %30 = math.exp %29 : vector<256x128xf32>
      %cst_8 = arith.constant dense<0.000000e+00> : vector<256xf32>
      %31 = vector.multi_reduction <add>, %30, %cst_8 [1] : vector<256x128xf32> to vector<256xf32>
      %32 = vector.shape_cast %31 : vector<256xf32> to vector<256x1xf32>
      %33 = vector.broadcast %27 : vector<256x1xf32> to vector<256x128xf32>
      %34 = arith.subf %25, %33 : vector<256x128xf32>
      %35 = math.log %32 : vector<256x1xf32>
      %36 = vector.broadcast %35 : vector<256x1xf32> to vector<256x128xf32>
      %37 = arith.subf %34, %36 : vector<256x128xf32>
      %c0_9 = arith.constant 0 : index
      %c0_10 = arith.constant 0 : index
      %38 = vector.load %arg9[%c0_9, %c0_10] : memref<256x128xf32, #tpu.memory_space<vmem>>, vector<256x128xf32>
      tpu.vector_store %arg9[%c0_9, %c0_10], %37 {strides = array<i32>} : memref<256x128xf32, #tpu.memory_space<vmem>>, vector<256x128xf32>,
      %39 = math.exp %37 : vector<256x128xf32>
      %c0_11 = arith.constant 0 : index
      %c0_12 = arith.constant 0 : index
      %40 = vector.load %arg10[%c0_11, %c0_12] : memref<256x128xf32, #tpu.memory_space<vmem>>, vector<256x128xf32>
      tpu.vector_store %arg10[%c0_11, %c0_12], %39 {strides = array<i32>} : memref<256x128xf32, #tpu.memory_space<vmem>>, vector<256x128xf32>,
    } else {
    }
    return
  }
  func.func @transform_0(%arg0: i32, %arg1: i32) -> (i32, i32) {
    %c0_i32 = arith.constant 0 : i32
    %0 = arith.cmpi eq, %arg0, %c0_i32 : i32
    %c1_i32 = arith.constant 1 : i32
    %1 = arith.select %0, %arg1, %c1_i32 : i32
    %c0_i32_0 = arith.constant 0 : i32
    %c0_i32_1 = arith.constant 0 : i32
    return %1, %c0_i32_0 : i32, i32
  }
  func.func @transform_1(%arg0: i32, %arg1: i32) -> (i32, i32) {
    %c0_i32 = arith.constant 0 : i32
    %c0_i32_0 = arith.constant 0 : i32
    %c0_i32_1 = arith.constant 0 : i32
    return %c0_i32, %c0_i32_0 : i32, i32
  }
  func.func @transform_2(%arg0: i32, %arg1: i32) -> (i32, i32) {
    %c0_i32 = arith.constant 0 : i32
    %c0_i32_0 = arith.constant 0 : i32
    %c0_i32_1 = arith.constant 0 : i32
    return %c0_i32, %c0_i32_0 : i32, i32
  }
  func.func @transform_3(%arg0: i32, %arg1: i32) -> (i32, i32) {
    %c0_i32 = arith.constant 0 : i32
    %c0_i32_0 = arith.constant 0 : i32
    %c0_i32_1 = arith.constant 0 : i32
    return %c0_i32, %c0_i32_0 : i32, i32
  }
  func.func @transform_4(%arg0: i32, %arg1: i32) -> (i32, i32) {
    %c0_i32 = arith.constant 0 : i32
    %c0_i32_0 = arith.constant 0 : i32
    %c0_i32_1 = arith.constant 0 : i32
    return %c0_i32, %c0_i32_0 : i32, i32
  }
  func.func @transform_5(%arg0: i32, %arg1: i32) -> (i32, i32) {
    %c0_i32 = arith.constant 0 : i32
    %c0_i32_0 = arith.constant 0 : i32
    %c0_i32_1 = arith.constant 0 : i32
    return %c0_i32, %c0_i32_0 : i32, i32
  }
  func.func @transform_6(%arg0: i32, %arg1: i32) -> i32 {
    %c0_i32 = arith.constant 0 : i32
    %c0_i32_0 = arith.constant 0 : i32
    return %c0_i32 : i32
  }
  func.func @transform_7(%arg0: i32, %arg1: i32) -> (i32, i32) {
    %c10_i32 = arith.constant 10 : i32
    %0 = arith.cmpi eq, %arg0, %c10_i32 : i32
    %c0_i32 = arith.constant 0 : i32
    %1 = arith.select %0, %arg1, %c0_i32 : i32
    %c0_i32_0 = arith.constant 0 : i32
    %c0_i32_1 = arith.constant 0 : i32
    return %1, %c0_i32_0 : i32, i32
  }
  func.func @transform_8(%arg0: i32, %arg1: i32) -> (i32, i32) {
    %c10_i32 = arith.constant 10 : i32
    %0 = arith.cmpi eq, %arg0, %c10_i32 : i32
    %c0_i32 = arith.constant 0 : i32
    %1 = arith.select %0, %arg1, %c0_i32 : i32
    %c0_i32_0 = arith.constant 0 : i32
    %c0_i32_1 = arith.constant 0 : i32
    return %1, %c0_i32_0 : i32, i32
  }
}

</mosaic_0001>

<bundles_post_ra>
// kernel: gprgnn_forward.1
= control target key start
LH: loop header
LB: loop body
LE: loop exit
PB: predicated region body
PF: predicated region fallthrough
CT: control target
= control target key end

     0   :  { %14 = vsyncpa [#allocation6], 0  ;;  %s6388_s27 = smov 0   ;;  %s6390_s28 = smov 0   ;;  %s7595_s0 = inlined_call_operand.vmem [shape: f32[512,128], index: 0, kind: input, shape index: {}]   ;;  %s7596_s1 = inlined_call_operand.vmem [shape: bf16[512,512], index: 1, kind: input, shape index: {}]   ;;  %s7597_s2 = inlined_call_operand.vmem [shape: f32[128,128], index: 2, kind: input, shape index: {}]   ;;  %s7598_s3 = inlined_call_operand.vmem [shape: f32[1,128], index: 3, kind: input, shape index: {}]   ;;  %s7599_s4 = inlined_call_operand.vmem [shape: f32[128,128], index: 4, kind: input, shape index: {}]   ;;  %s7600_s5 = inlined_call_operand.vmem [shape: f32[1,128], index: 5, kind: input, shape index: {}]   ;;  %s7601_s6 = inlined_call_operand.vmem [shape: f32[11], index: 6, kind: input, shape index: {}]   ;;  %s7602_s7 = inlined_call_operand.vmem [shape: f32[512,128], index: 7, kind: output, shape index: {0}]   ;;  %s7603_s8 = inlined_call_operand.vmem [shape: f32[512,128], index: 8, kind: output, shape index: {1}]  }
   0x1   :  { %s6392_s29 = smov 0   ;;  %s6394_s30 = smov 0  }
   0x2   :  { %s6396_s9 = smov 0  }
   0x3 LB: > { %s4381_s10 = sadd.s32 4294967295, %s6340_s9   ;;  %s29_s11 = sadd.s32 1, %s6332_s29  ;;  %s6340_s9 = sphi %s6396_s9, %s20_s9   ;;  %s6336_s30 = sphi %s6394_s30, %s7609_s30   ;;  %s6332_s29 = sphi %s6392_s29, %s7608_s29   ;;  %s6328_s28 = sphi %s6390_s28, %s7607_s28   ;;  %s6324_s27 = sphi %s6388_s27, %s7606_s27  }
   0x4   : > { %p30_p0 = scmp.ge.s32.totalorder %s29_s11, 2  ;;  %s32_s12 = sadd.s32 1, %s6336_s30 }
   0x5   : > { %p4383_p1 = scmp.ge.s32.totalorder %s6340_s9, 1  ;;  %p253_p2 = scmp.lt.s32.totalorder %s6340_s9, 23 }
   0x6   : > { %s7611_s11 = smov (%p30_p0, %s29_s11), 0  ;;  %s7613_s12 = smov (!%p30_p0, %s32_s12), %s6336_s30 }
   0x7   : > { %p6421_p3 = pnand %p4383_p1, %p253_p2  ;;  %p34_p4 = scmp.ge.s32.totalorder %s7613_s12, 11 }
   0x8   : > { %p6425_p5 = scmp.eq.s32.totalorder %s4381_s10, 0  ;;  %s281_s17 = sshll.u32 %s7601_s6, 4  ;;  %s282_s17 = int_to_ptr.vmem [resolvable:$true] %s281_s17 }
   0x9   : > { %p5788_p6 = pneg %p6421_p3  ;;  %s7615_s12 = smov (%p34_p4, %s7613_s12), 0 }
   0xa   : > { %s6283_s18 = scalar_lea.vmem %s282_s17, 16  ;;  %p6291_p12 = scmp.lt.s32.totalorder %s282_s17, %s282_s17 }
   0xb   : > { %p5789_p7 = pnand %p6425_p5, %p5788_p6  ;;  %p6284_p8 = scmp.ne.s32.totalorder %s282_s17, %s6283_s18 }
   0xc   : > { %p6292_p13 = scmp.lt.s32.totalorder %s6283_s18, %s6283_s18 }
   0xd   : > { %p6285_p9 = pneg %p5789_p7 }
   0xe   : > { %p6293_p0 = por %p6292_p13, %p6291_p12 }
   0xf   : > { %p6286_p10 = pnand %p6285_p9, %p6284_p8 }
  0x11   : > { %p6287_p11 = pneg %p6286_p10 }
  0x13   : > { %p6294_p1 = pnand %p6293_p0, %p6287_p11 }
  0x15   : > { %6297 = shalt.err (!%p6294_p1)
}
  0x16   : > { %s6342_s19 = smov [#allocation5]   ;;  %307 = sbr.rel (%p6421_p3) target bundleno = 1691 (0x69b), region = 48 }
  0x17   : > { %5791 = dma.vmem_to_smem (!%p5789_p7), %s282_s17, 16, %s6342_s19, [#allocation6]  }
  0x1b   : > { %6319 = dma.done.wait (%p6425_p5), [#allocation6], 16  }
  0x1c   : > { %6321 = vsyncadd (%p6425_p5), [#allocation6], 4294967280 }
  0x1d   : > { %313 = sfence }
  0x1e   : > { %p353_p2 = scmp.eq.s32.totalorder %s6328_s28, 0  ;;  %p363_p4 = scmp.eq.s32.totalorder %s6328_s28, 10 }
  0x1f   : > { %s6447_s20 = sshll.u32 %s6324_s27, 8  ;;  %p4395_p5 = scmp.ne.s32.totalorder %s6328_s28, 0 }
  0x20   : > { %s354_s21 = scalar_select %p353_p2, %s6324_s27, 1 }
  0x21   : > { %s7617_s27 = smov (!%p363_p4, %s6324_s27), 0  ;;  %s1113_s25 = sld [smem:[#allocation5]] (!%p4395_p5) }
  0x22   : > { %s4388_s22 = sshll.u32 %s354_s21, 5  ;;  %s4390_s23 = sshll.u32 %s7617_s27, 5 }
  0x23   : > { %p356_p3 = scmp.lt.s32.totalorder %s4388_s22, 63  ;;  %p366_p6 = scmp.lt.s32.totalorder %s4390_s23, 63 }
  0x24   : > { %388 = sbr.rel (%p4395_p5) target bundleno = 534 (0x216), region = 56  ;;  %s1077_s14 = sshra.s32 (!%p4395_p5), %s6447_s20, 3 }
  0x25   : > { %s7619_s22 = smov (!%p356_p3, %s4388_s22), 63  ;;  %s7621_s23 = smov (!%p366_p6, %s4390_s23), 63 }
  0x26   : > { %s4389_s24 = sshll.u32 %s7619_s22, 3  ;;  %s4391_s13 = sshll.u32 %s7621_s23, 3 }
  0x27   : > { %s6454_s10 = scalar_lea.vmem %s7595_s0, %s4389_s24  ;;  %s6459_s16 = scalar_lea.vmem %s7602_s7, %s4391_s13 }
  0x28   : > { %s6464_s19 = scalar_lea.vmem %s7603_s8, %s4391_s13  ;;  %s4430_s15 = sshll.u32 (!%p4395_p5), %s1077_s14, 2 }
  0x29   : > { %v436_v0 = vld [vmem:[%s7597_s2 + $0x78] sm:$0xff]  ;;  %v435_v1 = vld [vmem:[%s7597_s2 + $0x70] sm:$0xff]  ;;  %v434_v2 = vld [vmem:[%s7597_s2 + $0x68] sm:$0xff]  ;;  %s6644_s17 = scalar_lea.vmem [#allocation4], %s6447_s20  ;;  %s6649_s18 = scalar_lea.vmem [#allocation2], %s4430_s15 }
  0x2a   : > { %5624 = vmatprep.subr.mxu0 %v436_v0  ;;  %v433_v3 = vld [vmem:[%s7597_s2 + $0x60] sm:$0xff]  ;;  %v432_v5 = vld [vmem:[%s7597_s2 + $0x58] sm:$0xff]  ;;  %v431_v6 = vld [vmem:[%s7597_s2 + $0x50] sm:$0xff] }
  0x2b   : > { %5625 = vmatpush3.msra.mxu0 %v436_v0  ;;  %v389_v4 = vld [vmem:[%s6454_s10] sm:$0xff]  ;;  %v430_v7 = vld [vmem:[%s7597_s2 + $0x48] sm:$0xff]  ;;  %v428_v9 = vld [vmem:[%s7597_s2 + $0x38] sm:$0xff] }
  0x2c   : > { %5626 = vmatprep.subr.mxu0 %v435_v1  ;;  %5656 = vmatprep.mubr.f32.mxu0 %v389_v4  ;;  %v429_v8 = vld [vmem:[%s7597_s2 + $0x40] sm:$0xff]  ;;  %v427_v10 = vld [vmem:[%s7597_s2 + $0x30] sm:$0xff]  ;;  %v716_v11 = vld [vmem:[%s7599_s4 + $0x78] sm:$0xff] }
  0x2d   : > { %5627 = vmatpush3.msra.mxu0 %v435_v1  ;;  %v715_v12 = vld [vmem:[%s7599_s4 + $0x70] sm:$0xff]  ;;  %5704 = vmatprep.subr.mxu1 %v716_v11  ;;  %v426_v13 = vld [vmem:[%s7597_s2 + $0x28] sm:$0xff]  ;;  %v425_v15 = vld [vmem:[%s7597_s2 + $0x20] sm:$0xff] }
  0x2e   : > { %5628 = vmatprep.subr.mxu0 %v434_v2  ;;  %5705 = vmatpush3.msra.mxu1 %v716_v11  ;;  %v714_v14 = vld [vmem:[%s7599_s4 + $0x68] sm:$0xff]  ;;  %v713_v16 = vld [vmem:[%s7599_s4 + $0x60] sm:$0xff]  ;;  %v424_v17 = vld [vmem:[%s7597_s2 + $0x18] sm:$0xff] }
  0x2f   : > { %5629 = vmatpush3.msra.mxu0 %v434_v2  ;;  %5706 = vmatprep.subr.mxu1 %v715_v12  ;;  %v712_v18 = vld [vmem:[%s7599_s4 + $0x58] sm:$0xff]  ;;  %v423_v19 = vld [vmem:[%s7597_s2 + $0x10] sm:$0xff]  ;;  %v422_v21 = vld [vmem:[%s7597_s2 + $0x8] sm:$0xff] }
  0x30   : > { %5630 = vmatprep.subr.mxu0 %v433_v3  ;;  %5707 = vmatpush3.msra.mxu1 %v715_v12  ;;  %v711_v20 = vld [vmem:[%s7599_s4 + $0x50] sm:$0xff]  ;;  %v710_v22 = vld [vmem:[%s7599_s4 + $0x48] sm:$0xff]  ;;  %v421_v23 = vld [vmem:[%s7597_s2] sm:$0xff] }
  0x31   : > { %5631 = vmatpush3.msra.mxu0 %v433_v3  ;;  %5708 = vmatprep.subr.mxu1 %v714_v14  ;;  %v709_v24 = vld [vmem:[%s7599_s4 + $0x40] sm:$0xff]  ;;  %v390_v25 = vld [vmem:[%s6454_s10 + $0x8] sm:$0xff]  ;;  %v708_v26 = vld [vmem:[%s7599_s4 + $0x38] sm:$0xff] }
  0x32   : > { %5632 = vmatprep.subr.mxu0 %v432_v5  ;;  %5709 = vmatpush3.msra.mxu1 %v714_v14  ;;  %v391_v27 = vld [vmem:[%s6454_s10 + $0x10] sm:$0xff]  ;;  %v392_v29 = vld [vmem:[%s6454_s10 + $0x18] sm:$0xff]  ;;  %v706_v30 = vld [vmem:[%s7599_s4 + $0x28] sm:$0xff] }
  0x33   : > { %5633 = vmatpush3.msra.mxu0 %v432_v5  ;;  %5710 = vmatprep.subr.mxu1 %v713_v16  ;;  %v707_v28 = vld [vmem:[%s7599_s4 + $0x30] sm:$0xff]  ;;  %v393_v31 = vld [vmem:[%s6454_s10 + $0x20] sm:$0xff]  ;;  %v394_v33 = vld [vmem:[%s6454_s10 + $0x28] sm:$0xff] }
  0x34   : > { %5634 = vmatprep.subr.mxu0 %v431_v6  ;;  %5711 = vmatpush3.msra.mxu1 %v713_v16  ;;  %v705_v32 = vld [vmem:[%s7599_s4 + $0x20] sm:$0xff]  ;;  %v395_v34 = vld [vmem:[%s6454_s10 + $0x30] sm:$0xff]  ;;  %v396_v35 = vld [vmem:[%s6454_s10 + $0x38] sm:$0xff] }
  0x35   : > { %5635 = vmatpush3.msra.mxu0 %v431_v6  ;;  %5712 = vmatprep.subr.mxu1 %v712_v18  ;;  %v397_v36 = vld [vmem:[%s6454_s10 + $0x40] sm:$0xff]  ;;  %v398_v37 = vld [vmem:[%s6454_s10 + $0x48] sm:$0xff]  ;;  %v399_v38 = vld [vmem:[%s6454_s10 + $0x50] sm:$0xff] }
  0x36   : > { %5636 = vmatprep.subr.mxu0 %v430_v7  ;;  %5713 = vmatpush3.msra.mxu1 %v712_v18  ;;  %v400_v39 = vld [vmem:[%s6454_s10 + $0x58] sm:$0xff]  ;;  %v401_v40 = vld [vmem:[%s6454_s10 + $0x60] sm:$0xff]  ;;  %v402_v41 = vld [vmem:[%s6454_s10 + $0x68] sm:$0xff] }
  0x37   : > { %5637 = vmatpush3.msra.mxu0 %v430_v7  ;;  %5714 = vmatprep.subr.mxu1 %v711_v20  ;;  %v403_v42 = vld [vmem:[%s6454_s10 + $0x70] sm:$0xff]  ;;  %v404_v43 = vld [vmem:[%s6454_s10 + $0x78] sm:$0xff]  ;;  %v405_v44 = vld [vmem:[%s6454_s10 + $0x80] sm:$0xff] }
  0x38   : > { %5638 = vmatprep.subr.mxu0 %v429_v8  ;;  %5715 = vmatpush3.msra.mxu1 %v711_v20  ;;  %v406_v45 = vld [vmem:[%s6454_s10 + $0x88] sm:$0xff]  ;;  %v407_v46 = vld [vmem:[%s6454_s10 + $0x90] sm:$0xff]  ;;  %v408_v47 = vld [vmem:[%s6454_s10 + $0x98] sm:$0xff] }
  0x39   : > { %5639 = vmatpush3.msra.mxu0 %v429_v8  ;;  %5716 = vmatprep.subr.mxu1 %v710_v22  ;;  %v409_v48 = vld [vmem:[%s6454_s10 + $0xa0] sm:$0xff]  ;;  %v410_v49 = vld [vmem:[%s6454_s10 + $0xa8] sm:$0xff]  ;;  %v411_v50 = vld [vmem:[%s6454_s10 + $0xb0] sm:$0xff] }
  0x3a   : > { %5640 = vmatprep.subr.mxu0 %v428_v9  ;;  %5717 = vmatpush3.msra.mxu1 %v710_v22  ;;  %v412_v51 = vld [vmem:[%s6454_s10 + $0xb8] sm:$0xff]  ;;  %v413_v52 = vld [vmem:[%s6454_s10 + $0xc0] sm:$0xff]  ;;  %v414_v53 = vld [vmem:[%s6454_s10 + $0xc8] sm:$0xff] }
  0x3b   : > { %5641 = vmatpush3.msra.mxu0 %v428_v9  ;;  %5718 = vmatprep.subr.mxu1 %v709_v24  ;;  %v415_v54 = vld [vmem:[%s6454_s10 + $0xd0] sm:$0xff]  ;;  %v416_v55 = vld [vmem:[%s6454_s10 + $0xd8] sm:$0xff]  ;;  %v417_v56 = vld [vmem:[%s6454_s10 + $0xe0] sm:$0xff] }
  0x3c   : > { %5642 = vmatprep.subr.mxu0 %v427_v10  ;;  %5719 = vmatpush3.msra.mxu1 %v709_v24  ;;  %v418_v57 = vld [vmem:[%s6454_s10 + $0xe8] sm:$0xff]  ;;  %v419_v58 = vld [vmem:[%s6454_s10 + $0xf0] sm:$0xff]  ;;  %v420_v59 = vld [vmem:[%s6454_s10 + $0xf8] sm:$0xff] }
  0x3d   : > { %5643 = vmatpush3.msra.mxu0 %v427_v10  ;;  %5720 = vmatprep.subr.mxu1 %v708_v26  ;;  %v704_v60 = vld [vmem:[%s7599_s4 + $0x18] sm:$0xff]  ;;  %v703_v61 = vld [vmem:[%s7599_s4 + $0x10] sm:$0xff]  ;;  %v702_v62 = vld [vmem:[%s7599_s4 + $0x8] sm:$0xff] }
  0x3e   : > { %5644 = vmatprep.subr.mxu0 %v426_v13  ;;  %5721 = vmatpush3.msra.mxu1 %v708_v26  ;;  %v701_v63 = vld [vmem:[%s7599_s4] sm:$0xff] }
  0x3f   : > { %5645 = vmatpush3.msra.mxu0 %v426_v13  ;;  %5722 = vmatprep.subr.mxu1 %v707_v28  ;;  %v6598_v0 = vld [vmem:[%s7598_s3] ss:$0 sm:$0xff] }
  0x40   : > { %5646 = vmatprep.subr.mxu0 %v425_v15  ;;  %5723 = vmatpush3.msra.mxu1 %v707_v28 }
  0x41   : > { %5647 = vmatpush3.msra.mxu0 %v425_v15  ;;  %5724 = vmatprep.subr.mxu1 %v706_v30 }
  0x42   : > { %5648 = vmatprep.subr.mxu0 %v424_v17  ;;  %5725 = vmatpush3.msra.mxu1 %v706_v30 }
  0x43   : > { %5649 = vmatpush3.msra.mxu0 %v424_v17  ;;  %5726 = vmatprep.subr.mxu1 %v705_v32 }
  0x44   : > { %5650 = vmatprep.subr.mxu0 %v423_v19  ;;  %5727 = vmatpush3.msra.mxu1 %v705_v32 }
  0x45   : > { %5651 = vmatpush3.msra.mxu0 %v423_v19  ;;  %5728 = vmatprep.subr.mxu1 %v704_v60 }
  0x46   : > { %5652 = vmatprep.subr.mxu0 %v422_v21  ;;  %5729 = vmatpush3.msra.mxu1 %v704_v60 }
  0x47   : > { %5653 = vmatpush3.msra.mxu0 %v422_v21  ;;  %5730 = vmatprep.subr.mxu1 %v703_v61 }
  0x48   : > { %5654 = vmatprep.subr.mxu0 %v421_v23  ;;  %5731 = vmatpush3.msra.mxu1 %v703_v61 }
  0x49   : > { %5655 = vmatpush3.msra.mxu0 %v421_v23  ;;  %5732 = vmatprep.subr.mxu1 %v702_v62 }
  0x4a   : > { %5657 = vmatmul.mubr.f32.vlgmr.msra.gmra.mxu0 %v390_v25  ;;  %5733 = vmatpush3.msra.mxu1 %v702_v62 }
  0x4b   : > { %5659 = vmatprep.mubr.f32.mxu0 %v391_v27  ;;  %5734 = vmatprep.subr.mxu1 %v701_v63 }
  0x4c   : > { %5735 = vmatpush3.msra.mxu1 %v701_v63 }
  0x4e   : > { %5660 = vmatmul.mubr.f32.gmra.mxu0 %v392_v29 }
  0x4f   : > { %5662 = vmatprep.mubr.f32.mxu0 %v393_v31 }
  0x52   : > { %5663 = vmatmul.mubr.f32.gmra.mxu0 %v394_v33 }
  0x53   : > { %5665 = vmatprep.mubr.f32.mxu0 %v395_v34 }
  0x56   : > { %5666 = vmatmul.mubr.f32.gmra.mxu0 %v396_v35 }
  0x57   : > { %5668 = vmatprep.mubr.f32.mxu0 %v397_v36 }
  0x5a   : > { %5669 = vmatmul.mubr.f32.gmra.mxu0 %v398_v37 }
  0x5b   : > { %5671 = vmatprep.mubr.f32.mxu0 %v399_v38 }
  0x5e   : > { %5672 = vmatmul.mubr.f32.gmra.mxu0 %v400_v39 }
  0x5f   : > { %5674 = vmatprep.mubr.f32.mxu0 %v401_v40 }
  0x62   : > { %5675 = vmatmul.mubr.f32.gmra.mxu0 %v402_v41 }
  0x63   : > { %5677 = vmatprep.mubr.f32.mxu0 %v403_v42 }
  0x66   : > { %5678 = vmatmul.mubr.f32.gmra.mxu0 %v404_v43 }
  0x67   : > { %5680 = vmatprep.mubr.f32.mxu0 %v405_v44 }
  0x6a   : > { %5681 = vmatmul.mubr.f32.gmra.mxu0 %v406_v45 }
  0x6b   : > { %5683 = vmatprep.mubr.f32.mxu0 %v407_v46 }
  0x6e   : > { %5684 = vmatmul.mubr.f32.gmra.mxu0 %v408_v47 }
  0x6f   : > { %5686 = vmatprep.mubr.f32.mxu0 %v409_v48 }
  0x72   : > { %5687 = vmatmul.mubr.f32.gmra.mxu0 %v410_v49 }
  0x73   : > { %5689 = vmatprep.mubr.f32.mxu0 %v411_v50 }
  0x76   : > { %5690 = vmatmul.mubr.f32.gmra.mxu0 %v412_v51 }
  0x77   : > { %5692 = vmatprep.mubr.f32.mxu0 %v413_v52 }
  0x7a   : > { %5693 = vmatmul.mubr.f32.gmra.mxu0 %v414_v53 }
  0x7b   : > { %5695 = vmatprep.mubr.f32.mxu0 %v415_v54 }
  0x7e   : > { %5696 = vmatmul.mubr.f32.gmra.mxu0 %v416_v55 }
  0x7f   : > { %5698 = vmatprep.mubr.f32.mxu0 %v417_v56 }
  0x82   : > { %5699 = vmatmul.mubr.f32.gmra.mxu0 %v418_v57 }
  0x83   : > { %5701 = vmatprep.mubr.f32.mxu0 %v419_v58 }
  0x86   : > { %5702 = vmatmul.mubr.f32.gmra.mxu0 %v420_v59 }
 0x10a   : > { %v5658_v1 = vpop.f32.mrf.mxu0 }
 0x10b   : > { %v516_v2 = vadd.f32 %v5658_v1, %v6598_v0 }
 0x10c   : > { %v510_v3 = vpop.f32.mrf.mxu0 }
 0x10d   : > { %v511_v4 = vadd.f32 %v6598_v0, %v510_v3  ;;  %v670_v7 = vmax.f32 %v516_v2, 0.0 }
 0x10e   : > { %v5661_v5 = vpop.f32.mrf.mxu0 }
 0x10f   : > { %v669_v6 = vmax.f32 %v511_v4, 0.0  ;;  %v526_v8 = vadd.f32 %v5661_v5, %v6598_v0 }
 0x110   : > { %v520_v9 = vpop.f32.mrf.mxu0 }
 0x111   : > { %v521_v10 = vadd.f32 %v6598_v0, %v520_v9  ;;  %5736 = vmatprep.mubr.f32.mxu1 %v669_v6  ;;  %v672_v13 = vmax.f32 %v526_v8, 0.0 }
 0x112   : > { %v5664_v11 = vpop.f32.mrf.mxu0  ;;  %5737 = vmatmul.mubr.f32.vlgmr.msra.gmra.mxu1 %v670_v7 }
 0x113   : > { %v671_v12 = vmax.f32 %v521_v10, 0.0  ;;  %v536_v14 = vadd.f32 %v5664_v11, %v6598_v0 }
 0x114   : > { %v530_v15 = vpop.f32.mrf.mxu0 }
 0x115   : > { %v531_v16 = vadd.f32 %v6598_v0, %v530_v15  ;;  %5739 = vmatprep.mubr.f32.mxu1 %v671_v12  ;;  %v674_v19 = vmax.f32 %v536_v14, 0.0 }
 0x116   : > { %v5667_v17 = vpop.f32.mrf.mxu0  ;;  %5740 = vmatmul.mubr.f32.gmra.mxu1 %v672_v13 }
 0x117   : > { %v673_v18 = vmax.f32 %v531_v16, 0.0  ;;  %v546_v20 = vadd.f32 %v5667_v17, %v6598_v0 }
 0x118   : > { %v540_v21 = vpop.f32.mrf.mxu0 }
 0x119   : > { %v541_v22 = vadd.f32 %v6598_v0, %v540_v21  ;;  %5742 = vmatprep.mubr.f32.mxu1 %v673_v18  ;;  %v676_v25 = vmax.f32 %v546_v20, 0.0 }
 0x11a   : > { %v5670_v23 = vpop.f32.mrf.mxu0  ;;  %5743 = vmatmul.mubr.f32.gmra.mxu1 %v674_v19 }
 0x11b   : > { %v675_v24 = vmax.f32 %v541_v22, 0.0  ;;  %v556_v26 = vadd.f32 %v5670_v23, %v6598_v0 }
 0x11c   : > { %v550_v27 = vpop.f32.mrf.mxu0 }
 0x11d   : > { %v551_v28 = vadd.f32 %v6598_v0, %v550_v27  ;;  %5745 = vmatprep.mubr.f32.mxu1 %v675_v24  ;;  %v678_v31 = vmax.f32 %v556_v26, 0.0 }
 0x11e   : > { %v5673_v29 = vpop.f32.mrf.mxu0  ;;  %5746 = vmatmul.mubr.f32.gmra.mxu1 %v676_v25 }
 0x11f   : > { %v677_v30 = vmax.f32 %v551_v28, 0.0  ;;  %v566_v32 = vadd.f32 %v5673_v29, %v6598_v0 }
 0x120   : > { %v560_v33 = vpop.f32.mrf.mxu0 }
 0x121   : > { %v561_v34 = vadd.f32 %v6598_v0, %v560_v33  ;;  %5748 = vmatprep.mubr.f32.mxu1 %v677_v30  ;;  %v680_v37 = vmax.f32 %v566_v32, 0.0 }
 0x122   : > { %v5676_v35 = vpop.f32.mrf.mxu0  ;;  %5749 = vmatmul.mubr.f32.gmra.mxu1 %v678_v31 }
 0x123   : > { %v679_v36 = vmax.f32 %v561_v34, 0.0  ;;  %v576_v38 = vadd.f32 %v5676_v35, %v6598_v0  ;;  %v6635_v34 = vld [vmem:[%s7600_s5] ss:$0 sm:$0xff] }
 0x124   : > { %v570_v39 = vpop.f32.mrf.mxu0 }
 0x125   : > { %v571_v40 = vadd.f32 %v6598_v0, %v570_v39  ;;  %5751 = vmatprep.mubr.f32.mxu1 %v679_v36  ;;  %v682_v43 = vmax.f32 %v576_v38, 0.0  ;;  %v6638_v36 = vstv %s1113_s25 }
 0x126   : > { %v5679_v41 = vpop.f32.mrf.mxu0  ;;  %5752 = vmatmul.mubr.f32.gmra.mxu1 %v680_v37 }
 0x127   : > { %v681_v42 = vmax.f32 %v571_v40, 0.0  ;;  %v586_v44 = vadd.f32 %v5679_v41, %v6598_v0 }
 0x128   : > { %v580_v45 = vpop.f32.mrf.mxu0 }
 0x129   : > { %v581_v46 = vadd.f32 %v6598_v0, %v580_v45  ;;  %5754 = vmatprep.mubr.f32.mxu1 %v681_v42  ;;  %v684_v49 = vmax.f32 %v586_v44, 0.0 }
 0x12a   : > { %v5682_v47 = vpop.f32.mrf.mxu0  ;;  %5755 = vmatmul.mubr.f32.gmra.mxu1 %v682_v43 }
 0x12b   : > { %v683_v48 = vmax.f32 %v581_v46, 0.0  ;;  %v596_v50 = vadd.f32 %v5682_v47, %v6598_v0 }
 0x12c   : > { %v590_v51 = vpop.f32.mrf.mxu0 }
 0x12d   : > { %v591_v52 = vadd.f32 %v6598_v0, %v590_v51  ;;  %5757 = vmatprep.mubr.f32.mxu1 %v683_v48  ;;  %v686_v55 = vmax.f32 %v596_v50, 0.0 }
 0x12e   : > { %v5685_v53 = vpop.f32.mrf.mxu0  ;;  %5758 = vmatmul.mubr.f32.gmra.mxu1 %v684_v49 }
 0x12f   : > { %v685_v54 = vmax.f32 %v591_v52, 0.0  ;;  %v606_v56 = vadd.f32 %v5685_v53, %v6598_v0 }
 0x130   : > { %v600_v57 = vpop.f32.mrf.mxu0 }
 0x131   : > { %v601_v58 = vadd.f32 %v6598_v0, %v600_v57  ;;  %5760 = vmatprep.mubr.f32.mxu1 %v685_v54  ;;  %v688_v61 = vmax.f32 %v606_v56, 0.0 }
 0x132   : > { %v5688_v59 = vpop.f32.mrf.mxu0  ;;  %5761 = vmatmul.mubr.f32.gmra.mxu1 %v686_v55 }
 0x133   : > { %v687_v60 = vmax.f32 %v601_v58, 0.0  ;;  %v616_v62 = vadd.f32 %v5688_v59, %v6598_v0 }
 0x134   : > { %v610_v63 = vpop.f32.mrf.mxu0 }
 0x135   : > { %v611_v1 = vadd.f32 %v6598_v0, %v610_v63  ;;  %5763 = vmatprep.mubr.f32.mxu1 %v687_v60  ;;  %v690_v4 = vmax.f32 %v616_v62, 0.0 }
 0x136   : > { %v5691_v2 = vpop.f32.mrf.mxu0  ;;  %5764 = vmatmul.mubr.f32.gmra.mxu1 %v688_v61 }
 0x137   : > { %v689_v3 = vmax.f32 %v611_v1, 0.0  ;;  %v626_v5 = vadd.f32 %v5691_v2, %v6598_v0 }
 0x138   : > { %v620_v6 = vpop.f32.mrf.mxu0 }
 0x139   : > { %v621_v7 = vadd.f32 %v6598_v0, %v620_v6  ;;  %5766 = vmatprep.mubr.f32.mxu1 %v689_v3  ;;  %v692_v10 = vmax.f32 %v626_v5, 0.0 }
 0x13a   : > { %v5694_v8 = vpop.f32.mrf.mxu0  ;;  %5767 = vmatmul.mubr.f32.gmra.mxu1 %v690_v4 }
 0x13b   : > { %v691_v9 = vmax.f32 %v621_v7, 0.0  ;;  %v636_v11 = vadd.f32 %v5694_v8, %v6598_v0 }
 0x13c   : > { %v630_v12 = vpop.f32.mrf.mxu0 }
 0x13d   : > { %v631_v13 = vadd.f32 %v6598_v0, %v630_v12  ;;  %5769 = vmatprep.mubr.f32.mxu1 %v691_v9  ;;  %v694_v16 = vmax.f32 %v636_v11, 0.0 }
 0x13e   : > { %v5697_v14 = vpop.f32.mrf.mxu0  ;;  %5770 = vmatmul.mubr.f32.gmra.mxu1 %v692_v10 }
 0x13f   : > { %v693_v15 = vmax.f32 %v631_v13, 0.0  ;;  %v646_v17 = vadd.f32 %v5697_v14, %v6598_v0 }
 0x140   : > { %v640_v18 = vpop.f32.mrf.mxu0 }
 0x141   : > { %v641_v19 = vadd.f32 %v6598_v0, %v640_v18  ;;  %5772 = vmatprep.mubr.f32.mxu1 %v693_v15  ;;  %v696_v22 = vmax.f32 %v646_v17, 0.0 }
 0x142   : > { %v5700_v20 = vpop.f32.mrf.mxu0  ;;  %5773 = vmatmul.mubr.f32.gmra.mxu1 %v694_v16 }
 0x143   : > { %v695_v21 = vmax.f32 %v641_v19, 0.0  ;;  %v656_v23 = vadd.f32 %v5700_v20, %v6598_v0 }
 0x144   : > { %v650_v24 = vpop.f32.mrf.mxu0 }
 0x145   : > { %v651_v25 = vadd.f32 %v6598_v0, %v650_v24  ;;  %5775 = vmatprep.mubr.f32.mxu1 %v695_v21  ;;  %v698_v28 = vmax.f32 %v656_v23, 0.0 }
 0x146   : > { %v5703_v26 = vpop.f32.mrf.mxu0  ;;  %5776 = vmatmul.mubr.f32.gmra.mxu1 %v696_v22 }
 0x147   : > { %v697_v27 = vmax.f32 %v651_v25, 0.0  ;;  %v666_v29 = vadd.f32 %v5703_v26, %v6598_v0 }
 0x148   : > { %v660_v30 = vpop.f32.mrf.mxu0 }
 0x149   : > { %v661_v31 = vadd.f32 %v6598_v0, %v660_v30  ;;  %5778 = vmatprep.mubr.f32.mxu1 %v697_v27  ;;  %v700_v33 = vmax.f32 %v666_v29, 0.0 }
 0x14a   : > { %5779 = vmatmul.mubr.f32.gmra.mxu1 %v698_v28 }
 0x14b   : > { %v699_v32 = vmax.f32 %v661_v31, 0.0 }
 0x14d   : > { %5781 = vmatprep.mubr.f32.mxu1 %v699_v32 }
 0x14e   : > { %5782 = vmatmul.mubr.f32.gmra.mxu1 %v700_v33 }
 0x1d2   : > { %v5738_v35 = vpop.f32.mrf.mxu1 }
 0x1d3   : > { %v796_v37 = vadd.f32 %v5738_v35, %v6635_v34 }
 0x1d4   : > { %v790_v0 = vpop.f32.mrf.mxu1 }
 0x1d5   : > { %v1116_v38 = vmul.f32 %v6638_v36, %v796_v37  ;;  %v791_v39 = vadd.f32 %v6635_v34, %v790_v0 }
 0x1d6   : > { %v5741_v40 = vpop.f32.mrf.mxu1 }
 0x1d7   : > { %1149 = vst [vmem:[%s6644_s17 + $0x8] sm:$0xff] %v1116_v38  ;;  %v4798_v41 = vpack.c.bf16 %v796_v37, %v791_v39  ;;  %v1115_v42 = vmul.f32 %v6638_v36, %v791_v39  ;;  %v806_v43 = vadd.f32 %v5741_v40, %v6635_v34 }
 0x1d8   : > { %v800_v44 = vpop.f32.mrf.mxu1 }
 0x1d9   : > { %4799 = vst [vmem:[%s6649_s18] sm:$0xff] %v4798_v41   ;;  %1148 = vst [vmem:[%s6644_s17] sm:$0xff] %v1115_v42  ;;  %v1118_v45 = vmul.f32 %v6638_v36, %v806_v43  ;;  %v801_v46 = vadd.f32 %v6635_v34, %v800_v44 }
 0x1da   : > { %v5744_v47 = vpop.f32.mrf.mxu1 }
 0x1db   : > { %1151 = vst [vmem:[%s6644_s17 + $0x18] sm:$0xff] %v1118_v45  ;;  %v4803_v48 = vpack.c.bf16 %v806_v43, %v801_v46  ;;  %v1117_v49 = vmul.f32 %v6638_v36, %v801_v46  ;;  %v816_v50 = vadd.f32 %v5744_v47, %v6635_v34 }
 0x1dc   : > { %v810_v51 = vpop.f32.mrf.mxu1 }
 0x1dd   : > { %5035 = vst [vmem:[%s6649_s18 + $0x8] sm:$0xff] %v4803_v48   ;;  %1150 = vst [vmem:[%s6644_s17 + $0x10] sm:$0xff] %v1117_v49  ;;  %v1120_v52 = vmul.f32 %v6638_v36, %v816_v50  ;;  %v811_v53 = vadd.f32 %v6635_v34, %v810_v51 }
 0x1de   : > { %v5747_v54 = vpop.f32.mrf.mxu1 }
 0x1df   : > { %1153 = vst [vmem:[%s6644_s17 + $0x28] sm:$0xff] %v1120_v52  ;;  %v4808_v55 = vpack.c.bf16 %v816_v50, %v811_v53  ;;  %v1119_v56 = vmul.f32 %v6638_v36, %v811_v53  ;;  %v826_v57 = vadd.f32 %v5747_v54, %v6635_v34 }
 0x1e0   : > { %v820_v58 = vpop.f32.mrf.mxu1 }
 0x1e1   : > { %5036 = vst [vmem:[%s6649_s18 + $0x10] sm:$0xff] %v4808_v55   ;;  %1152 = vst [vmem:[%s6644_s17 + $0x20] sm:$0xff] %v1119_v56  ;;  %v1122_v59 = vmul.f32 %v6638_v36, %v826_v57  ;;  %v821_v60 = vadd.f32 %v6635_v34, %v820_v58 }
 0x1e2   : > { %v5750_v61 = vpop.f32.mrf.mxu1 }
 0x1e3   : > { %1155 = vst [vmem:[%s6644_s17 + $0x38] sm:$0xff] %v1122_v59  ;;  %v4813_v62 = vpack.c.bf16 %v826_v57, %v821_v60  ;;  %v1121_v63 = vmul.f32 %v6638_v36, %v821_v60  ;;  %v836_v1 = vadd.f32 %v5750_v61, %v6635_v34 }
 0x1e4   : > { %v830_v2 = vpop.f32.mrf.mxu1 }
 0x1e5   : > { %5037 = vst [vmem:[%s6649_s18 + $0x18] sm:$0xff] %v4813_v62   ;;  %1154 = vst [vmem:[%s6644_s17 + $0x30] sm:$0xff] %v1121_v63  ;;  %v1124_v3 = vmul.f32 %v6638_v36, %v836_v1  ;;  %v831_v4 = vadd.f32 %v6635_v34, %v830_v2 }
 0x1e6   : > { %v5753_v5 = vpop.f32.mrf.mxu1 }
 0x1e7   : > { %1157 = vst [vmem:[%s6644_s17 + $0x48] sm:$0xff] %v1124_v3  ;;  %v4818_v6 = vpack.c.bf16 %v836_v1, %v831_v4  ;;  %v1123_v7 = vmul.f32 %v6638_v36, %v831_v4  ;;  %v846_v8 = vadd.f32 %v5753_v5, %v6635_v34 }
 0x1e8   : > { %v840_v9 = vpop.f32.mrf.mxu1 }
 0x1e9   : > { %5038 = vst [vmem:[%s6649_s18 + $0x20] sm:$0xff] %v4818_v6   ;;  %1156 = vst [vmem:[%s6644_s17 + $0x40] sm:$0xff] %v1123_v7  ;;  %v1126_v10 = vmul.f32 %v6638_v36, %v846_v8  ;;  %v841_v11 = vadd.f32 %v6635_v34, %v840_v9 }
 0x1ea   : > { %v5756_v12 = vpop.f32.mrf.mxu1 }
 0x1eb   : > { %1159 = vst [vmem:[%s6644_s17 + $0x58] sm:$0xff] %v1126_v10  ;;  %v4823_v13 = vpack.c.bf16 %v846_v8, %v841_v11  ;;  %v1125_v14 = vmul.f32 %v6638_v36, %v841_v11  ;;  %v856_v15 = vadd.f32 %v5756_v12, %v6635_v34 }
 0x1ec   : > { %v850_v16 = vpop.f32.mrf.mxu1 }
 0x1ed   : > { %5039 = vst [vmem:[%s6649_s18 + $0x28] sm:$0xff] %v4823_v13   ;;  %1158 = vst [vmem:[%s6644_s17 + $0x50] sm:$0xff] %v1125_v14  ;;  %v1128_v17 = vmul.f32 %v6638_v36, %v856_v15  ;;  %v851_v18 = vadd.f32 %v6635_v34, %v850_v16 }
 0x1ee   : > { %v5759_v19 = vpop.f32.mrf.mxu1 }
 0x1ef   : > { %1161 = vst [vmem:[%s6644_s17 + $0x68] sm:$0xff] %v1128_v17  ;;  %v4828_v20 = vpack.c.bf16 %v856_v15, %v851_v18  ;;  %v1127_v21 = vmul.f32 %v6638_v36, %v851_v18  ;;  %v866_v22 = vadd.f32 %v5759_v19, %v6635_v34 }
 0x1f0   : > { %v860_v23 = vpop.f32.mrf.mxu1 }
 0x1f1   : > { %5040 = vst [vmem:[%s6649_s18 + $0x30] sm:$0xff] %v4828_v20   ;;  %1160 = vst [vmem:[%s6644_s17 + $0x60] sm:$0xff] %v1127_v21  ;;  %v1130_v24 = vmul.f32 %v6638_v36, %v866_v22  ;;  %v861_v25 = vadd.f32 %v6635_v34, %v860_v23 }
 0x1f2   : > { %v5762_v26 = vpop.f32.mrf.mxu1 }
 0x1f3   : > { %1163 = vst [vmem:[%s6644_s17 + $0x78] sm:$0xff] %v1130_v24  ;;  %v4833_v27 = vpack.c.bf16 %v866_v22, %v861_v25  ;;  %v1129_v28 = vmul.f32 %v6638_v36, %v861_v25  ;;  %v876_v29 = vadd.f32 %v5762_v26, %v6635_v34 }
 0x1f4   : > { %v870_v30 = vpop.f32.mrf.mxu1 }
 0x1f5   : > { %5041 = vst [vmem:[%s6649_s18 + $0x38] sm:$0xff] %v4833_v27   ;;  %1162 = vst [vmem:[%s6644_s17 + $0x70] sm:$0xff] %v1129_v28  ;;  %v1132_v31 = vmul.f32 %v6638_v36, %v876_v29  ;;  %v871_v32 = vadd.f32 %v6635_v34, %v870_v30 }
 0x1f6   : > { %v5765_v33 = vpop.f32.mrf.mxu1 }
 0x1f7   : > { %1165 = vst [vmem:[%s6644_s17 + $0x88] sm:$0xff] %v1132_v31  ;;  %v4838_v35 = vpack.c.bf16 %v876_v29, %v871_v32  ;;  %v1131_v37 = vmul.f32 %v6638_v36, %v871_v32  ;;  %v886_v0 = vadd.f32 %v5765_v33, %v6635_v34 }
 0x1f8   : > { %v880_v38 = vpop.f32.mrf.mxu1 }
 0x1f9   : > { %5042 = vst [vmem:[%s6649_s18 + $0x40] sm:$0xff] %v4838_v35   ;;  %1164 = vst [vmem:[%s6644_s17 + $0x80] sm:$0xff] %v1131_v37  ;;  %v1134_v39 = vmul.f32 %v6638_v36, %v886_v0  ;;  %v881_v40 = vadd.f32 %v6635_v34, %v880_v38 }
 0x1fa   : > { %v5768_v41 = vpop.f32.mrf.mxu1 }
 0x1fb   : > { %1167 = vst [vmem:[%s6644_s17 + $0x98] sm:$0xff] %v1134_v39  ;;  %v4843_v42 = vpack.c.bf16 %v886_v0, %v881_v40  ;;  %v1133_v43 = vmul.f32 %v6638_v36, %v881_v40  ;;  %v896_v44 = vadd.f32 %v5768_v41, %v6635_v34 }
 0x1fc   : > { %v890_v45 = vpop.f32.mrf.mxu1 }
 0x1fd   : > { %5043 = vst [vmem:[%s6649_s18 + $0x48] sm:$0xff] %v4843_v42   ;;  %1166 = vst [vmem:[%s6644_s17 + $0x90] sm:$0xff] %v1133_v43  ;;  %v1136_v46 = vmul.f32 %v6638_v36, %v896_v44  ;;  %v891_v47 = vadd.f32 %v6635_v34, %v890_v45 }
 0x1fe   : > { %v5771_v48 = vpop.f32.mrf.mxu1 }
 0x1ff   : > { %1169 = vst [vmem:[%s6644_s17 + $0xa8] sm:$0xff] %v1136_v46  ;;  %v4848_v49 = vpack.c.bf16 %v896_v44, %v891_v47  ;;  %v1135_v50 = vmul.f32 %v6638_v36, %v891_v47  ;;  %v906_v51 = vadd.f32 %v5771_v48, %v6635_v34 }
 0x200   : > { %v900_v52 = vpop.f32.mrf.mxu1 }
 0x201   : > { %5044 = vst [vmem:[%s6649_s18 + $0x50] sm:$0xff] %v4848_v49   ;;  %1168 = vst [vmem:[%s6644_s17 + $0xa0] sm:$0xff] %v1135_v50  ;;  %v1138_v53 = vmul.f32 %v6638_v36, %v906_v51  ;;  %v901_v54 = vadd.f32 %v6635_v34, %v900_v52 }
 0x202   : > { %v5774_v55 = vpop.f32.mrf.mxu1 }
 0x203   : > { %1171 = vst [vmem:[%s6644_s17 + $0xb8] sm:$0xff] %v1138_v53  ;;  %v4853_v56 = vpack.c.bf16 %v906_v51, %v901_v54  ;;  %v1137_v57 = vmul.f32 %v6638_v36, %v901_v54  ;;  %v916_v58 = vadd.f32 %v5774_v55, %v6635_v34 }
 0x204   : > { %v910_v59 = vpop.f32.mrf.mxu1 }
 0x205   : > { %5045 = vst [vmem:[%s6649_s18 + $0x58] sm:$0xff] %v4853_v56   ;;  %1170 = vst [vmem:[%s6644_s17 + $0xb0] sm:$0xff] %v1137_v57  ;;  %v1140_v60 = vmul.f32 %v6638_v36, %v916_v58  ;;  %v911_v61 = vadd.f32 %v6635_v34, %v910_v59 }
 0x206   : > { %v5777_v62 = vpop.f32.mrf.mxu1 }
 0x207   : > { %1173 = vst [vmem:[%s6644_s17 + $0xc8] sm:$0xff] %v1140_v60  ;;  %v4858_v63 = vpack.c.bf16 %v916_v58, %v911_v61  ;;  %v1139_v1 = vmul.f32 %v6638_v36, %v911_v61  ;;  %v926_v2 = vadd.f32 %v5777_v62, %v6635_v34 }
 0x208   : > { %v920_v3 = vpop.f32.mrf.mxu1 }
 0x209   : > { %5046 = vst [vmem:[%s6649_s18 + $0x60] sm:$0xff] %v4858_v63   ;;  %1172 = vst [vmem:[%s6644_s17 + $0xc0] sm:$0xff] %v1139_v1  ;;  %v1142_v4 = vmul.f32 %v6638_v36, %v926_v2  ;;  %v921_v5 = vadd.f32 %v6635_v34, %v920_v3 }
 0x20a   : > { %v5780_v6 = vpop.f32.mrf.mxu1 }
 0x20b   : > { %1175 = vst [vmem:[%s6644_s17 + $0xd8] sm:$0xff] %v1142_v4  ;;  %v4863_v7 = vpack.c.bf16 %v926_v2, %v921_v5  ;;  %v1141_v8 = vmul.f32 %v6638_v36, %v921_v5  ;;  %v936_v9 = vadd.f32 %v5780_v6, %v6635_v34 }
 0x20c   : > { %v930_v10 = vpop.f32.mrf.mxu1 }
 0x20d   : > { %5047 = vst [vmem:[%s6649_s18 + $0x68] sm:$0xff] %v4863_v7   ;;  %1174 = vst [vmem:[%s6644_s17 + $0xd0] sm:$0xff] %v1141_v8  ;;  %v1144_v11 = vmul.f32 %v6638_v36, %v936_v9  ;;  %v931_v12 = vadd.f32 %v6635_v34, %v930_v10 }
 0x20e   : > { %v5783_v13 = vpop.f32.mrf.mxu1 }
 0x20f   : > { %1177 = vst [vmem:[%s6644_s17 + $0xe8] sm:$0xff] %v1144_v11  ;;  %v4868_v14 = vpack.c.bf16 %v936_v9, %v931_v12  ;;  %v1143_v15 = vmul.f32 %v6638_v36, %v931_v12  ;;  %v946_v16 = vadd.f32 %v5783_v13, %v6635_v34 }
 0x210   : > { %v940_v17 = vpop.f32.mrf.mxu1 }
 0x211   : > { %5048 = vst [vmem:[%s6649_s18 + $0x70] sm:$0xff] %v4868_v14   ;;  %1176 = vst [vmem:[%s6644_s17 + $0xe0] sm:$0xff] %v1143_v15  ;;  %v1146_v18 = vmul.f32 %v6638_v36, %v946_v16  ;;  %v941_v19 = vadd.f32 %v6635_v34, %v940_v17 }
 0x213   : > { %1179 = vst [vmem:[%s6644_s17 + $0xf8] sm:$0xff] %v1146_v18  ;;  %v4873_v20 = vpack.c.bf16 %v946_v16, %v941_v19  ;;  %v1145_v21 = vmul.f32 %v6638_v36, %v941_v19 }
 0x215   : > { %5049 = vst [vmem:[%s6649_s18 + $0x78] sm:$0xff] %v4873_v20   ;;  %1178 = vst [vmem:[%s6644_s17 + $0xf0] sm:$0xff] %v1145_v21 }
 0x216 PF: > { %p1180_p7 = scmp.lt.s32.totalorder %s6328_s28, 0  ;;  %s1181_s27 = ssub.s32 0, %s6328_s28 }
 0x217   : > { %s4431_s21 = smin.u32 %s6328_s28, %s1181_s27  ;;  %p1186_p8 = scmp.gt.s32.totalorder %s6328_s28, 0 }
 0x218   : > { %s1183_s10 = sand.u32 1, %s4431_s21  }
 0x219   : > { %s1184_s22 = ssub.s32 0, %s1183_s10 }
 0x21a   : > { %s7623_s22 = smov (!%p1180_p7, %s1184_s22), %s1183_s10 }
 0x21b   : > { %p1187_p9 = scmp.eq.s32.totalorder %s7623_s22, 1 }
 0x21d   : > { %p1188_p10 = pnand %p1187_p9, %p1186_p8 }
 0x21e   : > { %s1192_s23 = sshra.s32 (!%p1188_p10), %s6447_s20, 3  ;;  %s2354_s14 = sld [smem:[#allocation5 + %s6328_s28]] (!%p1188_p10) }
 0x21f   : > { %1191 = sbr.rel (%p1188_p10) target bundleno = 911 (0x38f), region = 60  ;;  %s4729_s24 = sshll.u32 (!%p1188_p10), %s1192_s23, 4 }
 0x220   : > { %s6772_s13 = scalar_lea.vmem (!%p1188_p10), %s7596_s1, %s4729_s24  ;;  %s6842_s15 = scalar_lea.vmem (!%p1188_p10), [#allocation4], %s6447_s20 }
 0x221   : > { %s4562_s17 = sshll.u32 (!%p1188_p10), %s1192_s23, 2 }
 0x222   : > { %s6851_s18 = scalar_lea.vmem (!%p1188_p10), [#allocation3], %s4562_s17 }
 0x224   : > { %v5835_v34 = vld [vmem:[#allocation2 + $0x78] sm:$0xff]   ;;  %v5839_v24 = vld [vmem:[#allocation2 + $0x70] sm:$0xff]   ;;  %v5843_v28 = vld [vmem:[#allocation2 + $0x68] sm:$0xff]  }
 0x225   : > { %v5836_v36 = vld [vmem:[#allocation2 + $0xf8] sm:$0xff]   ;;  %5176 = vmatprep.subr.bf16.mxu0 %v5835_v34  ;;  %v5840_v25 = vld [vmem:[#allocation2 + $0xf0] sm:$0xff]   ;;  %v5844_v29 = vld [vmem:[#allocation2 + $0xe8] sm:$0xff]  }
 0x226   : > { %v5837_v22 = vld [vmem:[#allocation2 + $0x38] sm:$0xff]   ;;  %5288 = vmatprep.subr.bf16.mxu1 %v5836_v36  ;;  %v5841_v26 = vld [vmem:[#allocation2 + $0x30] sm:$0xff]   ;;  %v5845_v30 = vld [vmem:[#allocation2 + $0x28] sm:$0xff]  }
 0x227   : > { %v5838_v23 = vld [vmem:[#allocation2 + $0xb8] sm:$0xff]   ;;  %5177 = vmatpush3.bf16.msra.mxu0 %v5837_v22  ;;  %v5842_v27 = vld [vmem:[#allocation2 + $0xb0] sm:$0xff]   ;;  %v5846_v31 = vld [vmem:[#allocation2 + $0xa8] sm:$0xff]  }
 0x228   : > { %5289 = vmatpush3.bf16.msra.mxu1 %v5838_v23  ;;  %5178 = vmatprep.subr.bf16.mxu0 %v5839_v24  ;;  %v5847_v32 = vld [vmem:[#allocation2 + $0x60] sm:$0xff]   ;;  %v5851_v0 = vld [vmem:[#allocation2 + $0x58] sm:$0xff]   ;;  %v5855_v41 = vld [vmem:[#allocation2 + $0x50] sm:$0xff]  }
 0x229   : > { %5290 = vmatprep.subr.bf16.mxu1 %v5840_v25  ;;  %v5848_v33 = vld [vmem:[#allocation2 + $0xe0] sm:$0xff]   ;;  %v5852_v38 = vld [vmem:[#allocation2 + $0xd8] sm:$0xff]   ;;  %v5856_v42 = vld [vmem:[#allocation2 + $0xd0] sm:$0xff]  }
 0x22a   : > { %v5849_v35 = vld [vmem:[#allocation2 + $0x20] sm:$0xff]   ;;  %v5853_v39 = vld [vmem:[#allocation2 + $0x18] sm:$0xff]   ;;  %v5857_v43 = vld [vmem:[#allocation2 + $0x10] sm:$0xff]  }
 0x22b   : > { %5179 = vmatpush3.bf16.msra.mxu0 %v5841_v26  ;;  %v5850_v37 = vld [vmem:[#allocation2 + $0xa0] sm:$0xff]   ;;  %v5854_v40 = vld [vmem:[#allocation2 + $0x98] sm:$0xff]   ;;  %v5858_v44 = vld [vmem:[#allocation2 + $0x90] sm:$0xff]  }
 0x22c   : > { %5291 = vmatpush3.bf16.msra.mxu1 %v5842_v27  ;;  %5180 = vmatprep.subr.bf16.mxu0 %v5843_v28  ;;  %v5859_v45 = vld [vmem:[#allocation2 + $0x48] sm:$0xff]   ;;  %v5863_v49 = vld [vmem:[#allocation2 + $0x40] sm:$0xff]  }
 0x22d   : > { %5292 = vmatprep.subr.bf16.mxu1 %v5844_v29  ;;  %v5860_v46 = vld [vmem:[#allocation2 + $0xc8] sm:$0xff]   ;;  %v5864_v50 = vld [vmem:[#allocation2 + $0xc0] sm:$0xff]  }
 0x22e   : > { %v5861_v47 = vld [vmem:[#allocation2 + $0x8] sm:$0xff]   ;;  %v5865_v51 = vld [vmem:[#allocation2] sm:$0xff]  }
 0x22f   : > { %5181 = vmatpush3.bf16.msra.mxu0 %v5845_v30  ;;  %v5862_v48 = vld [vmem:[#allocation2 + $0x88] sm:$0xff]   ;;  %v5866_v52 = vld [vmem:[#allocation2 + $0x80] sm:$0xff]  }
 0x230   : > { %5293 = vmatpush3.bf16.msra.mxu1 %v5846_v31  ;;  %5182 = vmatprep.subr.bf16.mxu0 %v5847_v32  ;;  %v5867_v53 = vld [vmem:[%s6772_s13] ss:$16 sps:$4 sm:$0xff]   ;;  %v5869_v54 = vld [vmem:[%s6772_s13 + $0x4] ss:$16 sps:$4 sm:$0xff]   ;;  %v5870_v55 = vld [vmem:[%s6772_s13 + $0x8] ss:$16 sps:$4 sm:$0xff]  }
 0x231   : > { %5294 = vmatprep.subr.bf16.mxu1 %v5848_v33  ;;  %v5872_v56 = vld [vmem:[%s6772_s13 + $0xc] ss:$16 sps:$4 sm:$0xff]   ;;  %1869 = vmatprep.mubr.bf16.mxu0 %v5869_v54  ;;  %v5873_v57 = vld [vmem:[%s6772_s13 + $0x24] ss:$16 sps:$4 sm:$0xff]   ;;  %v5877_v59 = vld [vmem:[%s6772_s13 + $0x20] ss:$16 sps:$4 sm:$0xff]  }
 0x232   : > { %2030 = vmatprep.mubr.bf16.mxu1 %v5872_v56  ;;  %v5875_v58 = vld [vmem:[%s6772_s13 + $0x2c] ss:$16 sps:$4 sm:$0xff]   ;;  %v5878_v60 = vld [vmem:[%s6772_s13 + $0x28] ss:$16 sps:$4 sm:$0xff]   ;;  %v5879_v61 = vld [vmem:[%s6772_s13 + $0x44] ss:$16 sps:$4 sm:$0xff]  }
 0x233   : > { %5183 = vmatpush3.bf16.msra.mxu0 %v5849_v35  ;;  %v5881_v62 = vld [vmem:[%s6772_s13 + $0x4c] ss:$16 sps:$4 sm:$0xff]   ;;  %v5883_v63 = vld [vmem:[%s6772_s13 + $0x40] ss:$16 sps:$4 sm:$0xff]   ;;  %v5884_v1 = vld [vmem:[%s6772_s13 + $0x48] ss:$16 sps:$4 sm:$0xff]  }
 0x234   : > { %5295 = vmatpush3.bf16.msra.mxu1 %v5850_v37  ;;  %5184 = vmatprep.subr.bf16.mxu0 %v5851_v0  ;;  %v5885_v2 = vld [vmem:[%s6772_s13 + $0x64] ss:$16 sps:$4 sm:$0xff]   ;;  %v5887_v3 = vld [vmem:[%s6772_s13 + $0x6c] ss:$16 sps:$4 sm:$0xff]   ;;  %v5889_v4 = vld [vmem:[%s6772_s13 + $0x60] ss:$16 sps:$4 sm:$0xff]  }
 0x235   : > { %5296 = vmatprep.subr.bf16.mxu1 %v5852_v38  ;;  %v5890_v5 = vld [vmem:[%s6772_s13 + $0x68] ss:$16 sps:$4 sm:$0xff]   ;;  %v5891_v6 = vld [vmem:[%s6772_s13 + $0x84] ss:$16 sps:$4 sm:$0xff]   ;;  %v5893_v7 = vld [vmem:[%s6772_s13 + $0x8c] ss:$16 sps:$4 sm:$0xff]  }
 0x236   : > { %v5895_v8 = vld [vmem:[%s6772_s13 + $0x80] ss:$16 sps:$4 sm:$0xff]   ;;  %v5896_v9 = vld [vmem:[%s6772_s13 + $0x88] ss:$16 sps:$4 sm:$0xff]   ;;  %v5897_v10 = vld [vmem:[%s6772_s13 + $0xa4] ss:$16 sps:$4 sm:$0xff]  }
 0x237   : > { %5185 = vmatpush3.bf16.msra.mxu0 %v5853_v39  ;;  %v5899_v11 = vld [vmem:[%s6772_s13 + $0xac] ss:$16 sps:$4 sm:$0xff]   ;;  %v5901_v12 = vld [vmem:[%s6772_s13 + $0xa0] ss:$16 sps:$4 sm:$0xff]   ;;  %v5902_v13 = vld [vmem:[%s6772_s13 + $0xa8] ss:$16 sps:$4 sm:$0xff]  }
 0x238   : > { %5297 = vmatpush3.bf16.msra.mxu1 %v5854_v40  ;;  %5186 = vmatprep.subr.bf16.mxu0 %v5855_v41  ;;  %v5903_v14 = vld [vmem:[%s6772_s13 + $0xc4] ss:$16 sps:$4 sm:$0xff]   ;;  %v5905_v15 = vld [vmem:[%s6772_s13 + $0xcc] ss:$16 sps:$4 sm:$0xff]   ;;  %v5907_v16 = vld [vmem:[%s6772_s13 + $0xc0] ss:$16 sps:$4 sm:$0xff]  }
 0x239   : > { %5298 = vmatprep.subr.bf16.mxu1 %v5856_v42  ;;  %v5908_v17 = vld [vmem:[%s6772_s13 + $0xc8] ss:$16 sps:$4 sm:$0xff]   ;;  %v5909_v18 = vld [vmem:[%s6772_s13 + $0xe4] ss:$16 sps:$4 sm:$0xff]   ;;  %v5911_v19 = vld [vmem:[%s6772_s13 + $0xec] ss:$16 sps:$4 sm:$0xff]  }
 0x23a   : > { %v5913_v20 = vld [vmem:[%s6772_s13 + $0xe0] ss:$16 sps:$4 sm:$0xff]   ;;  %v5914_v21 = vld [vmem:[%s6772_s13 + $0xe8] ss:$16 sps:$4 sm:$0xff]   ;;  %v5915_v34 = vld [vmem:[%s6772_s13 + $0x104] ss:$16 sps:$4 sm:$0xff]  }
 0x23b   : > { %5187 = vmatpush3.bf16.msra.mxu0 %v5857_v43  ;;  %v5917_v36 = vld [vmem:[%s6772_s13 + $0x10c] ss:$16 sps:$4 sm:$0xff]   ;;  %v5919_v22 = vld [vmem:[%s6772_s13 + $0x100] ss:$16 sps:$4 sm:$0xff]   ;;  %v5920_v23 = vld [vmem:[%s6772_s13 + $0x108] ss:$16 sps:$4 sm:$0xff]  }
 0x23c   : > { %5299 = vmatpush3.bf16.msra.mxu1 %v5858_v44  ;;  %5188 = vmatprep.subr.bf16.mxu0 %v5859_v45  ;;  %v5921_v24 = vld [vmem:[%s6772_s13 + $0x124] ss:$16 sps:$4 sm:$0xff]   ;;  %v5923_v25 = vld [vmem:[%s6772_s13 + $0x12c] ss:$16 sps:$4 sm:$0xff]   ;;  %v5925_v26 = vld [vmem:[%s6772_s13 + $0x120] ss:$16 sps:$4 sm:$0xff]  }
 0x23d   : > { %5300 = vmatprep.subr.bf16.mxu1 %v5860_v46  ;;  %v5926_v27 = vld [vmem:[%s6772_s13 + $0x128] ss:$16 sps:$4 sm:$0xff]   ;;  %v5927_v28 = vld [vmem:[%s6772_s13 + $0x144] ss:$16 sps:$4 sm:$0xff]   ;;  %v5929_v29 = vld [vmem:[%s6772_s13 + $0x14c] ss:$16 sps:$4 sm:$0xff]  }
 0x23e   : > { %v5931_v30 = vld [vmem:[%s6772_s13 + $0x140] ss:$16 sps:$4 sm:$0xff]   ;;  %v5932_v31 = vld [vmem:[%s6772_s13 + $0x148] ss:$16 sps:$4 sm:$0xff]   ;;  %v5933_v32 = vld [vmem:[%s6772_s13 + $0x164] ss:$16 sps:$4 sm:$0xff]  }
 0x23f   : > { %5189 = vmatpush3.bf16.msra.mxu0 %v5861_v47  ;;  %v5935_v33 = vld [vmem:[%s6772_s13 + $0x16c] ss:$16 sps:$4 sm:$0xff]   ;;  %v5937_v35 = vld [vmem:[%s6772_s13 + $0x160] ss:$16 sps:$4 sm:$0xff]   ;;  %v5938_v37 = vld [vmem:[%s6772_s13 + $0x168] ss:$16 sps:$4 sm:$0xff]  }
 0x240   : > { %5301 = vmatpush3.bf16.msra.mxu1 %v5862_v48  ;;  %5190 = vmatprep.subr.bf16.mxu0 %v5863_v49  ;;  %v5939_v0 = vld [vmem:[%s6772_s13 + $0x184] ss:$16 sps:$4 sm:$0xff]   ;;  %v5941_v38 = vld [vmem:[%s6772_s13 + $0x18c] ss:$16 sps:$4 sm:$0xff]   ;;  %v5943_v39 = vld [vmem:[%s6772_s13 + $0x180] ss:$16 sps:$4 sm:$0xff]  }
 0x241   : > { %5302 = vmatprep.subr.bf16.mxu1 %v5864_v50  ;;  %v5944_v40 = vld [vmem:[%s6772_s13 + $0x188] ss:$16 sps:$4 sm:$0xff]   ;;  %v5945_v41 = vld [vmem:[%s6772_s13 + $0x1a4] ss:$16 sps:$4 sm:$0xff]   ;;  %v5947_v42 = vld [vmem:[%s6772_s13 + $0x1ac] ss:$16 sps:$4 sm:$0xff]  }
 0x242   : > { %v5949_v43 = vld [vmem:[%s6772_s13 + $0x1a0] ss:$16 sps:$4 sm:$0xff]   ;;  %v5950_v44 = vld [vmem:[%s6772_s13 + $0x1a8] ss:$16 sps:$4 sm:$0xff]   ;;  %v5951_v45 = vld [vmem:[%s6772_s13 + $0x1c4] ss:$16 sps:$4 sm:$0xff]  }
 0x243   : > { %5191 = vmatpush3.bf16.msra.mxu0 %v5865_v51  ;;  %v5953_v46 = vld [vmem:[%s6772_s13 + $0x1cc] ss:$16 sps:$4 sm:$0xff]   ;;  %v5955_v47 = vld [vmem:[%s6772_s13 + $0x1c0] ss:$16 sps:$4 sm:$0xff]   ;;  %v5956_v48 = vld [vmem:[%s6772_s13 + $0x1c8] ss:$16 sps:$4 sm:$0xff]  }
 0x244   : > { %5303 = vmatpush3.bf16.msra.mxu1 %v5866_v52  ;;  %v5957_v49 = vld [vmem:[%s6772_s13 + $0x1e4] ss:$16 sps:$4 sm:$0xff]   ;;  %v5959_v50 = vld [vmem:[%s6772_s13 + $0x1ec] ss:$16 sps:$4 sm:$0xff]   ;;  %v5961_v51 = vld [vmem:[%s6772_s13 + $0x1e0] ss:$16 sps:$4 sm:$0xff]  }
 0x245   : > { %v5962_v52 = vld [vmem:[%s6772_s13 + $0x1e8] ss:$16 sps:$4 sm:$0xff]  }
 0x246   : > { %1870 = vmatmul.mubr.bf16.vlgmr.msra.gmra.mxu0 %v5867_v53 }
 0x247   : > { %2031 = vmatmul.mubr.bf16.vlgmr.msra.gmra.mxu1 %v5870_v55  ;;  %1877 = vmatprep.mubr.bf16.mxu0 %v5873_v57 }
 0x248   : > { %2038 = vmatprep.mubr.bf16.mxu1 %v5875_v58 }
 0x24e   : > { %1878 = vmatmul.mubr.bf16.gmra.mxu0 %v5877_v59 }
 0x24f   : > { %2039 = vmatmul.mubr.bf16.gmra.mxu1 %v5878_v60  ;;  %1885 = vmatprep.mubr.bf16.mxu0 %v5879_v61  ;;  %v6839_v60 = vstv %s2354_s14 }
 0x250   : > { %2046 = vmatprep.mubr.bf16.mxu1 %v5881_v62 }
 0x256   : > { %1886 = vmatmul.mubr.bf16.gmra.mxu0 %v5883_v63 }
 0x257   : > { %2047 = vmatmul.mubr.bf16.gmra.mxu1 %v5884_v1  ;;  %1893 = vmatprep.mubr.bf16.mxu0 %v5885_v2  ;;  %v2322_v1 = vld [vmem:[%s6842_s15] sm:$0xff] }
 0x258   : > { %2054 = vmatprep.mubr.bf16.mxu1 %v5887_v3 }
 0x25e   : > { %1894 = vmatmul.mubr.bf16.gmra.mxu0 %v5889_v4 }
 0x25f   : > { %2055 = vmatmul.mubr.bf16.gmra.mxu1 %v5890_v5  ;;  %1901 = vmatprep.mubr.bf16.mxu0 %v5891_v6 }
 0x260   : > { %2062 = vmatprep.mubr.bf16.mxu1 %v5893_v7 }
 0x266   : > { %1902 = vmatmul.mubr.bf16.gmra.mxu0 %v5895_v8 }
 0x267   : > { %2063 = vmatmul.mubr.bf16.gmra.mxu1 %v5896_v9  ;;  %1909 = vmatprep.mubr.bf16.mxu0 %v5897_v10 }
 0x268   : > { %2070 = vmatprep.mubr.bf16.mxu1 %v5899_v11  ;;  %v2323_v11 = vld [vmem:[%s6842_s15 + $0x8] sm:$0xff] }
 0x26e   : > { %1910 = vmatmul.mubr.bf16.gmra.mxu0 %v5901_v12 }
 0x26f   : > { %2071 = vmatmul.mubr.bf16.gmra.mxu1 %v5902_v13  ;;  %1917 = vmatprep.mubr.bf16.mxu0 %v5903_v14 }
 0x270   : > { %2078 = vmatprep.mubr.bf16.mxu1 %v5905_v15 }
 0x276   : > { %1918 = vmatmul.mubr.bf16.gmra.mxu0 %v5907_v16 }
 0x277   : > { %2079 = vmatmul.mubr.bf16.gmra.mxu1 %v5908_v17  ;;  %1925 = vmatprep.mubr.bf16.mxu0 %v5909_v18 }
 0x278   : > { %2086 = vmatprep.mubr.bf16.mxu1 %v5911_v19 }
 0x27e   : > { %1926 = vmatmul.mubr.bf16.gmra.mxu0 %v5913_v20 }
 0x27f   : > { %2087 = vmatmul.mubr.bf16.gmra.mxu1 %v5914_v21  ;;  %1933 = vmatprep.mubr.bf16.mxu0 %v5915_v34  ;;  %v2324_v34 = vld [vmem:[%s6842_s15 + $0x10] sm:$0xff] }
 0x280   : > { %2094 = vmatprep.mubr.bf16.mxu1 %v5917_v36 }
 0x286   : > { %1934 = vmatmul.mubr.bf16.gmra.mxu0 %v5919_v22 }
 0x287   : > { %2095 = vmatmul.mubr.bf16.gmra.mxu1 %v5920_v23  ;;  %1941 = vmatprep.mubr.bf16.mxu0 %v5921_v24 }
 0x288   : > { %2102 = vmatprep.mubr.bf16.mxu1 %v5923_v25 }
 0x28e   : > { %1942 = vmatmul.mubr.bf16.gmra.mxu0 %v5925_v26 }
 0x28f   : > { %2103 = vmatmul.mubr.bf16.gmra.mxu1 %v5926_v27  ;;  %1949 = vmatprep.mubr.bf16.mxu0 %v5927_v28 }
 0x290   : > { %2110 = vmatprep.mubr.bf16.mxu1 %v5929_v29 }
 0x296   : > { %1950 = vmatmul.mubr.bf16.gmra.mxu0 %v5931_v30  ;;  %v2325_v30 = vld [vmem:[%s6842_s15 + $0x18] sm:$0xff] }
 0x297   : > { %2111 = vmatmul.mubr.bf16.gmra.mxu1 %v5932_v31  ;;  %1957 = vmatprep.mubr.bf16.mxu0 %v5933_v32 }
 0x298   : > { %2118 = vmatprep.mubr.bf16.mxu1 %v5935_v33 }
 0x29e   : > { %1958 = vmatmul.mubr.bf16.gmra.mxu0 %v5937_v35 }
 0x29f   : > { %2119 = vmatmul.mubr.bf16.gmra.mxu1 %v5938_v37  ;;  %1965 = vmatprep.mubr.bf16.mxu0 %v5939_v0 }
 0x2a0   : > { %2126 = vmatprep.mubr.bf16.mxu1 %v5941_v38 }
 0x2a6   : > { %1966 = vmatmul.mubr.bf16.gmra.mxu0 %v5943_v39 }
 0x2a7   : > { %2127 = vmatmul.mubr.bf16.gmra.mxu1 %v5944_v40  ;;  %1973 = vmatprep.mubr.bf16.mxu0 %v5945_v41 }
 0x2a8   : > { %2134 = vmatprep.mubr.bf16.mxu1 %v5947_v42  ;;  %v2326_v42 = vld [vmem:[%s6842_s15 + $0x20] sm:$0xff] }
 0x2ae   : > { %1974 = vmatmul.mubr.bf16.gmra.mxu0 %v5949_v43 }
 0x2af   : > { %2135 = vmatmul.mubr.bf16.gmra.mxu1 %v5950_v44  ;;  %1981 = vmatprep.mubr.bf16.mxu0 %v5951_v45 }
 0x2b0   : > { %2142 = vmatprep.mubr.bf16.mxu1 %v5953_v46 }
 0x2b6   : > { %1982 = vmatmul.mubr.bf16.gmra.mxu0 %v5955_v47 }
 0x2b7   : > { %2143 = vmatmul.mubr.bf16.gmra.mxu1 %v5956_v48  ;;  %1989 = vmatprep.mubr.bf16.mxu0 %v5957_v49 }
 0x2b8   : > { %2150 = vmatprep.mubr.bf16.mxu1 %v5959_v50 }
 0x2be   : > { %1990 = vmatmul.mubr.bf16.gmra.mxu0 %v5961_v51 }
 0x2bf   : > { %2151 = vmatmul.mubr.bf16.gmra.mxu1 %v5962_v52  ;;  %v2327_v52 = vld [vmem:[%s6842_s15 + $0x28] sm:$0xff] }
 0x306   : > { %v5192_v53 = vpop.f32.mrf.mxu0 }
 0x307   : > { %v5304_v54 = vpop.f32.mrf.mxu1 }
 0x308   : > { %v5193_v55 = vpop.f32.mrf.mxu0 }
 0x309   : > { %v5194_v56 = vadd.f32 %v5193_v55, %v5192_v53  ;;  %v5305_v57 = vpop.f32.mrf.mxu1 }
 0x30a   : > { %v5306_v58 = vadd.f32 %v5305_v57, %v5304_v54  ;;  %v5195_v59 = vpop.f32.mrf.mxu0 }
 0x30b   : > { %v5307_v61 = vpop.f32.mrf.mxu1 }
 0x30c   : > { %v2033_v62 = vadd.f32 %v5306_v58, %v5194_v56  ;;  %v5196_v63 = vpop.f32.mrf.mxu0 }
 0x30d   : > { %v5197_v2 = vadd.f32 %v5196_v63, %v5195_v59  ;;  %v5308_v3 = vpop.f32.mrf.mxu1 }
 0x30e   : > { %v2356_v4 = vmul.f32 %v6839_v60, %v2033_v62  ;;  %v5309_v5 = vadd.f32 %v5308_v3, %v5307_v61  ;;  %v5198_v6 = vpop.f32.mrf.mxu0 }
 0x30f   : > { %v5310_v7 = vpop.f32.mrf.mxu1 }
 0x310   : > { %v2388_v8 = vadd.f32 %v2356_v4, %v2322_v1  ;;  %v2036_v9 = vadd.f32 %v5309_v5, %v5197_v2  ;;  %v5199_v10 = vpop.f32.mrf.mxu0  ;;  %v2328_v1 = vld [vmem:[%s6842_s15 + $0x30] sm:$0xff] }
 0x311   : > { %v5200_v12 = vadd.f32 %v5199_v10, %v5198_v6  ;;  %v5311_v13 = vpop.f32.mrf.mxu1 }
 0x312   : > { %2420 = vst [vmem:[%s6842_s15] sm:$0xff] %v2388_v8  ;;  %v4878_v14 = vpack.c.bf16 %v2036_v9, %v2033_v62  ;;  %v2357_v15 = vmul.f32 %v6839_v60, %v2036_v9  ;;  %v5312_v16 = vadd.f32 %v5311_v13, %v5310_v7  ;;  %v5201_v17 = vpop.f32.mrf.mxu0 }
 0x313   : > { %v5313_v18 = vpop.f32.mrf.mxu1 }
 0x314   : > { %4879 = vst [vmem:[%s6851_s18] sm:$0xff] %v4878_v14   ;;  %v2389_v19 = vadd.f32 %v2357_v15, %v2323_v11  ;;  %v2041_v20 = vadd.f32 %v5312_v16, %v5200_v12  ;;  %v5202_v21 = vpop.f32.mrf.mxu0  ;;  %v2329_v11 = vld [vmem:[%s6842_s15 + $0x38] sm:$0xff] }
 0x315   : > { %v5203_v36 = vadd.f32 %v5202_v21, %v5201_v17  ;;  %v5314_v22 = vpop.f32.mrf.mxu1 }
 0x316   : > { %2421 = vst [vmem:[%s6842_s15 + $0x8] sm:$0xff] %v2389_v19  ;;  %v2358_v23 = vmul.f32 %v6839_v60, %v2041_v20  ;;  %v5315_v24 = vadd.f32 %v5314_v22, %v5313_v18  ;;  %v5204_v25 = vpop.f32.mrf.mxu0 }
 0x317   : > { %v5316_v26 = vpop.f32.mrf.mxu1 }
 0x318   : > { %v2390_v27 = vadd.f32 %v2358_v23, %v2324_v34  ;;  %v2044_v28 = vadd.f32 %v5315_v24, %v5203_v36  ;;  %v5205_v29 = vpop.f32.mrf.mxu0  ;;  %v2330_v34 = vld [vmem:[%s6842_s15 + $0x40] sm:$0xff] }
 0x319   : > { %v5206_v31 = vadd.f32 %v5205_v29, %v5204_v25  ;;  %v5317_v32 = vpop.f32.mrf.mxu1 }
 0x31a   : > { %2422 = vst [vmem:[%s6842_s15 + $0x10] sm:$0xff] %v2390_v27  ;;  %v4883_v33 = vpack.c.bf16 %v2044_v28, %v2041_v20  ;;  %v2359_v35 = vmul.f32 %v6839_v60, %v2044_v28  ;;  %v5318_v37 = vadd.f32 %v5317_v32, %v5316_v26  ;;  %v5207_v0 = vpop.f32.mrf.mxu0 }
 0x31b   : > { %v5319_v38 = vpop.f32.mrf.mxu1 }
 0x31c   : > { %5050 = vst [vmem:[%s6851_s18 + $0x8] sm:$0xff] %v4883_v33   ;;  %v2391_v39 = vadd.f32 %v2359_v35, %v2325_v30  ;;  %v2049_v40 = vadd.f32 %v5318_v37, %v5206_v31  ;;  %v5208_v41 = vpop.f32.mrf.mxu0  ;;  %v2331_v30 = vld [vmem:[%s6842_s15 + $0x48] sm:$0xff] }
 0x31d   : > { %v5209_v43 = vadd.f32 %v5208_v41, %v5207_v0  ;;  %v5320_v44 = vpop.f32.mrf.mxu1 }
 0x31e   : > { %2423 = vst [vmem:[%s6842_s15 + $0x18] sm:$0xff] %v2391_v39  ;;  %v2360_v45 = vmul.f32 %v6839_v60, %v2049_v40  ;;  %v5321_v46 = vadd.f32 %v5320_v44, %v5319_v38  ;;  %v5210_v47 = vpop.f32.mrf.mxu0 }
 0x31f   : > { %v5322_v48 = vpop.f32.mrf.mxu1 }
 0x320   : > { %v2392_v49 = vadd.f32 %v2360_v45, %v2326_v42  ;;  %v2052_v50 = vadd.f32 %v5321_v46, %v5209_v43  ;;  %v5211_v51 = vpop.f32.mrf.mxu0  ;;  %v2332_v42 = vld [vmem:[%s6842_s15 + $0x50] sm:$0xff] }
 0x321   : > { %v5212_v53 = vadd.f32 %v5211_v51, %v5210_v47  ;;  %v5323_v54 = vpop.f32.mrf.mxu1 }
 0x322   : > { %2424 = vst [vmem:[%s6842_s15 + $0x20] sm:$0xff] %v2392_v49  ;;  %v4888_v55 = vpack.c.bf16 %v2052_v50, %v2049_v40  ;;  %v2361_v56 = vmul.f32 %v6839_v60, %v2052_v50  ;;  %v5324_v57 = vadd.f32 %v5323_v54, %v5322_v48  ;;  %v5213_v58 = vpop.f32.mrf.mxu0 }
 0x323   : > { %v5325_v59 = vpop.f32.mrf.mxu1 }
 0x324   : > { %5051 = vst [vmem:[%s6851_s18 + $0x10] sm:$0xff] %v4888_v55   ;;  %v2393_v61 = vadd.f32 %v2361_v56, %v2327_v52  ;;  %v2057_v62 = vadd.f32 %v5324_v57, %v5212_v53  ;;  %v5214_v63 = vpop.f32.mrf.mxu0  ;;  %v2333_v52 = vld [vmem:[%s6842_s15 + $0x58] sm:$0xff] }
 0x325   : > { %v5215_v2 = vadd.f32 %v5214_v63, %v5213_v58  ;;  %v5326_v3 = vpop.f32.mrf.mxu1 }
 0x326   : > { %2425 = vst [vmem:[%s6842_s15 + $0x28] sm:$0xff] %v2393_v61  ;;  %v2362_v4 = vmul.f32 %v6839_v60, %v2057_v62  ;;  %v5327_v5 = vadd.f32 %v5326_v3, %v5325_v59  ;;  %v5216_v6 = vpop.f32.mrf.mxu0 }
 0x327   : > { %v5328_v7 = vpop.f32.mrf.mxu1 }
 0x328   : > { %v2394_v8 = vadd.f32 %v2362_v4, %v2328_v1  ;;  %v2060_v9 = vadd.f32 %v5327_v5, %v5215_v2  ;;  %v5217_v10 = vpop.f32.mrf.mxu0  ;;  %v2334_v1 = vld [vmem:[%s6842_s15 + $0x60] sm:$0xff] }
 0x329   : > { %v5218_v12 = vadd.f32 %v5217_v10, %v5216_v6  ;;  %v5329_v13 = vpop.f32.mrf.mxu1 }
 0x32a   : > { %2426 = vst [vmem:[%s6842_s15 + $0x30] sm:$0xff] %v2394_v8  ;;  %v4893_v14 = vpack.c.bf16 %v2060_v9, %v2057_v62  ;;  %v2363_v15 = vmul.f32 %v6839_v60, %v2060_v9  ;;  %v5330_v16 = vadd.f32 %v5329_v13, %v5328_v7  ;;  %v5219_v17 = vpop.f32.mrf.mxu0 }
 0x32b   : > { %v5331_v18 = vpop.f32.mrf.mxu1 }
 0x32c   : > { %5052 = vst [vmem:[%s6851_s18 + $0x18] sm:$0xff] %v4893_v14   ;;  %v2395_v19 = vadd.f32 %v2363_v15, %v2329_v11  ;;  %v2065_v20 = vadd.f32 %v5330_v16, %v5218_v12  ;;  %v5220_v21 = vpop.f32.mrf.mxu0  ;;  %v2335_v11 = vld [vmem:[%s6842_s15 + $0x68] sm:$0xff] }
 0x32d   : > { %v5221_v36 = vadd.f32 %v5220_v21, %v5219_v17  ;;  %v5332_v22 = vpop.f32.mrf.mxu1 }
 0x32e   : > { %2427 = vst [vmem:[%s6842_s15 + $0x38] sm:$0xff] %v2395_v19  ;;  %v2364_v23 = vmul.f32 %v6839_v60, %v2065_v20  ;;  %v5333_v24 = vadd.f32 %v5332_v22, %v5331_v18  ;;  %v5222_v25 = vpop.f32.mrf.mxu0 }
 0x32f   : > { %v5334_v26 = vpop.f32.mrf.mxu1 }
 0x330   : > { %v2396_v27 = vadd.f32 %v2364_v23, %v2330_v34  ;;  %v2068_v28 = vadd.f32 %v5333_v24, %v5221_v36  ;;  %v5223_v29 = vpop.f32.mrf.mxu0  ;;  %v2336_v34 = vld [vmem:[%s6842_s15 + $0x70] sm:$0xff] }
 0x331   : > { %v5224_v31 = vadd.f32 %v5223_v29, %v5222_v25  ;;  %v5335_v32 = vpop.f32.mrf.mxu1 }
 0x332   : > { %2428 = vst [vmem:[%s6842_s15 + $0x40] sm:$0xff] %v2396_v27  ;;  %v4898_v33 = vpack.c.bf16 %v2068_v28, %v2065_v20  ;;  %v2365_v35 = vmul.f32 %v6839_v60, %v2068_v28  ;;  %v5336_v37 = vadd.f32 %v5335_v32, %v5334_v26  ;;  %v5225_v0 = vpop.f32.mrf.mxu0 }
 0x333   : > { %v5337_v38 = vpop.f32.mrf.mxu1 }
 0x334   : > { %5053 = vst [vmem:[%s6851_s18 + $0x20] sm:$0xff] %v4898_v33   ;;  %v2397_v39 = vadd.f32 %v2365_v35, %v2331_v30  ;;  %v2073_v40 = vadd.f32 %v5336_v37, %v5224_v31  ;;  %v5226_v41 = vpop.f32.mrf.mxu0  ;;  %v2337_v30 = vld [vmem:[%s6842_s15 + $0x78] sm:$0xff] }
 0x335   : > { %v5227_v43 = vadd.f32 %v5226_v41, %v5225_v0  ;;  %v5338_v44 = vpop.f32.mrf.mxu1 }
 0x336   : > { %2429 = vst [vmem:[%s6842_s15 + $0x48] sm:$0xff] %v2397_v39  ;;  %v2366_v45 = vmul.f32 %v6839_v60, %v2073_v40  ;;  %v5339_v46 = vadd.f32 %v5338_v44, %v5337_v38  ;;  %v5228_v47 = vpop.f32.mrf.mxu0 }
 0x337   : > { %v5340_v48 = vpop.f32.mrf.mxu1 }
 0x338   : > { %v2398_v49 = vadd.f32 %v2366_v45, %v2332_v42  ;;  %v2076_v50 = vadd.f32 %v5339_v46, %v5227_v43  ;;  %v5229_v51 = vpop.f32.mrf.mxu0  ;;  %v2338_v42 = vld [vmem:[%s6842_s15 + $0x80] sm:$0xff] }
 0x339   : > { %v5230_v53 = vadd.f32 %v5229_v51, %v5228_v47  ;;  %v5341_v54 = vpop.f32.mrf.mxu1 }
 0x33a   : > { %2430 = vst [vmem:[%s6842_s15 + $0x50] sm:$0xff] %v2398_v49  ;;  %v4903_v55 = vpack.c.bf16 %v2076_v50, %v2073_v40  ;;  %v2367_v56 = vmul.f32 %v6839_v60, %v2076_v50  ;;  %v5342_v57 = vadd.f32 %v5341_v54, %v5340_v48  ;;  %v5231_v58 = vpop.f32.mrf.mxu0 }
 0x33b   : > { %v5343_v59 = vpop.f32.mrf.mxu1 }
 0x33c   : > { %5054 = vst [vmem:[%s6851_s18 + $0x28] sm:$0xff] %v4903_v55   ;;  %v2399_v61 = vadd.f32 %v2367_v56, %v2333_v52  ;;  %v2081_v62 = vadd.f32 %v5342_v57, %v5230_v53  ;;  %v5232_v63 = vpop.f32.mrf.mxu0  ;;  %v2339_v52 = vld [vmem:[%s6842_s15 + $0x88] sm:$0xff] }
 0x33d   : > { %v5233_v2 = vadd.f32 %v5232_v63, %v5231_v58  ;;  %v5344_v3 = vpop.f32.mrf.mxu1 }
 0x33e   : > { %2431 = vst [vmem:[%s6842_s15 + $0x58] sm:$0xff] %v2399_v61  ;;  %v2368_v4 = vmul.f32 %v6839_v60, %v2081_v62  ;;  %v5345_v5 = vadd.f32 %v5344_v3, %v5343_v59  ;;  %v5234_v6 = vpop.f32.mrf.mxu0 }
 0x33f   : > { %v5346_v7 = vpop.f32.mrf.mxu1 }
 0x340   : > { %v2400_v8 = vadd.f32 %v2368_v4, %v2334_v1  ;;  %v2084_v9 = vadd.f32 %v5345_v5, %v5233_v2  ;;  %v5235_v10 = vpop.f32.mrf.mxu0  ;;  %v2340_v1 = vld [vmem:[%s6842_s15 + $0x90] sm:$0xff] }
 0x341   : > { %v5236_v12 = vadd.f32 %v5235_v10, %v5234_v6  ;;  %v5347_v13 = vpop.f32.mrf.mxu1 }
 0x342   : > { %2432 = vst [vmem:[%s6842_s15 + $0x60] sm:$0xff] %v2400_v8  ;;  %v4908_v14 = vpack.c.bf16 %v2084_v9, %v2081_v62  ;;  %v2369_v15 = vmul.f32 %v6839_v60, %v2084_v9  ;;  %v5348_v16 = vadd.f32 %v5347_v13, %v5346_v7  ;;  %v5237_v17 = vpop.f32.mrf.mxu0 }
 0x343   : > { %v5349_v18 = vpop.f32.mrf.mxu1 }
 0x344   : > { %5055 = vst [vmem:[%s6851_s18 + $0x30] sm:$0xff] %v4908_v14   ;;  %v2401_v19 = vadd.f32 %v2369_v15, %v2335_v11  ;;  %v2089_v20 = vadd.f32 %v5348_v16, %v5236_v12  ;;  %v5238_v21 = vpop.f32.mrf.mxu0  ;;  %v2341_v11 = vld [vmem:[%s6842_s15 + $0x98] sm:$0xff] }
 0x345   : > { %v5239_v36 = vadd.f32 %v5238_v21, %v5237_v17  ;;  %v5350_v22 = vpop.f32.mrf.mxu1 }
 0x346   : > { %2433 = vst [vmem:[%s6842_s15 + $0x68] sm:$0xff] %v2401_v19  ;;  %v2370_v23 = vmul.f32 %v6839_v60, %v2089_v20  ;;  %v5351_v24 = vadd.f32 %v5350_v22, %v5349_v18  ;;  %v5240_v25 = vpop.f32.mrf.mxu0 }
 0x347   : > { %v5352_v26 = vpop.f32.mrf.mxu1 }
 0x348   : > { %v2402_v27 = vadd.f32 %v2370_v23, %v2336_v34  ;;  %v2092_v28 = vadd.f32 %v5351_v24, %v5239_v36  ;;  %v5241_v29 = vpop.f32.mrf.mxu0  ;;  %v2342_v34 = vld [vmem:[%s6842_s15 + $0xa0] sm:$0xff] }
 0x349   : > { %v5242_v31 = vadd.f32 %v5241_v29, %v5240_v25  ;;  %v5353_v32 = vpop.f32.mrf.mxu1 }
 0x34a   : > { %2434 = vst [vmem:[%s6842_s15 + $0x70] sm:$0xff] %v2402_v27  ;;  %v4913_v33 = vpack.c.bf16 %v2092_v28, %v2089_v20  ;;  %v2371_v35 = vmul.f32 %v6839_v60, %v2092_v28  ;;  %v5354_v37 = vadd.f32 %v5353_v32, %v5352_v26  ;;  %v5243_v0 = vpop.f32.mrf.mxu0 }
 0x34b   : > { %v5355_v38 = vpop.f32.mrf.mxu1 }
 0x34c   : > { %5056 = vst [vmem:[%s6851_s18 + $0x38] sm:$0xff] %v4913_v33   ;;  %v2403_v39 = vadd.f32 %v2371_v35, %v2337_v30  ;;  %v2097_v40 = vadd.f32 %v5354_v37, %v5242_v31  ;;  %v5244_v41 = vpop.f32.mrf.mxu0  ;;  %v2343_v30 = vld [vmem:[%s6842_s15 + $0xa8] sm:$0xff] }
 0x34d   : > { %v5245_v43 = vadd.f32 %v5244_v41, %v5243_v0  ;;  %v5356_v44 = vpop.f32.mrf.mxu1 }
 0x34e   : > { %2435 = vst [vmem:[%s6842_s15 + $0x78] sm:$0xff] %v2403_v39  ;;  %v2372_v45 = vmul.f32 %v6839_v60, %v2097_v40  ;;  %v5357_v46 = vadd.f32 %v5356_v44, %v5355_v38  ;;  %v5246_v47 = vpop.f32.mrf.mxu0 }
 0x34f   : > { %v5358_v48 = vpop.f32.mrf.mxu1 }
 0x350   : > { %v2404_v49 = vadd.f32 %v2372_v45, %v2338_v42  ;;  %v2100_v50 = vadd.f32 %v5357_v46, %v5245_v43  ;;  %v5247_v51 = vpop.f32.mrf.mxu0  ;;  %v2344_v42 = vld [vmem:[%s6842_s15 + $0xb0] sm:$0xff] }
 0x351   : > { %v5248_v53 = vadd.f32 %v5247_v51, %v5246_v47  ;;  %v5359_v54 = vpop.f32.mrf.mxu1 }
 0x352   : > { %2436 = vst [vmem:[%s6842_s15 + $0x80] sm:$0xff] %v2404_v49  ;;  %v4918_v55 = vpack.c.bf16 %v2100_v50, %v2097_v40  ;;  %v2373_v56 = vmul.f32 %v6839_v60, %v2100_v50  ;;  %v5360_v57 = vadd.f32 %v5359_v54, %v5358_v48  ;;  %v5249_v58 = vpop.f32.mrf.mxu0 }
 0x353   : > { %v5361_v59 = vpop.f32.mrf.mxu1 }
 0x354   : > { %5057 = vst [vmem:[%s6851_s18 + $0x40] sm:$0xff] %v4918_v55   ;;  %v2405_v61 = vadd.f32 %v2373_v56, %v2339_v52  ;;  %v2105_v62 = vadd.f32 %v5360_v57, %v5248_v53  ;;  %v5250_v63 = vpop.f32.mrf.mxu0  ;;  %v2345_v52 = vld [vmem:[%s6842_s15 + $0xb8] sm:$0xff] }
 0x355   : > { %v5251_v2 = vadd.f32 %v5250_v63, %v5249_v58  ;;  %v5362_v3 = vpop.f32.mrf.mxu1 }
 0x356   : > { %2437 = vst [vmem:[%s6842_s15 + $0x88] sm:$0xff] %v2405_v61  ;;  %v2374_v4 = vmul.f32 %v6839_v60, %v2105_v62  ;;  %v5363_v5 = vadd.f32 %v5362_v3, %v5361_v59  ;;  %v5252_v6 = vpop.f32.mrf.mxu0 }
 0x357   : > { %v5364_v7 = vpop.f32.mrf.mxu1 }
 0x358   : > { %v2406_v8 = vadd.f32 %v2374_v4, %v2340_v1  ;;  %v2108_v9 = vadd.f32 %v5363_v5, %v5251_v2  ;;  %v5253_v10 = vpop.f32.mrf.mxu0  ;;  %v2346_v1 = vld [vmem:[%s6842_s15 + $0xc0] sm:$0xff] }
 0x359   : > { %v5254_v12 = vadd.f32 %v5253_v10, %v5252_v6  ;;  %v5365_v13 = vpop.f32.mrf.mxu1 }
 0x35a   : > { %2438 = vst [vmem:[%s6842_s15 + $0x90] sm:$0xff] %v2406_v8  ;;  %v4923_v14 = vpack.c.bf16 %v2108_v9, %v2105_v62  ;;  %v2375_v15 = vmul.f32 %v6839_v60, %v2108_v9  ;;  %v5366_v16 = vadd.f32 %v5365_v13, %v5364_v7  ;;  %v5255_v17 = vpop.f32.mrf.mxu0 }
 0x35b   : > { %v5367_v18 = vpop.f32.mrf.mxu1 }
 0x35c   : > { %5058 = vst [vmem:[%s6851_s18 + $0x48] sm:$0xff] %v4923_v14   ;;  %v2407_v19 = vadd.f32 %v2375_v15, %v2341_v11  ;;  %v2113_v20 = vadd.f32 %v5366_v16, %v5254_v12  ;;  %v5256_v21 = vpop.f32.mrf.mxu0  ;;  %v2347_v11 = vld [vmem:[%s6842_s15 + $0xc8] sm:$0xff] }
 0x35d   : > { %v5257_v36 = vadd.f32 %v5256_v21, %v5255_v17  ;;  %v5368_v22 = vpop.f32.mrf.mxu1 }
 0x35e   : > { %2439 = vst [vmem:[%s6842_s15 + $0x98] sm:$0xff] %v2407_v19  ;;  %v2376_v23 = vmul.f32 %v6839_v60, %v2113_v20  ;;  %v5369_v24 = vadd.f32 %v5368_v22, %v5367_v18  ;;  %v5258_v25 = vpop.f32.mrf.mxu0 }
 0x35f   : > { %v5370_v26 = vpop.f32.mrf.mxu1 }
 0x360   : > { %v2408_v27 = vadd.f32 %v2376_v23, %v2342_v34  ;;  %v2116_v28 = vadd.f32 %v5369_v24, %v5257_v36  ;;  %v5259_v29 = vpop.f32.mrf.mxu0  ;;  %v2348_v34 = vld [vmem:[%s6842_s15 + $0xd0] sm:$0xff] }
 0x361   : > { %v5260_v31 = vadd.f32 %v5259_v29, %v5258_v25  ;;  %v5371_v32 = vpop.f32.mrf.mxu1 }
 0x362   : > { %2440 = vst [vmem:[%s6842_s15 + $0xa0] sm:$0xff] %v2408_v27  ;;  %v4928_v33 = vpack.c.bf16 %v2116_v28, %v2113_v20  ;;  %v2377_v35 = vmul.f32 %v6839_v60, %v2116_v28  ;;  %v5372_v37 = vadd.f32 %v5371_v32, %v5370_v26  ;;  %v5261_v0 = vpop.f32.mrf.mxu0 }
 0x363   : > { %v5373_v38 = vpop.f32.mrf.mxu1 }
 0x364   : > { %5059 = vst [vmem:[%s6851_s18 + $0x50] sm:$0xff] %v4928_v33   ;;  %v2409_v39 = vadd.f32 %v2377_v35, %v2343_v30  ;;  %v2121_v40 = vadd.f32 %v5372_v37, %v5260_v31  ;;  %v5262_v41 = vpop.f32.mrf.mxu0  ;;  %v2349_v30 = vld [vmem:[%s6842_s15 + $0xd8] sm:$0xff] }
 0x365   : > { %v5263_v43 = vadd.f32 %v5262_v41, %v5261_v0  ;;  %v5374_v44 = vpop.f32.mrf.mxu1 }
 0x366   : > { %2441 = vst [vmem:[%s6842_s15 + $0xa8] sm:$0xff] %v2409_v39  ;;  %v2378_v45 = vmul.f32 %v6839_v60, %v2121_v40  ;;  %v5375_v46 = vadd.f32 %v5374_v44, %v5373_v38  ;;  %v5264_v47 = vpop.f32.mrf.mxu0 }
 0x367   : > { %v5376_v48 = vpop.f32.mrf.mxu1 }
 0x368   : > { %v2410_v49 = vadd.f32 %v2378_v45, %v2344_v42  ;;  %v2124_v50 = vadd.f32 %v5375_v46, %v5263_v43  ;;  %v5265_v51 = vpop.f32.mrf.mxu0  ;;  %v2350_v42 = vld [vmem:[%s6842_s15 + $0xe0] sm:$0xff] }
 0x369   : > { %v5266_v53 = vadd.f32 %v5265_v51, %v5264_v47  ;;  %v5377_v54 = vpop.f32.mrf.mxu1 }
 0x36a   : > { %2442 = vst [vmem:[%s6842_s15 + $0xb0] sm:$0xff] %v2410_v49  ;;  %v4933_v55 = vpack.c.bf16 %v2124_v50, %v2121_v40  ;;  %v2379_v56 = vmul.f32 %v6839_v60, %v2124_v50  ;;  %v5378_v57 = vadd.f32 %v5377_v54, %v5376_v48  ;;  %v5267_v58 = vpop.f32.mrf.mxu0 }
 0x36b   : > { %v5379_v59 = vpop.f32.mrf.mxu1 }
 0x36c   : > { %5060 = vst [vmem:[%s6851_s18 + $0x58] sm:$0xff] %v4933_v55   ;;  %v2411_v61 = vadd.f32 %v2379_v56, %v2345_v52  ;;  %v2129_v62 = vadd.f32 %v5378_v57, %v5266_v53  ;;  %v5268_v63 = vpop.f32.mrf.mxu0  ;;  %v2351_v52 = vld [vmem:[%s6842_s15 + $0xe8] sm:$0xff] }
 0x36d   : > { %v5269_v2 = vadd.f32 %v5268_v63, %v5267_v58  ;;  %v5380_v3 = vpop.f32.mrf.mxu1 }
 0x36e   : > { %2443 = vst [vmem:[%s6842_s15 + $0xb8] sm:$0xff] %v2411_v61  ;;  %v2380_v4 = vmul.f32 %v6839_v60, %v2129_v62  ;;  %v5381_v5 = vadd.f32 %v5380_v3, %v5379_v59  ;;  %v5270_v6 = vpop.f32.mrf.mxu0 }
 0x36f   : > { %v5382_v7 = vpop.f32.mrf.mxu1 }
 0x370   : > { %v2412_v8 = vadd.f32 %v2380_v4, %v2346_v1  ;;  %v2132_v9 = vadd.f32 %v5381_v5, %v5269_v2  ;;  %v5271_v10 = vpop.f32.mrf.mxu0  ;;  %v2352_v1 = vld [vmem:[%s6842_s15 + $0xf0] sm:$0xff] }
 0x371   : > { %v5272_v12 = vadd.f32 %v5271_v10, %v5270_v6  ;;  %v5383_v13 = vpop.f32.mrf.mxu1 }
 0x372   : > { %2444 = vst [vmem:[%s6842_s15 + $0xc0] sm:$0xff] %v2412_v8  ;;  %v4938_v14 = vpack.c.bf16 %v2132_v9, %v2129_v62  ;;  %v2381_v15 = vmul.f32 %v6839_v60, %v2132_v9  ;;  %v5384_v16 = vadd.f32 %v5383_v13, %v5382_v7  ;;  %v5273_v17 = vpop.f32.mrf.mxu0  ;;  %v2353_v8 = vld [vmem:[%s6842_s15 + $0xf8] sm:$0xff] }
 0x373   : > { %v5385_v18 = vpop.f32.mrf.mxu1 }
 0x374   : > { %5061 = vst [vmem:[%s6851_s18 + $0x60] sm:$0xff] %v4938_v14   ;;  %v2413_v19 = vadd.f32 %v2381_v15, %v2347_v11  ;;  %v2137_v20 = vadd.f32 %v5384_v16, %v5272_v12  ;;  %v5274_v21 = vpop.f32.mrf.mxu0 }
 0x375   : > { %v5275_v36 = vadd.f32 %v5274_v21, %v5273_v17  ;;  %v5386_v22 = vpop.f32.mrf.mxu1 }
 0x376   : > { %2445 = vst [vmem:[%s6842_s15 + $0xc8] sm:$0xff] %v2413_v19  ;;  %v2382_v23 = vmul.f32 %v6839_v60, %v2137_v20  ;;  %v5387_v24 = vadd.f32 %v5386_v22, %v5385_v18  ;;  %v5276_v25 = vpop.f32.mrf.mxu0 }
 0x377   : > { %v5388_v26 = vpop.f32.mrf.mxu1 }
 0x378   : > { %v2414_v27 = vadd.f32 %v2382_v23, %v2348_v34  ;;  %v2140_v28 = vadd.f32 %v5387_v24, %v5275_v36  ;;  %v5277_v29 = vpop.f32.mrf.mxu0 }
 0x379   : > { %v5278_v31 = vadd.f32 %v5277_v29, %v5276_v25  ;;  %v5389_v32 = vpop.f32.mrf.mxu1 }
 0x37a   : > { %2446 = vst [vmem:[%s6842_s15 + $0xd0] sm:$0xff] %v2414_v27  ;;  %v4943_v33 = vpack.c.bf16 %v2140_v28, %v2137_v20  ;;  %v2383_v35 = vmul.f32 %v6839_v60, %v2140_v28  ;;  %v5390_v37 = vadd.f32 %v5389_v32, %v5388_v26  ;;  %v5279_v0 = vpop.f32.mrf.mxu0 }
 0x37b   : > { %v5391_v38 = vpop.f32.mrf.mxu1 }
 0x37c   : > { %5062 = vst [vmem:[%s6851_s18 + $0x68] sm:$0xff] %v4943_v33   ;;  %v2415_v39 = vadd.f32 %v2383_v35, %v2349_v30  ;;  %v2145_v40 = vadd.f32 %v5390_v37, %v5278_v31  ;;  %v5280_v41 = vpop.f32.mrf.mxu0 }
 0x37d   : > { %v5281_v43 = vadd.f32 %v5280_v41, %v5279_v0  ;;  %v5392_v44 = vpop.f32.mrf.mxu1 }
 0x37e   : > { %2447 = vst [vmem:[%s6842_s15 + $0xd8] sm:$0xff] %v2415_v39  ;;  %v2384_v45 = vmul.f32 %v6839_v60, %v2145_v40  ;;  %v5393_v46 = vadd.f32 %v5392_v44, %v5391_v38  ;;  %v5282_v47 = vpop.f32.mrf.mxu0 }
 0x37f   : > { %v5394_v48 = vpop.f32.mrf.mxu1 }
 0x380   : > { %v2416_v49 = vadd.f32 %v2384_v45, %v2350_v42  ;;  %v2148_v50 = vadd.f32 %v5393_v46, %v5281_v43  ;;  %v5283_v51 = vpop.f32.mrf.mxu0 }
 0x381   : > { %v5284_v53 = vadd.f32 %v5283_v51, %v5282_v47  ;;  %v5395_v54 = vpop.f32.mrf.mxu1 }
 0x382   : > { %2448 = vst [vmem:[%s6842_s15 + $0xe0] sm:$0xff] %v2416_v49  ;;  %v4948_v55 = vpack.c.bf16 %v2148_v50, %v2145_v40  ;;  %v2385_v56 = vmul.f32 %v6839_v60, %v2148_v50  ;;  %v5396_v57 = vadd.f32 %v5395_v54, %v5394_v48  ;;  %v5285_v58 = vpop.f32.mrf.mxu0 }
 0x383   : > { %v5397_v59 = vpop.f32.mrf.mxu1 }
 0x384   : > { %5063 = vst [vmem:[%s6851_s18 + $0x70] sm:$0xff] %v4948_v55   ;;  %v2417_v61 = vadd.f32 %v2385_v56, %v2351_v52  ;;  %v2153_v62 = vadd.f32 %v5396_v57, %v5284_v53  ;;  %v5286_v63 = vpop.f32.mrf.mxu0 }
 0x385   : > { %v5287_v2 = vadd.f32 %v5286_v63, %v5285_v58  ;;  %v5398_v3 = vpop.f32.mrf.mxu1 }
 0x386   : > { %2449 = vst [vmem:[%s6842_s15 + $0xe8] sm:$0xff] %v2417_v61  ;;  %v2386_v4 = vmul.f32 %v6839_v60, %v2153_v62  ;;  %v5399_v5 = vadd.f32 %v5398_v3, %v5397_v59 }
 0x388   : > { %v2418_v6 = vadd.f32 %v2386_v4, %v2352_v1  ;;  %v2156_v7 = vadd.f32 %v5399_v5, %v5287_v2 }
 0x38a   : > { %2450 = vst [vmem:[%s6842_s15 + $0xf0] sm:$0xff] %v2418_v6  ;;  %v4953_v9 = vpack.c.bf16 %v2156_v7, %v2153_v62  ;;  %v2387_v10 = vmul.f32 %v6839_v60, %v2156_v7 }
 0x38c   : > { %5064 = vst [vmem:[%s6851_s18 + $0x78] sm:$0xff] %v4953_v9   ;;  %v2419_v11 = vadd.f32 %v2387_v10, %v2353_v8 }
 0x38e   : > { %2451 = vst [vmem:[%s6842_s15 + $0xf8] sm:$0xff] %v2419_v11 }
 0x38f PF: > { %p2452_p11 = scmp.eq.s32.totalorder %s7623_s22, 0 }
 0x391   : > { %p2453_p12 = pnand %p2452_p11, %p1186_p8 }
 0x392   : > { %s2457_s27 = sshra.s32 (!%p2453_p12), %s6447_s20, 3  ;;  %s3619_s24 = sld [smem:[#allocation5 + %s6328_s28]] (!%p2453_p12) }
 0x393   : > { %2456 = sbr.rel (%p2453_p12) target bundleno = 1283 (0x503), region = 64  ;;  %s4762_s21 = sshll.u32 (!%p2453_p12), %s2457_s27, 4 }
 0x394   : > { %s6969_s23 = scalar_lea.vmem (!%p2453_p12), %s7596_s1, %s4762_s21  ;;  %s7039_s25 = scalar_lea.vmem (!%p2453_p12), [#allocation4], %s6447_s20 }
 0x395   : > { %s4693_s26 = sshll.u32 (!%p2453_p12), %s2457_s27, 2 }
 0x396   : > { %s7048_s13 = scalar_lea.vmem (!%p2453_p12), [#allocation2], %s4693_s26 }
 0x398   : > { %v5963_v12 = vld [vmem:[#allocation3 + $0x78] sm:$0xff]   ;;  %v5967_v16 = vld [vmem:[#allocation3 + $0x70] sm:$0xff]   ;;  %v5971_v19 = vld [vmem:[#allocation3 + $0x68] sm:$0xff]  }
 0x399   : > { %v5964_v13 = vld [vmem:[#allocation3 + $0xf8] sm:$0xff]   ;;  %5400 = vmatprep.subr.bf16.mxu0 %v5963_v12  ;;  %v5968_v60 = vld [vmem:[#allocation3 + $0xf0] sm:$0xff]   ;;  %v5972_v20 = vld [vmem:[#allocation3 + $0xe8] sm:$0xff]  }
 0x39a   : > { %v5965_v14 = vld [vmem:[#allocation3 + $0x38] sm:$0xff]   ;;  %5512 = vmatprep.subr.bf16.mxu1 %v5964_v13  ;;  %v5969_v17 = vld [vmem:[#allocation3 + $0x30] sm:$0xff]   ;;  %v5973_v21 = vld [vmem:[#allocation3 + $0x28] sm:$0xff]  }
 0x39b   : > { %v5966_v15 = vld [vmem:[#allocation3 + $0xb8] sm:$0xff]   ;;  %5401 = vmatpush3.bf16.msra.mxu0 %v5965_v14  ;;  %v5970_v18 = vld [vmem:[#allocation3 + $0xb0] sm:$0xff]   ;;  %v5974_v34 = vld [vmem:[#allocation3 + $0xa8] sm:$0xff]  }
 0x39c   : > { %5513 = vmatpush3.bf16.msra.mxu1 %v5966_v15  ;;  %5402 = vmatprep.subr.bf16.mxu0 %v5967_v16  ;;  %v5975_v36 = vld [vmem:[#allocation3 + $0x60] sm:$0xff]   ;;  %v5979_v25 = vld [vmem:[#allocation3 + $0x58] sm:$0xff]   ;;  %v5983_v29 = vld [vmem:[#allocation3 + $0x50] sm:$0xff]  }
 0x39d   : > { %5514 = vmatprep.subr.bf16.mxu1 %v5968_v60  ;;  %v5976_v22 = vld [vmem:[#allocation3 + $0xe0] sm:$0xff]   ;;  %v5980_v26 = vld [vmem:[#allocation3 + $0xd8] sm:$0xff]   ;;  %v5984_v30 = vld [vmem:[#allocation3 + $0xd0] sm:$0xff]  }
 0x39e   : > { %v5977_v23 = vld [vmem:[#allocation3 + $0x20] sm:$0xff]   ;;  %v5981_v27 = vld [vmem:[#allocation3 + $0x18] sm:$0xff]   ;;  %v5985_v31 = vld [vmem:[#allocation3 + $0x10] sm:$0xff]  }
 0x39f   : > { %5403 = vmatpush3.bf16.msra.mxu0 %v5969_v17  ;;  %v5978_v24 = vld [vmem:[#allocation3 + $0xa0] sm:$0xff]   ;;  %v5982_v28 = vld [vmem:[#allocation3 + $0x98] sm:$0xff]   ;;  %v5986_v32 = vld [vmem:[#allocation3 + $0x90] sm:$0xff]  }
 0x3a0   : > { %5515 = vmatpush3.bf16.msra.mxu1 %v5970_v18  ;;  %5404 = vmatprep.subr.bf16.mxu0 %v5971_v19  ;;  %v5987_v33 = vld [vmem:[#allocation3 + $0x48] sm:$0xff]   ;;  %v5991_v38 = vld [vmem:[#allocation3 + $0x40] sm:$0xff]  }
 0x3a1   : > { %5516 = vmatprep.subr.bf16.mxu1 %v5972_v20  ;;  %v5988_v35 = vld [vmem:[#allocation3 + $0xc8] sm:$0xff]   ;;  %v5992_v39 = vld [vmem:[#allocation3 + $0xc0] sm:$0xff]  }
 0x3a2   : > { %v5989_v37 = vld [vmem:[#allocation3 + $0x8] sm:$0xff]   ;;  %v5993_v40 = vld [vmem:[#allocation3] sm:$0xff]  }
 0x3a3   : > { %5405 = vmatpush3.bf16.msra.mxu0 %v5973_v21  ;;  %v5990_v0 = vld [vmem:[#allocation3 + $0x88] sm:$0xff]   ;;  %v5994_v41 = vld [vmem:[#allocation3 + $0x80] sm:$0xff]  }
 0x3a4   : > { %5517 = vmatpush3.bf16.msra.mxu1 %v5974_v34  ;;  %5406 = vmatprep.subr.bf16.mxu0 %v5975_v36  ;;  %v5995_v42 = vld [vmem:[%s6969_s23] ss:$16 sps:$4 sm:$0xff]   ;;  %v5997_v43 = vld [vmem:[%s6969_s23 + $0x4] ss:$16 sps:$4 sm:$0xff]   ;;  %v5998_v44 = vld [vmem:[%s6969_s23 + $0x8] ss:$16 sps:$4 sm:$0xff]  }
 0x3a5   : > { %5518 = vmatprep.subr.bf16.mxu1 %v5976_v22  ;;  %v6000_v45 = vld [vmem:[%s6969_s23 + $0xc] ss:$16 sps:$4 sm:$0xff]   ;;  %3134 = vmatprep.mubr.bf16.mxu0 %v5997_v43  ;;  %v6001_v46 = vld [vmem:[%s6969_s23 + $0x24] ss:$16 sps:$4 sm:$0xff]   ;;  %v6005_v48 = vld [vmem:[%s6969_s23 + $0x20] ss:$16 sps:$4 sm:$0xff]  }
 0x3a6   : > { %3295 = vmatprep.mubr.bf16.mxu1 %v6000_v45  ;;  %v6003_v47 = vld [vmem:[%s6969_s23 + $0x2c] ss:$16 sps:$4 sm:$0xff]   ;;  %v6006_v49 = vld [vmem:[%s6969_s23 + $0x28] ss:$16 sps:$4 sm:$0xff]   ;;  %v6007_v50 = vld [vmem:[%s6969_s23 + $0x44] ss:$16 sps:$4 sm:$0xff]  }
 0x3a7   : > { %5407 = vmatpush3.bf16.msra.mxu0 %v5977_v23  ;;  %v6009_v51 = vld [vmem:[%s6969_s23 + $0x4c] ss:$16 sps:$4 sm:$0xff]   ;;  %v6011_v52 = vld [vmem:[%s6969_s23 + $0x40] ss:$16 sps:$4 sm:$0xff]   ;;  %v6012_v53 = vld [vmem:[%s6969_s23 + $0x48] ss:$16 sps:$4 sm:$0xff]  }
 0x3a8   : > { %5519 = vmatpush3.bf16.msra.mxu1 %v5978_v24  ;;  %5408 = vmatprep.subr.bf16.mxu0 %v5979_v25  ;;  %v6013_v54 = vld [vmem:[%s6969_s23 + $0x64] ss:$16 sps:$4 sm:$0xff]   ;;  %v6015_v55 = vld [vmem:[%s6969_s23 + $0x6c] ss:$16 sps:$4 sm:$0xff]   ;;  %v6017_v56 = vld [vmem:[%s6969_s23 + $0x60] ss:$16 sps:$4 sm:$0xff]  }
 0x3a9   : > { %5520 = vmatprep.subr.bf16.mxu1 %v5980_v26  ;;  %v6018_v57 = vld [vmem:[%s6969_s23 + $0x68] ss:$16 sps:$4 sm:$0xff]   ;;  %v6019_v58 = vld [vmem:[%s6969_s23 + $0x84] ss:$16 sps:$4 sm:$0xff]   ;;  %v6021_v59 = vld [vmem:[%s6969_s23 + $0x8c] ss:$16 sps:$4 sm:$0xff]  }
 0x3aa   : > { %v6023_v61 = vld [vmem:[%s6969_s23 + $0x80] ss:$16 sps:$4 sm:$0xff]   ;;  %v6024_v62 = vld [vmem:[%s6969_s23 + $0x88] ss:$16 sps:$4 sm:$0xff]   ;;  %v6025_v63 = vld [vmem:[%s6969_s23 + $0xa4] ss:$16 sps:$4 sm:$0xff]  }
 0x3ab   : > { %5409 = vmatpush3.bf16.msra.mxu0 %v5981_v27  ;;  %v6027_v1 = vld [vmem:[%s6969_s23 + $0xac] ss:$16 sps:$4 sm:$0xff]   ;;  %v6029_v2 = vld [vmem:[%s6969_s23 + $0xa0] ss:$16 sps:$4 sm:$0xff]   ;;  %v6030_v3 = vld [vmem:[%s6969_s23 + $0xa8] ss:$16 sps:$4 sm:$0xff]  }
 0x3ac   : > { %5521 = vmatpush3.bf16.msra.mxu1 %v5982_v28  ;;  %5410 = vmatprep.subr.bf16.mxu0 %v5983_v29  ;;  %v6031_v4 = vld [vmem:[%s6969_s23 + $0xc4] ss:$16 sps:$4 sm:$0xff]   ;;  %v6033_v5 = vld [vmem:[%s6969_s23 + $0xcc] ss:$16 sps:$4 sm:$0xff]   ;;  %v6035_v6 = vld [vmem:[%s6969_s23 + $0xc0] ss:$16 sps:$4 sm:$0xff]  }
 0x3ad   : > { %5522 = vmatprep.subr.bf16.mxu1 %v5984_v30  ;;  %v6036_v7 = vld [vmem:[%s6969_s23 + $0xc8] ss:$16 sps:$4 sm:$0xff]   ;;  %v6037_v8 = vld [vmem:[%s6969_s23 + $0xe4] ss:$16 sps:$4 sm:$0xff]   ;;  %v6039_v9 = vld [vmem:[%s6969_s23 + $0xec] ss:$16 sps:$4 sm:$0xff]  }
 0x3ae   : > { %v6041_v10 = vld [vmem:[%s6969_s23 + $0xe0] ss:$16 sps:$4 sm:$0xff]   ;;  %v6042_v11 = vld [vmem:[%s6969_s23 + $0xe8] ss:$16 sps:$4 sm:$0xff]   ;;  %v6043_v12 = vld [vmem:[%s6969_s23 + $0x104] ss:$16 sps:$4 sm:$0xff]  }
 0x3af   : > { %5411 = vmatpush3.bf16.msra.mxu0 %v5985_v31  ;;  %v6045_v13 = vld [vmem:[%s6969_s23 + $0x10c] ss:$16 sps:$4 sm:$0xff]   ;;  %v6047_v14 = vld [vmem:[%s6969_s23 + $0x100] ss:$16 sps:$4 sm:$0xff]   ;;  %v6048_v15 = vld [vmem:[%s6969_s23 + $0x108] ss:$16 sps:$4 sm:$0xff]  }
 0x3b0   : > { %5523 = vmatpush3.bf16.msra.mxu1 %v5986_v32  ;;  %5412 = vmatprep.subr.bf16.mxu0 %v5987_v33  ;;  %v6049_v16 = vld [vmem:[%s6969_s23 + $0x124] ss:$16 sps:$4 sm:$0xff]   ;;  %v6051_v60 = vld [vmem:[%s6969_s23 + $0x12c] ss:$16 sps:$4 sm:$0xff]   ;;  %v6053_v17 = vld [vmem:[%s6969_s23 + $0x120] ss:$16 sps:$4 sm:$0xff]  }
 0x3b1   : > { %5524 = vmatprep.subr.bf16.mxu1 %v5988_v35  ;;  %v6054_v18 = vld [vmem:[%s6969_s23 + $0x128] ss:$16 sps:$4 sm:$0xff]   ;;  %v6055_v19 = vld [vmem:[%s6969_s23 + $0x144] ss:$16 sps:$4 sm:$0xff]   ;;  %v6057_v20 = vld [vmem:[%s6969_s23 + $0x14c] ss:$16 sps:$4 sm:$0xff]  }
 0x3b2   : > { %v6059_v21 = vld [vmem:[%s6969_s23 + $0x140] ss:$16 sps:$4 sm:$0xff]   ;;  %v6060_v34 = vld [vmem:[%s6969_s23 + $0x148] ss:$16 sps:$4 sm:$0xff]   ;;  %v6061_v36 = vld [vmem:[%s6969_s23 + $0x164] ss:$16 sps:$4 sm:$0xff]  }
 0x3b3   : > { %5413 = vmatpush3.bf16.msra.mxu0 %v5989_v37  ;;  %v6063_v22 = vld [vmem:[%s6969_s23 + $0x16c] ss:$16 sps:$4 sm:$0xff]   ;;  %v6065_v23 = vld [vmem:[%s6969_s23 + $0x160] ss:$16 sps:$4 sm:$0xff]   ;;  %v6066_v24 = vld [vmem:[%s6969_s23 + $0x168] ss:$16 sps:$4 sm:$0xff]  }
 0x3b4   : > { %5525 = vmatpush3.bf16.msra.mxu1 %v5990_v0  ;;  %5414 = vmatprep.subr.bf16.mxu0 %v5991_v38  ;;  %v6067_v25 = vld [vmem:[%s6969_s23 + $0x184] ss:$16 sps:$4 sm:$0xff]   ;;  %v6069_v26 = vld [vmem:[%s6969_s23 + $0x18c] ss:$16 sps:$4 sm:$0xff]   ;;  %v6071_v27 = vld [vmem:[%s6969_s23 + $0x180] ss:$16 sps:$4 sm:$0xff]  }
 0x3b5   : > { %5526 = vmatprep.subr.bf16.mxu1 %v5992_v39  ;;  %v6072_v28 = vld [vmem:[%s6969_s23 + $0x188] ss:$16 sps:$4 sm:$0xff]   ;;  %v6073_v29 = vld [vmem:[%s6969_s23 + $0x1a4] ss:$16 sps:$4 sm:$0xff]   ;;  %v6075_v30 = vld [vmem:[%s6969_s23 + $0x1ac] ss:$16 sps:$4 sm:$0xff]  }
 0x3b6   : > { %v6077_v31 = vld [vmem:[%s6969_s23 + $0x1a0] ss:$16 sps:$4 sm:$0xff]   ;;  %v6078_v32 = vld [vmem:[%s6969_s23 + $0x1a8] ss:$16 sps:$4 sm:$0xff]   ;;  %v6079_v33 = vld [vmem:[%s6969_s23 + $0x1c4] ss:$16 sps:$4 sm:$0xff]  }
 0x3b7   : > { %5415 = vmatpush3.bf16.msra.mxu0 %v5993_v40  ;;  %v6081_v35 = vld [vmem:[%s6969_s23 + $0x1cc] ss:$16 sps:$4 sm:$0xff]   ;;  %v6083_v37 = vld [vmem:[%s6969_s23 + $0x1c0] ss:$16 sps:$4 sm:$0xff]   ;;  %v6084_v0 = vld [vmem:[%s6969_s23 + $0x1c8] ss:$16 sps:$4 sm:$0xff]  }
 0x3b8   : > { %5527 = vmatpush3.bf16.msra.mxu1 %v5994_v41  ;;  %v6085_v38 = vld [vmem:[%s6969_s23 + $0x1e4] ss:$16 sps:$4 sm:$0xff]   ;;  %v6087_v39 = vld [vmem:[%s6969_s23 + $0x1ec] ss:$16 sps:$4 sm:$0xff]   ;;  %v6089_v40 = vld [vmem:[%s6969_s23 + $0x1e0] ss:$16 sps:$4 sm:$0xff]  }
 0x3b9   : > { %v6090_v41 = vld [vmem:[%s6969_s23 + $0x1e8] ss:$16 sps:$4 sm:$0xff]  }
 0x3ba   : > { %3135 = vmatmul.mubr.bf16.vlgmr.msra.gmra.mxu0 %v5995_v42 }
 0x3bb   : > { %3296 = vmatmul.mubr.bf16.vlgmr.msra.gmra.mxu1 %v5998_v44  ;;  %3142 = vmatprep.mubr.bf16.mxu0 %v6001_v46 }
 0x3bc   : > { %3303 = vmatprep.mubr.bf16.mxu1 %v6003_v47 }
 0x3c2   : > { %3143 = vmatmul.mubr.bf16.gmra.mxu0 %v6005_v48 }
 0x3c3   : > { %3304 = vmatmul.mubr.bf16.gmra.mxu1 %v6006_v49  ;;  %3150 = vmatprep.mubr.bf16.mxu0 %v6007_v50  ;;  %v7036_v49 = vstv %s3619_s24 }
 0x3c4   : > { %3311 = vmatprep.mubr.bf16.mxu1 %v6009_v51 }
 0x3ca   : > { %3151 = vmatmul.mubr.bf16.gmra.mxu0 %v6011_v52 }
 0x3cb   : > { %3312 = vmatmul.mubr.bf16.gmra.mxu1 %v6012_v53  ;;  %3158 = vmatprep.mubr.bf16.mxu0 %v6013_v54  ;;  %v3587_v53 = vld [vmem:[%s7039_s25] sm:$0xff] }
 0x3cc   : > { %3319 = vmatprep.mubr.bf16.mxu1 %v6015_v55 }
 0x3d2   : > { %3159 = vmatmul.mubr.bf16.gmra.mxu0 %v6017_v56 }
 0x3d3   : > { %3320 = vmatmul.mubr.bf16.gmra.mxu1 %v6018_v57  ;;  %3166 = vmatprep.mubr.bf16.mxu0 %v6019_v58 }
 0x3d4   : > { %3327 = vmatprep.mubr.bf16.mxu1 %v6021_v59 }
 0x3da   : > { %3167 = vmatmul.mubr.bf16.gmra.mxu0 %v6023_v61 }
 0x3db   : > { %3328 = vmatmul.mubr.bf16.gmra.mxu1 %v6024_v62  ;;  %3174 = vmatprep.mubr.bf16.mxu0 %v6025_v63 }
 0x3dc   : > { %3335 = vmatprep.mubr.bf16.mxu1 %v6027_v1  ;;  %v3588_v1 = vld [vmem:[%s7039_s25 + $0x8] sm:$0xff] }
 0x3e2   : > { %3175 = vmatmul.mubr.bf16.gmra.mxu0 %v6029_v2 }
 0x3e3   : > { %3336 = vmatmul.mubr.bf16.gmra.mxu1 %v6030_v3  ;;  %3182 = vmatprep.mubr.bf16.mxu0 %v6031_v4 }
 0x3e4   : > { %3343 = vmatprep.mubr.bf16.mxu1 %v6033_v5 }
 0x3ea   : > { %3183 = vmatmul.mubr.bf16.gmra.mxu0 %v6035_v6 }
 0x3eb   : > { %3344 = vmatmul.mubr.bf16.gmra.mxu1 %v6036_v7  ;;  %3190 = vmatprep.mubr.bf16.mxu0 %v6037_v8 }
 0x3ec   : > { %3351 = vmatprep.mubr.bf16.mxu1 %v6039_v9 }
 0x3f2   : > { %3191 = vmatmul.mubr.bf16.gmra.mxu0 %v6041_v10 }
 0x3f3   : > { %3352 = vmatmul.mubr.bf16.gmra.mxu1 %v6042_v11  ;;  %3198 = vmatprep.mubr.bf16.mxu0 %v6043_v12  ;;  %v3589_v12 = vld [vmem:[%s7039_s25 + $0x10] sm:$0xff] }
 0x3f4   : > { %3359 = vmatprep.mubr.bf16.mxu1 %v6045_v13 }
 0x3fa   : > { %3199 = vmatmul.mubr.bf16.gmra.mxu0 %v6047_v14 }
 0x3fb   : > { %3360 = vmatmul.mubr.bf16.gmra.mxu1 %v6048_v15  ;;  %3206 = vmatprep.mubr.bf16.mxu0 %v6049_v16 }
 0x3fc   : > { %3367 = vmatprep.mubr.bf16.mxu1 %v6051_v60 }
 0x402   : > { %3207 = vmatmul.mubr.bf16.gmra.mxu0 %v6053_v17 }
 0x403   : > { %3368 = vmatmul.mubr.bf16.gmra.mxu1 %v6054_v18  ;;  %3214 = vmatprep.mubr.bf16.mxu0 %v6055_v19 }
 0x404   : > { %3375 = vmatprep.mubr.bf16.mxu1 %v6057_v20 }
 0x40a   : > { %3215 = vmatmul.mubr.bf16.gmra.mxu0 %v6059_v21  ;;  %v3590_v21 = vld [vmem:[%s7039_s25 + $0x18] sm:$0xff] }
 0x40b   : > { %3376 = vmatmul.mubr.bf16.gmra.mxu1 %v6060_v34  ;;  %3222 = vmatprep.mubr.bf16.mxu0 %v6061_v36 }
 0x40c   : > { %3383 = vmatprep.mubr.bf16.mxu1 %v6063_v22 }
 0x412   : > { %3223 = vmatmul.mubr.bf16.gmra.mxu0 %v6065_v23 }
 0x413   : > { %3384 = vmatmul.mubr.bf16.gmra.mxu1 %v6066_v24  ;;  %3230 = vmatprep.mubr.bf16.mxu0 %v6067_v25 }
 0x414   : > { %3391 = vmatprep.mubr.bf16.mxu1 %v6069_v26 }
 0x41a   : > { %3231 = vmatmul.mubr.bf16.gmra.mxu0 %v6071_v27 }
 0x41b   : > { %3392 = vmatmul.mubr.bf16.gmra.mxu1 %v6072_v28  ;;  %3238 = vmatprep.mubr.bf16.mxu0 %v6073_v29 }
 0x41c   : > { %3399 = vmatprep.mubr.bf16.mxu1 %v6075_v30  ;;  %v3591_v30 = vld [vmem:[%s7039_s25 + $0x20] sm:$0xff] }
 0x422   : > { %3239 = vmatmul.mubr.bf16.gmra.mxu0 %v6077_v31 }
 0x423   : > { %3400 = vmatmul.mubr.bf16.gmra.mxu1 %v6078_v32  ;;  %3246 = vmatprep.mubr.bf16.mxu0 %v6079_v33 }
 0x424   : > { %3407 = vmatprep.mubr.bf16.mxu1 %v6081_v35 }
 0x42a   : > { %3247 = vmatmul.mubr.bf16.gmra.mxu0 %v6083_v37 }
 0x42b   : > { %3408 = vmatmul.mubr.bf16.gmra.mxu1 %v6084_v0  ;;  %3254 = vmatprep.mubr.bf16.mxu0 %v6085_v38 }
 0x42c   : > { %3415 = vmatprep.mubr.bf16.mxu1 %v6087_v39 }
 0x432   : > { %3255 = vmatmul.mubr.bf16.gmra.mxu0 %v6089_v40 }
 0x433   : > { %3416 = vmatmul.mubr.bf16.gmra.mxu1 %v6090_v41  ;;  %v3592_v41 = vld [vmem:[%s7039_s25 + $0x28] sm:$0xff] }
 0x47a   : > { %v5416_v42 = vpop.f32.mrf.mxu0 }
 0x47b   : > { %v5528_v43 = vpop.f32.mrf.mxu1 }
 0x47c   : > { %v5417_v44 = vpop.f32.mrf.mxu0 }
 0x47d   : > { %v5418_v45 = vadd.f32 %v5417_v44, %v5416_v42  ;;  %v5529_v46 = vpop.f32.mrf.mxu1 }
 0x47e   : > { %v5530_v47 = vadd.f32 %v5529_v46, %v5528_v43  ;;  %v5419_v48 = vpop.f32.mrf.mxu0 }
 0x47f   : > { %v5531_v50 = vpop.f32.mrf.mxu1 }
 0x480   : > { %v3298_v51 = vadd.f32 %v5530_v47, %v5418_v45  ;;  %v5420_v52 = vpop.f32.mrf.mxu0 }
 0x481   : > { %v5421_v54 = vadd.f32 %v5420_v52, %v5419_v48  ;;  %v5532_v55 = vpop.f32.mrf.mxu1 }
 0x482   : > { %v3621_v56 = vmul.f32 %v7036_v49, %v3298_v51  ;;  %v5533_v57 = vadd.f32 %v5532_v55, %v5531_v50  ;;  %v5422_v58 = vpop.f32.mrf.mxu0 }
 0x483   : > { %v5534_v59 = vpop.f32.mrf.mxu1 }
 0x484   : > { %v3653_v61 = vadd.f32 %v3621_v56, %v3587_v53  ;;  %v3301_v62 = vadd.f32 %v5533_v57, %v5421_v54  ;;  %v5423_v63 = vpop.f32.mrf.mxu0  ;;  %v3593_v53 = vld [vmem:[%s7039_s25 + $0x30] sm:$0xff] }
 0x485   : > { %v5424_v2 = vadd.f32 %v5423_v63, %v5422_v58  ;;  %v5535_v3 = vpop.f32.mrf.mxu1 }
 0x486   : > { %3685 = vst [vmem:[%s7039_s25] sm:$0xff] %v3653_v61  ;;  %v4958_v4 = vpack.c.bf16 %v3301_v62, %v3298_v51  ;;  %v3622_v5 = vmul.f32 %v7036_v49, %v3301_v62  ;;  %v5536_v6 = vadd.f32 %v5535_v3, %v5534_v59  ;;  %v5425_v7 = vpop.f32.mrf.mxu0 }
 0x487   : > { %v5537_v8 = vpop.f32.mrf.mxu1 }
 0x488   : > { %4959 = vst [vmem:[%s7048_s13] sm:$0xff] %v4958_v4   ;;  %v3654_v9 = vadd.f32 %v3622_v5, %v3588_v1  ;;  %v3306_v10 = vadd.f32 %v5536_v6, %v5424_v2  ;;  %v5426_v11 = vpop.f32.mrf.mxu0  ;;  %v3594_v1 = vld [vmem:[%s7039_s25 + $0x38] sm:$0xff] }
 0x489   : > { %v5427_v13 = vadd.f32 %v5426_v11, %v5425_v7  ;;  %v5538_v14 = vpop.f32.mrf.mxu1 }
 0x48a   : > { %3686 = vst [vmem:[%s7039_s25 + $0x8] sm:$0xff] %v3654_v9  ;;  %v3623_v15 = vmul.f32 %v7036_v49, %v3306_v10  ;;  %v5539_v16 = vadd.f32 %v5538_v14, %v5537_v8  ;;  %v5428_v60 = vpop.f32.mrf.mxu0 }
 0x48b   : > { %v5540_v17 = vpop.f32.mrf.mxu1 }
 0x48c   : > { %v3655_v18 = vadd.f32 %v3623_v15, %v3589_v12  ;;  %v3309_v19 = vadd.f32 %v5539_v16, %v5427_v13  ;;  %v5429_v20 = vpop.f32.mrf.mxu0  ;;  %v3595_v12 = vld [vmem:[%s7039_s25 + $0x40] sm:$0xff] }
 0x48d   : > { %v5430_v34 = vadd.f32 %v5429_v20, %v5428_v60  ;;  %v5541_v36 = vpop.f32.mrf.mxu1 }
 0x48e   : > { %3687 = vst [vmem:[%s7039_s25 + $0x10] sm:$0xff] %v3655_v18  ;;  %v4963_v22 = vpack.c.bf16 %v3309_v19, %v3306_v10  ;;  %v3624_v23 = vmul.f32 %v7036_v49, %v3309_v19  ;;  %v5542_v24 = vadd.f32 %v5541_v36, %v5540_v17  ;;  %v5431_v25 = vpop.f32.mrf.mxu0 }
 0x48f   : > { %v5543_v26 = vpop.f32.mrf.mxu1 }
 0x490   : > { %5065 = vst [vmem:[%s7048_s13 + $0x8] sm:$0xff] %v4963_v22   ;;  %v3656_v27 = vadd.f32 %v3624_v23, %v3590_v21  ;;  %v3314_v28 = vadd.f32 %v5542_v24, %v5430_v34  ;;  %v5432_v29 = vpop.f32.mrf.mxu0  ;;  %v3596_v21 = vld [vmem:[%s7039_s25 + $0x48] sm:$0xff] }
 0x491   : > { %v5433_v31 = vadd.f32 %v5432_v29, %v5431_v25  ;;  %v5544_v32 = vpop.f32.mrf.mxu1 }
 0x492   : > { %3688 = vst [vmem:[%s7039_s25 + $0x18] sm:$0xff] %v3656_v27  ;;  %v3625_v33 = vmul.f32 %v7036_v49, %v3314_v28  ;;  %v5545_v35 = vadd.f32 %v5544_v32, %v5543_v26  ;;  %v5434_v37 = vpop.f32.mrf.mxu0 }
 0x493   : > { %v5546_v0 = vpop.f32.mrf.mxu1 }
 0x494   : > { %v3657_v38 = vadd.f32 %v3625_v33, %v3591_v30  ;;  %v3317_v39 = vadd.f32 %v5545_v35, %v5433_v31  ;;  %v5435_v40 = vpop.f32.mrf.mxu0  ;;  %v3597_v30 = vld [vmem:[%s7039_s25 + $0x50] sm:$0xff] }
 0x495   : > { %v5436_v42 = vadd.f32 %v5435_v40, %v5434_v37  ;;  %v5547_v43 = vpop.f32.mrf.mxu1 }
 0x496   : > { %3689 = vst [vmem:[%s7039_s25 + $0x20] sm:$0xff] %v3657_v38  ;;  %v4968_v44 = vpack.c.bf16 %v3317_v39, %v3314_v28  ;;  %v3626_v45 = vmul.f32 %v7036_v49, %v3317_v39  ;;  %v5548_v46 = vadd.f32 %v5547_v43, %v5546_v0  ;;  %v5437_v47 = vpop.f32.mrf.mxu0 }
 0x497   : > { %v5549_v48 = vpop.f32.mrf.mxu1 }
 0x498   : > { %5066 = vst [vmem:[%s7048_s13 + $0x10] sm:$0xff] %v4968_v44   ;;  %v3658_v50 = vadd.f32 %v3626_v45, %v3592_v41  ;;  %v3322_v51 = vadd.f32 %v5548_v46, %v5436_v42  ;;  %v5438_v52 = vpop.f32.mrf.mxu0  ;;  %v3598_v41 = vld [vmem:[%s7039_s25 + $0x58] sm:$0xff] }
 0x499   : > { %v5439_v54 = vadd.f32 %v5438_v52, %v5437_v47  ;;  %v5550_v55 = vpop.f32.mrf.mxu1 }
 0x49a   : > { %3690 = vst [vmem:[%s7039_s25 + $0x28] sm:$0xff] %v3658_v50  ;;  %v3627_v56 = vmul.f32 %v7036_v49, %v3322_v51  ;;  %v5551_v57 = vadd.f32 %v5550_v55, %v5549_v48  ;;  %v5440_v58 = vpop.f32.mrf.mxu0 }
 0x49b   : > { %v5552_v59 = vpop.f32.mrf.mxu1 }
 0x49c   : > { %v3659_v61 = vadd.f32 %v3627_v56, %v3593_v53  ;;  %v3325_v62 = vadd.f32 %v5551_v57, %v5439_v54  ;;  %v5441_v63 = vpop.f32.mrf.mxu0  ;;  %v3599_v53 = vld [vmem:[%s7039_s25 + $0x60] sm:$0xff] }
 0x49d   : > { %v5442_v2 = vadd.f32 %v5441_v63, %v5440_v58  ;;  %v5553_v3 = vpop.f32.mrf.mxu1 }
 0x49e   : > { %3691 = vst [vmem:[%s7039_s25 + $0x30] sm:$0xff] %v3659_v61  ;;  %v4973_v4 = vpack.c.bf16 %v3325_v62, %v3322_v51  ;;  %v3628_v5 = vmul.f32 %v7036_v49, %v3325_v62  ;;  %v5554_v6 = vadd.f32 %v5553_v3, %v5552_v59  ;;  %v5443_v7 = vpop.f32.mrf.mxu0 }
 0x49f   : > { %v5555_v8 = vpop.f32.mrf.mxu1 }
 0x4a0   : > { %5067 = vst [vmem:[%s7048_s13 + $0x18] sm:$0xff] %v4973_v4   ;;  %v3660_v9 = vadd.f32 %v3628_v5, %v3594_v1  ;;  %v3330_v10 = vadd.f32 %v5554_v6, %v5442_v2  ;;  %v5444_v11 = vpop.f32.mrf.mxu0  ;;  %v3600_v1 = vld [vmem:[%s7039_s25 + $0x68] sm:$0xff] }
 0x4a1   : > { %v5445_v13 = vadd.f32 %v5444_v11, %v5443_v7  ;;  %v5556_v14 = vpop.f32.mrf.mxu1 }
 0x4a2   : > { %3692 = vst [vmem:[%s7039_s25 + $0x38] sm:$0xff] %v3660_v9  ;;  %v3629_v15 = vmul.f32 %v7036_v49, %v3330_v10  ;;  %v5557_v16 = vadd.f32 %v5556_v14, %v5555_v8  ;;  %v5446_v60 = vpop.f32.mrf.mxu0 }
 0x4a3   : > { %v5558_v17 = vpop.f32.mrf.mxu1 }
 0x4a4   : > { %v3661_v18 = vadd.f32 %v3629_v15, %v3595_v12  ;;  %v3333_v19 = vadd.f32 %v5557_v16, %v5445_v13  ;;  %v5447_v20 = vpop.f32.mrf.mxu0  ;;  %v3601_v12 = vld [vmem:[%s7039_s25 + $0x70] sm:$0xff] }
 0x4a5   : > { %v5448_v34 = vadd.f32 %v5447_v20, %v5446_v60  ;;  %v5559_v36 = vpop.f32.mrf.mxu1 }
 0x4a6   : > { %3693 = vst [vmem:[%s7039_s25 + $0x40] sm:$0xff] %v3661_v18  ;;  %v4978_v22 = vpack.c.bf16 %v3333_v19, %v3330_v10  ;;  %v3630_v23 = vmul.f32 %v7036_v49, %v3333_v19  ;;  %v5560_v24 = vadd.f32 %v5559_v36, %v5558_v17  ;;  %v5449_v25 = vpop.f32.mrf.mxu0 }
 0x4a7   : > { %v5561_v26 = vpop.f32.mrf.mxu1 }
 0x4a8   : > { %5068 = vst [vmem:[%s7048_s13 + $0x20] sm:$0xff] %v4978_v22   ;;  %v3662_v27 = vadd.f32 %v3630_v23, %v3596_v21  ;;  %v3338_v28 = vadd.f32 %v5560_v24, %v5448_v34  ;;  %v5450_v29 = vpop.f32.mrf.mxu0  ;;  %v3602_v21 = vld [vmem:[%s7039_s25 + $0x78] sm:$0xff] }
 0x4a9   : > { %v5451_v31 = vadd.f32 %v5450_v29, %v5449_v25  ;;  %v5562_v32 = vpop.f32.mrf.mxu1 }
 0x4aa   : > { %3694 = vst [vmem:[%s7039_s25 + $0x48] sm:$0xff] %v3662_v27  ;;  %v3631_v33 = vmul.f32 %v7036_v49, %v3338_v28  ;;  %v5563_v35 = vadd.f32 %v5562_v32, %v5561_v26  ;;  %v5452_v37 = vpop.f32.mrf.mxu0 }
 0x4ab   : > { %v5564_v0 = vpop.f32.mrf.mxu1 }
 0x4ac   : > { %v3663_v38 = vadd.f32 %v3631_v33, %v3597_v30  ;;  %v3341_v39 = vadd.f32 %v5563_v35, %v5451_v31  ;;  %v5453_v40 = vpop.f32.mrf.mxu0  ;;  %v3603_v30 = vld [vmem:[%s7039_s25 + $0x80] sm:$0xff] }
 0x4ad   : > { %v5454_v42 = vadd.f32 %v5453_v40, %v5452_v37  ;;  %v5565_v43 = vpop.f32.mrf.mxu1 }
 0x4ae   : > { %3695 = vst [vmem:[%s7039_s25 + $0x50] sm:$0xff] %v3663_v38  ;;  %v4983_v44 = vpack.c.bf16 %v3341_v39, %v3338_v28  ;;  %v3632_v45 = vmul.f32 %v7036_v49, %v3341_v39  ;;  %v5566_v46 = vadd.f32 %v5565_v43, %v5564_v0  ;;  %v5455_v47 = vpop.f32.mrf.mxu0 }
 0x4af   : > { %v5567_v48 = vpop.f32.mrf.mxu1 }
 0x4b0   : > { %5069 = vst [vmem:[%s7048_s13 + $0x28] sm:$0xff] %v4983_v44   ;;  %v3664_v50 = vadd.f32 %v3632_v45, %v3598_v41  ;;  %v3346_v51 = vadd.f32 %v5566_v46, %v5454_v42  ;;  %v5456_v52 = vpop.f32.mrf.mxu0  ;;  %v3604_v41 = vld [vmem:[%s7039_s25 + $0x88] sm:$0xff] }
 0x4b1   : > { %v5457_v54 = vadd.f32 %v5456_v52, %v5455_v47  ;;  %v5568_v55 = vpop.f32.mrf.mxu1 }
 0x4b2   : > { %3696 = vst [vmem:[%s7039_s25 + $0x58] sm:$0xff] %v3664_v50  ;;  %v3633_v56 = vmul.f32 %v7036_v49, %v3346_v51  ;;  %v5569_v57 = vadd.f32 %v5568_v55, %v5567_v48  ;;  %v5458_v58 = vpop.f32.mrf.mxu0 }
 0x4b3   : > { %v5570_v59 = vpop.f32.mrf.mxu1 }
 0x4b4   : > { %v3665_v61 = vadd.f32 %v3633_v56, %v3599_v53  ;;  %v3349_v62 = vadd.f32 %v5569_v57, %v5457_v54  ;;  %v5459_v63 = vpop.f32.mrf.mxu0  ;;  %v3605_v53 = vld [vmem:[%s7039_s25 + $0x90] sm:$0xff] }
 0x4b5   : > { %v5460_v2 = vadd.f32 %v5459_v63, %v5458_v58  ;;  %v5571_v3 = vpop.f32.mrf.mxu1 }
 0x4b6   : > { %3697 = vst [vmem:[%s7039_s25 + $0x60] sm:$0xff] %v3665_v61  ;;  %v4988_v4 = vpack.c.bf16 %v3349_v62, %v3346_v51  ;;  %v3634_v5 = vmul.f32 %v7036_v49, %v3349_v62  ;;  %v5572_v6 = vadd.f32 %v5571_v3, %v5570_v59  ;;  %v5461_v7 = vpop.f32.mrf.mxu0 }
 0x4b7   : > { %v5573_v8 = vpop.f32.mrf.mxu1 }
 0x4b8   : > { %5070 = vst [vmem:[%s7048_s13 + $0x30] sm:$0xff] %v4988_v4   ;;  %v3666_v9 = vadd.f32 %v3634_v5, %v3600_v1  ;;  %v3354_v10 = vadd.f32 %v5572_v6, %v5460_v2  ;;  %v5462_v11 = vpop.f32.mrf.mxu0  ;;  %v3606_v1 = vld [vmem:[%s7039_s25 + $0x98] sm:$0xff] }
 0x4b9   : > { %v5463_v13 = vadd.f32 %v5462_v11, %v5461_v7  ;;  %v5574_v14 = vpop.f32.mrf.mxu1 }
 0x4ba   : > { %3698 = vst [vmem:[%s7039_s25 + $0x68] sm:$0xff] %v3666_v9  ;;  %v3635_v15 = vmul.f32 %v7036_v49, %v3354_v10  ;;  %v5575_v16 = vadd.f32 %v5574_v14, %v5573_v8  ;;  %v5464_v60 = vpop.f32.mrf.mxu0 }
 0x4bb   : > { %v5576_v17 = vpop.f32.mrf.mxu1 }
 0x4bc   : > { %v3667_v18 = vadd.f32 %v3635_v15, %v3601_v12  ;;  %v3357_v19 = vadd.f32 %v5575_v16, %v5463_v13  ;;  %v5465_v20 = vpop.f32.mrf.mxu0  ;;  %v3607_v12 = vld [vmem:[%s7039_s25 + $0xa0] sm:$0xff] }
 0x4bd   : > { %v5466_v34 = vadd.f32 %v5465_v20, %v5464_v60  ;;  %v5577_v36 = vpop.f32.mrf.mxu1 }
 0x4be   : > { %3699 = vst [vmem:[%s7039_s25 + $0x70] sm:$0xff] %v3667_v18  ;;  %v4993_v22 = vpack.c.bf16 %v3357_v19, %v3354_v10  ;;  %v3636_v23 = vmul.f32 %v7036_v49, %v3357_v19  ;;  %v5578_v24 = vadd.f32 %v5577_v36, %v5576_v17  ;;  %v5467_v25 = vpop.f32.mrf.mxu0 }
 0x4bf   : > { %v5579_v26 = vpop.f32.mrf.mxu1 }
 0x4c0   : > { %5071 = vst [vmem:[%s7048_s13 + $0x38] sm:$0xff] %v4993_v22   ;;  %v3668_v27 = vadd.f32 %v3636_v23, %v3602_v21  ;;  %v3362_v28 = vadd.f32 %v5578_v24, %v5466_v34  ;;  %v5468_v29 = vpop.f32.mrf.mxu0  ;;  %v3608_v21 = vld [vmem:[%s7039_s25 + $0xa8] sm:$0xff] }
 0x4c1   : > { %v5469_v31 = vadd.f32 %v5468_v29, %v5467_v25  ;;  %v5580_v32 = vpop.f32.mrf.mxu1 }
 0x4c2   : > { %3700 = vst [vmem:[%s7039_s25 + $0x78] sm:$0xff] %v3668_v27  ;;  %v3637_v33 = vmul.f32 %v7036_v49, %v3362_v28  ;;  %v5581_v35 = vadd.f32 %v5580_v32, %v5579_v26  ;;  %v5470_v37 = vpop.f32.mrf.mxu0 }
 0x4c3   : > { %v5582_v0 = vpop.f32.mrf.mxu1 }
 0x4c4   : > { %v3669_v38 = vadd.f32 %v3637_v33, %v3603_v30  ;;  %v3365_v39 = vadd.f32 %v5581_v35, %v5469_v31  ;;  %v5471_v40 = vpop.f32.mrf.mxu0  ;;  %v3609_v30 = vld [vmem:[%s7039_s25 + $0xb0] sm:$0xff] }
 0x4c5   : > { %v5472_v42 = vadd.f32 %v5471_v40, %v5470_v37  ;;  %v5583_v43 = vpop.f32.mrf.mxu1 }
 0x4c6   : > { %3701 = vst [vmem:[%s7039_s25 + $0x80] sm:$0xff] %v3669_v38  ;;  %v4998_v44 = vpack.c.bf16 %v3365_v39, %v3362_v28  ;;  %v3638_v45 = vmul.f32 %v7036_v49, %v3365_v39  ;;  %v5584_v46 = vadd.f32 %v5583_v43, %v5582_v0  ;;  %v5473_v47 = vpop.f32.mrf.mxu0 }
 0x4c7   : > { %v5585_v48 = vpop.f32.mrf.mxu1 }
 0x4c8   : > { %5072 = vst [vmem:[%s7048_s13 + $0x40] sm:$0xff] %v4998_v44   ;;  %v3670_v50 = vadd.f32 %v3638_v45, %v3604_v41  ;;  %v3370_v51 = vadd.f32 %v5584_v46, %v5472_v42  ;;  %v5474_v52 = vpop.f32.mrf.mxu0  ;;  %v3610_v41 = vld [vmem:[%s7039_s25 + $0xb8] sm:$0xff] }
 0x4c9   : > { %v5475_v54 = vadd.f32 %v5474_v52, %v5473_v47  ;;  %v5586_v55 = vpop.f32.mrf.mxu1 }
 0x4ca   : > { %3702 = vst [vmem:[%s7039_s25 + $0x88] sm:$0xff] %v3670_v50  ;;  %v3639_v56 = vmul.f32 %v7036_v49, %v3370_v51  ;;  %v5587_v57 = vadd.f32 %v5586_v55, %v5585_v48  ;;  %v5476_v58 = vpop.f32.mrf.mxu0 }
 0x4cb   : > { %v5588_v59 = vpop.f32.mrf.mxu1 }
 0x4cc   : > { %v3671_v61 = vadd.f32 %v3639_v56, %v3605_v53  ;;  %v3373_v62 = vadd.f32 %v5587_v57, %v5475_v54  ;;  %v5477_v63 = vpop.f32.mrf.mxu0  ;;  %v3611_v53 = vld [vmem:[%s7039_s25 + $0xc0] sm:$0xff] }
 0x4cd   : > { %v5478_v2 = vadd.f32 %v5477_v63, %v5476_v58  ;;  %v5589_v3 = vpop.f32.mrf.mxu1 }
 0x4ce   : > { %3703 = vst [vmem:[%s7039_s25 + $0x90] sm:$0xff] %v3671_v61  ;;  %v5003_v4 = vpack.c.bf16 %v3373_v62, %v3370_v51  ;;  %v3640_v5 = vmul.f32 %v7036_v49, %v3373_v62  ;;  %v5590_v6 = vadd.f32 %v5589_v3, %v5588_v59  ;;  %v5479_v7 = vpop.f32.mrf.mxu0 }
 0x4cf   : > { %v5591_v8 = vpop.f32.mrf.mxu1 }
 0x4d0   : > { %5073 = vst [vmem:[%s7048_s13 + $0x48] sm:$0xff] %v5003_v4   ;;  %v3672_v9 = vadd.f32 %v3640_v5, %v3606_v1  ;;  %v3378_v10 = vadd.f32 %v5590_v6, %v5478_v2  ;;  %v5480_v11 = vpop.f32.mrf.mxu0  ;;  %v3612_v1 = vld [vmem:[%s7039_s25 + $0xc8] sm:$0xff] }
 0x4d1   : > { %v5481_v13 = vadd.f32 %v5480_v11, %v5479_v7  ;;  %v5592_v14 = vpop.f32.mrf.mxu1 }
 0x4d2   : > { %3704 = vst [vmem:[%s7039_s25 + $0x98] sm:$0xff] %v3672_v9  ;;  %v3641_v15 = vmul.f32 %v7036_v49, %v3378_v10  ;;  %v5593_v16 = vadd.f32 %v5592_v14, %v5591_v8  ;;  %v5482_v60 = vpop.f32.mrf.mxu0 }
 0x4d3   : > { %v5594_v17 = vpop.f32.mrf.mxu1 }
 0x4d4   : > { %v3673_v18 = vadd.f32 %v3641_v15, %v3607_v12  ;;  %v3381_v19 = vadd.f32 %v5593_v16, %v5481_v13  ;;  %v5483_v20 = vpop.f32.mrf.mxu0  ;;  %v3613_v12 = vld [vmem:[%s7039_s25 + $0xd0] sm:$0xff] }
 0x4d5   : > { %v5484_v34 = vadd.f32 %v5483_v20, %v5482_v60  ;;  %v5595_v36 = vpop.f32.mrf.mxu1 }
 0x4d6   : > { %3705 = vst [vmem:[%s7039_s25 + $0xa0] sm:$0xff] %v3673_v18  ;;  %v5008_v22 = vpack.c.bf16 %v3381_v19, %v3378_v10  ;;  %v3642_v23 = vmul.f32 %v7036_v49, %v3381_v19  ;;  %v5596_v24 = vadd.f32 %v5595_v36, %v5594_v17  ;;  %v5485_v25 = vpop.f32.mrf.mxu0 }
 0x4d7   : > { %v5597_v26 = vpop.f32.mrf.mxu1 }
 0x4d8   : > { %5074 = vst [vmem:[%s7048_s13 + $0x50] sm:$0xff] %v5008_v22   ;;  %v3674_v27 = vadd.f32 %v3642_v23, %v3608_v21  ;;  %v3386_v28 = vadd.f32 %v5596_v24, %v5484_v34  ;;  %v5486_v29 = vpop.f32.mrf.mxu0  ;;  %v3614_v21 = vld [vmem:[%s7039_s25 + $0xd8] sm:$0xff] }
 0x4d9   : > { %v5487_v31 = vadd.f32 %v5486_v29, %v5485_v25  ;;  %v5598_v32 = vpop.f32.mrf.mxu1 }
 0x4da   : > { %3706 = vst [vmem:[%s7039_s25 + $0xa8] sm:$0xff] %v3674_v27  ;;  %v3643_v33 = vmul.f32 %v7036_v49, %v3386_v28  ;;  %v5599_v35 = vadd.f32 %v5598_v32, %v5597_v26  ;;  %v5488_v37 = vpop.f32.mrf.mxu0 }
 0x4db   : > { %v5600_v0 = vpop.f32.mrf.mxu1 }
 0x4dc   : > { %v3675_v38 = vadd.f32 %v3643_v33, %v3609_v30  ;;  %v3389_v39 = vadd.f32 %v5599_v35, %v5487_v31  ;;  %v5489_v40 = vpop.f32.mrf.mxu0  ;;  %v3615_v30 = vld [vmem:[%s7039_s25 + $0xe0] sm:$0xff] }
 0x4dd   : > { %v5490_v42 = vadd.f32 %v5489_v40, %v5488_v37  ;;  %v5601_v43 = vpop.f32.mrf.mxu1 }
 0x4de   : > { %3707 = vst [vmem:[%s7039_s25 + $0xb0] sm:$0xff] %v3675_v38  ;;  %v5013_v44 = vpack.c.bf16 %v3389_v39, %v3386_v28  ;;  %v3644_v45 = vmul.f32 %v7036_v49, %v3389_v39  ;;  %v5602_v46 = vadd.f32 %v5601_v43, %v5600_v0  ;;  %v5491_v47 = vpop.f32.mrf.mxu0 }
 0x4df   : > { %v5603_v48 = vpop.f32.mrf.mxu1 }
 0x4e0   : > { %5075 = vst [vmem:[%s7048_s13 + $0x58] sm:$0xff] %v5013_v44   ;;  %v3676_v50 = vadd.f32 %v3644_v45, %v3610_v41  ;;  %v3394_v51 = vadd.f32 %v5602_v46, %v5490_v42  ;;  %v5492_v52 = vpop.f32.mrf.mxu0  ;;  %v3616_v41 = vld [vmem:[%s7039_s25 + $0xe8] sm:$0xff] }
 0x4e1   : > { %v5493_v54 = vadd.f32 %v5492_v52, %v5491_v47  ;;  %v5604_v55 = vpop.f32.mrf.mxu1 }
 0x4e2   : > { %3708 = vst [vmem:[%s7039_s25 + $0xb8] sm:$0xff] %v3676_v50  ;;  %v3645_v56 = vmul.f32 %v7036_v49, %v3394_v51  ;;  %v5605_v57 = vadd.f32 %v5604_v55, %v5603_v48  ;;  %v5494_v58 = vpop.f32.mrf.mxu0 }
 0x4e3   : > { %v5606_v59 = vpop.f32.mrf.mxu1 }
 0x4e4   : > { %v3677_v61 = vadd.f32 %v3645_v56, %v3611_v53  ;;  %v3397_v62 = vadd.f32 %v5605_v57, %v5493_v54  ;;  %v5495_v63 = vpop.f32.mrf.mxu0  ;;  %v3617_v53 = vld [vmem:[%s7039_s25 + $0xf0] sm:$0xff] }
 0x4e5   : > { %v5496_v2 = vadd.f32 %v5495_v63, %v5494_v58  ;;  %v5607_v3 = vpop.f32.mrf.mxu1 }
 0x4e6   : > { %3709 = vst [vmem:[%s7039_s25 + $0xc0] sm:$0xff] %v3677_v61  ;;  %v5018_v4 = vpack.c.bf16 %v3397_v62, %v3394_v51  ;;  %v3646_v5 = vmul.f32 %v7036_v49, %v3397_v62  ;;  %v5608_v6 = vadd.f32 %v5607_v3, %v5606_v59  ;;  %v5497_v7 = vpop.f32.mrf.mxu0  ;;  %v3618_v61 = vld [vmem:[%s7039_s25 + $0xf8] sm:$0xff] }
 0x4e7   : > { %v5609_v8 = vpop.f32.mrf.mxu1 }
 0x4e8   : > { %5076 = vst [vmem:[%s7048_s13 + $0x60] sm:$0xff] %v5018_v4   ;;  %v3678_v9 = vadd.f32 %v3646_v5, %v3612_v1  ;;  %v3402_v10 = vadd.f32 %v5608_v6, %v5496_v2  ;;  %v5498_v11 = vpop.f32.mrf.mxu0 }
 0x4e9   : > { %v5499_v13 = vadd.f32 %v5498_v11, %v5497_v7  ;;  %v5610_v14 = vpop.f32.mrf.mxu1 }
 0x4ea   : > { %3710 = vst [vmem:[%s7039_s25 + $0xc8] sm:$0xff] %v3678_v9  ;;  %v3647_v15 = vmul.f32 %v7036_v49, %v3402_v10  ;;  %v5611_v16 = vadd.f32 %v5610_v14, %v5609_v8  ;;  %v5500_v60 = vpop.f32.mrf.mxu0 }
 0x4eb   : > { %v5612_v17 = vpop.f32.mrf.mxu1 }
 0x4ec   : > { %v3679_v18 = vadd.f32 %v3647_v15, %v3613_v12  ;;  %v3405_v19 = vadd.f32 %v5611_v16, %v5499_v13  ;;  %v5501_v20 = vpop.f32.mrf.mxu0 }
 0x4ed   : > { %v5502_v34 = vadd.f32 %v5501_v20, %v5500_v60  ;;  %v5613_v36 = vpop.f32.mrf.mxu1 }
 0x4ee   : > { %3711 = vst [vmem:[%s7039_s25 + $0xd0] sm:$0xff] %v3679_v18  ;;  %v5023_v22 = vpack.c.bf16 %v3405_v19, %v3402_v10  ;;  %v3648_v23 = vmul.f32 %v7036_v49, %v3405_v19  ;;  %v5614_v24 = vadd.f32 %v5613_v36, %v5612_v17  ;;  %v5503_v25 = vpop.f32.mrf.mxu0 }
 0x4ef   : > { %v5615_v26 = vpop.f32.mrf.mxu1 }
 0x4f0   : > { %5077 = vst [vmem:[%s7048_s13 + $0x68] sm:$0xff] %v5023_v22   ;;  %v3680_v27 = vadd.f32 %v3648_v23, %v3614_v21  ;;  %v3410_v28 = vadd.f32 %v5614_v24, %v5502_v34  ;;  %v5504_v29 = vpop.f32.mrf.mxu0 }
 0x4f1   : > { %v5505_v31 = vadd.f32 %v5504_v29, %v5503_v25  ;;  %v5616_v32 = vpop.f32.mrf.mxu1 }
 0x4f2   : > { %3712 = vst [vmem:[%s7039_s25 + $0xd8] sm:$0xff] %v3680_v27  ;;  %v3649_v33 = vmul.f32 %v7036_v49, %v3410_v28  ;;  %v5617_v35 = vadd.f32 %v5616_v32, %v5615_v26  ;;  %v5506_v37 = vpop.f32.mrf.mxu0 }
 0x4f3   : > { %v5618_v0 = vpop.f32.mrf.mxu1 }
 0x4f4   : > { %v3681_v38 = vadd.f32 %v3649_v33, %v3615_v30  ;;  %v3413_v39 = vadd.f32 %v5617_v35, %v5505_v31  ;;  %v5507_v40 = vpop.f32.mrf.mxu0 }
 0x4f5   : > { %v5508_v42 = vadd.f32 %v5507_v40, %v5506_v37  ;;  %v5619_v43 = vpop.f32.mrf.mxu1 }
 0x4f6   : > { %3713 = vst [vmem:[%s7039_s25 + $0xe0] sm:$0xff] %v3681_v38  ;;  %v5028_v44 = vpack.c.bf16 %v3413_v39, %v3410_v28  ;;  %v3650_v45 = vmul.f32 %v7036_v49, %v3413_v39  ;;  %v5620_v46 = vadd.f32 %v5619_v43, %v5618_v0  ;;  %v5509_v47 = vpop.f32.mrf.mxu0 }
 0x4f7   : > { %v5621_v48 = vpop.f32.mrf.mxu1 }
 0x4f8   : > { %5078 = vst [vmem:[%s7048_s13 + $0x70] sm:$0xff] %v5028_v44   ;;  %v3682_v50 = vadd.f32 %v3650_v45, %v3616_v41  ;;  %v3418_v51 = vadd.f32 %v5620_v46, %v5508_v42  ;;  %v5510_v52 = vpop.f32.mrf.mxu0 }
 0x4f9   : > { %v5511_v54 = vadd.f32 %v5510_v52, %v5509_v47  ;;  %v5622_v55 = vpop.f32.mrf.mxu1 }
 0x4fa   : > { %3714 = vst [vmem:[%s7039_s25 + $0xe8] sm:$0xff] %v3682_v50  ;;  %v3651_v56 = vmul.f32 %v7036_v49, %v3418_v51  ;;  %v5623_v57 = vadd.f32 %v5622_v55, %v5621_v48 }
 0x4fc   : > { %v3683_v58 = vadd.f32 %v3651_v56, %v3617_v53  ;;  %v3421_v59 = vadd.f32 %v5623_v57, %v5511_v54 }
 0x4fe   : > { %3715 = vst [vmem:[%s7039_s25 + $0xf0] sm:$0xff] %v3683_v58  ;;  %v5033_v62 = vpack.c.bf16 %v3421_v59, %v3418_v51  ;;  %v3652_v63 = vmul.f32 %v7036_v49, %v3421_v59 }
 0x500   : > { %5079 = vst [vmem:[%s7048_s13 + $0x78] sm:$0xff] %v5033_v62   ;;  %v3684_v1 = vadd.f32 %v3652_v63, %v3618_v61 }
 0x502   : > { %3716 = vst [vmem:[%s7039_s25 + $0xf8] sm:$0xff] %v3684_v1 }
 0x503 PF: > { %p4694_p13 = scmp.ne.s32.totalorder %s6328_s28, 10 }
 0x504   : > { %s7159_s14 = scalar_lea.vmem (!%p4694_p13), [#allocation4], %s6447_s20 }
 0x505   : > { %3720 = sbr.rel (%p4694_p13) target bundleno = 1691 (0x69b), region = 68 }
 0x50a   : > { %v3754_v2 = vlaneseq  ;;  %v3722_v3 = vld [vmem:[%s7159_s14] sm:$0xff]  ;;  %v3724_v49 = vld [vmem:[%s7159_s14 + $0x10] sm:$0xff]  ;;  %v3723_v5 = vld [vmem:[%s7159_s14 + $0x8] sm:$0xff] }
 0x50b   : > { %v3725_v6 = vld [vmem:[%s7159_s14 + $0x18] sm:$0xff]  ;;  %v3726_v11 = vld [vmem:[%s7159_s14 + $0x20] sm:$0xff]  ;;  %v3727_v12 = vld [vmem:[%s7159_s14 + $0x28] sm:$0xff] }
 0x50c   : > { %v7162_v4 = vand.u32 127, %v3754_v2  ;;  %v3728_v15 = vld [vmem:[%s7159_s14 + $0x30] sm:$0xff]  ;;  %v3729_v16 = vld [vmem:[%s7159_s14 + $0x38] sm:$0xff]  ;;  %v3730_v18 = vld [vmem:[%s7159_s14 + $0x40] sm:$0xff] }
 0x50d   : > { %v3731_v19 = vld [vmem:[%s7159_s14 + $0x48] sm:$0xff]  ;;  %v3732_v34 = vld [vmem:[%s7159_s14 + $0x50] sm:$0xff]  ;;  %v3733_v36 = vld [vmem:[%s7159_s14 + $0x58] sm:$0xff] }
 0x50e   : > { %vm3756_vm0 = vcmp.lt.s32.totalorder %v7162_v4, 8  ;;  %v3734_v24 = vld [vmem:[%s7159_s14 + $0x60] sm:$0xff]  ;;  %v3735_v25 = vld [vmem:[%s7159_s14 + $0x68] sm:$0xff]  ;;  %v3736_v28 = vld [vmem:[%s7159_s14 + $0x70] sm:$0xff] }
 0x50f   : > { %v7170_v7 = vsel %vm3756_vm0, %v3722_v3, -1e+30  ;;  %v7174_v8 = vsel %vm3756_vm0, %v3724_v49, -1e+30  ;;  %v7180_v9 = vsel %vm3756_vm0, %v3723_v5, -1e+30 }
 0x510   : > { %3789 = vmax.xlane.f32.xlu0 %v7170_v7  ;;  %3793 = vmax.xlane.f32.xlu1 %v7174_v8  ;;  %v7184_v10 = vsel %vm3756_vm0, %v3725_v6, -1e+30  ;;  %v7192_v13 = vsel %vm3756_vm0, %v3726_v11, -1e+30  ;;  %v7196_v14 = vsel %vm3756_vm0, %v3727_v12, -1e+30 }
 0x511   : > { %v7204_v60 = vsel %vm3756_vm0, %v3728_v15, -1e+30  ;;  %v7208_v17 = vsel %vm3756_vm0, %v3729_v16, -1e+30  ;;  %v7216_v20 = vsel %vm3756_vm0, %v3730_v18, -1e+30 }
 0x512   : > { %v7220_v21 = vsel %vm3756_vm0, %v3731_v19, -1e+30  ;;  %v7228_v22 = vsel %vm3756_vm0, %v3732_v34, -1e+30  ;;  %v7232_v23 = vsel %vm3756_vm0, %v3733_v36, -1e+30 }
 0x513   : > { %v7240_v26 = vsel %vm3756_vm0, %v3734_v24, -1e+30  ;;  %v7244_v27 = vsel %vm3756_vm0, %v3735_v25, -1e+30  ;;  %v3737_v29 = vld [vmem:[%s7159_s14 + $0x78] sm:$0xff]  ;;  %v3738_v32 = vld [vmem:[%s7159_s14 + $0x80] sm:$0xff] }
 0x514   : > { %3791 = vmax.xlane.f32.xlu0 %v7180_v9  ;;  %3795 = vmax.xlane.f32.xlu1 %v7184_v10  ;;  %v7252_v30 = vsel %vm3756_vm0, %v3736_v28, -1e+30  ;;  %v7256_v31 = vsel %vm3756_vm0, %v3737_v29, -1e+30  ;;  %v3739_v33 = vld [vmem:[%s7159_s14 + $0x88] sm:$0xff]  ;;  %v3740_v0 = vld [vmem:[%s7159_s14 + $0x90] sm:$0xff] }
 0x515   : > { %v7264_v35 = vsel %vm3756_vm0, %v3738_v32, -1e+30  ;;  %v7268_v37 = vsel %vm3756_vm0, %v3739_v33, -1e+30  ;;  %v3741_v38 = vld [vmem:[%s7159_s14 + $0x98] sm:$0xff]  ;;  %v3742_v41 = vld [vmem:[%s7159_s14 + $0xa0] sm:$0xff] }
 0x516   : > { %v7276_v39 = vsel %vm3756_vm0, %v3740_v0, -1e+30  ;;  %v7280_v40 = vsel %vm3756_vm0, %v3741_v38, -1e+30  ;;  %v3743_v42 = vld [vmem:[%s7159_s14 + $0xa8] sm:$0xff]  ;;  %v3744_v45 = vld [vmem:[%s7159_s14 + $0xb0] sm:$0xff] }
 0x517   : > { %v7288_v43 = vsel %vm3756_vm0, %v3742_v41, -1e+30  ;;  %v7292_v44 = vsel %vm3756_vm0, %v3743_v42, -1e+30  ;;  %v3745_v46 = vld [vmem:[%s7159_s14 + $0xb8] sm:$0xff]  ;;  %v3746_v50 = vld [vmem:[%s7159_s14 + $0xc0] sm:$0xff] }
 0x518   : > { %3797 = vmax.xlane.f32.xlu0 %v7192_v13  ;;  %3799 = vmax.xlane.f32.xlu1 %v7196_v14  ;;  %v7300_v47 = vsel %vm3756_vm0, %v3744_v45, -1e+30  ;;  %v7304_v48 = vsel %vm3756_vm0, %v3745_v46, -1e+30  ;;  %v3747_v51 = vld [vmem:[%s7159_s14 + $0xc8] sm:$0xff]  ;;  %v3748_v54 = vld [vmem:[%s7159_s14 + $0xd0] sm:$0xff] }
 0x519   : > { %v7312_v52 = vsel %vm3756_vm0, %v3746_v50, -1e+30  ;;  %v7316_v53 = vsel %vm3756_vm0, %v3747_v51, -1e+30  ;;  %v3749_v55 = vld [vmem:[%s7159_s14 + $0xd8] sm:$0xff]  ;;  %v3750_v58 = vld [vmem:[%s7159_s14 + $0xe0] sm:$0xff] }
 0x51a   : > { %v7324_v56 = vsel %vm3756_vm0, %v3748_v54, -1e+30  ;;  %v7328_v57 = vsel %vm3756_vm0, %v3749_v55, -1e+30  ;;  %v3751_v59 = vld [vmem:[%s7159_s14 + $0xe8] sm:$0xff]  ;;  %v3752_v63 = vld [vmem:[%s7159_s14 + $0xf0] sm:$0xff] }
 0x51b   : > { %v7336_v61 = vsel %vm3756_vm0, %v3750_v58, -1e+30  ;;  %v7340_v62 = vsel %vm3756_vm0, %v3751_v59, -1e+30  ;;  %v3753_v1 = vld [vmem:[%s7159_s14 + $0xf8] sm:$0xff] }
 0x51c   : > { %3801 = vmax.xlane.f32.xlu0 %v7204_v60  ;;  %3803 = vmax.xlane.f32.xlu1 %v7208_v17  ;;  %v7348_v2 = vsel %vm3756_vm0, %v3752_v63, -1e+30  ;;  %v7352_v3 = vsel %vm3756_vm0, %v3753_v1, -1e+30 }
 0x520   : > { %3805 = vmax.xlane.f32.xlu0 %v7216_v20  ;;  %3807 = vmax.xlane.f32.xlu1 %v7220_v21 }
 0x524   : > { %3809 = vmax.xlane.f32.xlu0 %v7228_v22  ;;  %3811 = vmax.xlane.f32.xlu1 %v7232_v23 }
 0x528   : > { %3813 = vmax.xlane.f32.xlu0 %v7240_v26  ;;  %3815 = vmax.xlane.f32.xlu1 %v7244_v27 }
 0x52c   : > { %3817 = vmax.xlane.f32.xlu0 %v7252_v30  ;;  %3819 = vmax.xlane.f32.xlu1 %v7256_v31 }
 0x530   : > { %3821 = vmax.xlane.f32.xlu0 %v7264_v35  ;;  %3823 = vmax.xlane.f32.xlu1 %v7268_v37 }
 0x534   : > { %3825 = vmax.xlane.f32.xlu0 %v7276_v39  ;;  %3827 = vmax.xlane.f32.xlu1 %v7280_v40 }
 0x538   : > { %3829 = vmax.xlane.f32.xlu0 %v7288_v43  ;;  %3831 = vmax.xlane.f32.xlu1 %v7292_v44 }
 0x53c   : > { %3833 = vmax.xlane.f32.xlu0 %v7300_v47  ;;  %3835 = vmax.xlane.f32.xlu1 %v7304_v48 }
 0x540   : > { %3837 = vmax.xlane.f32.xlu0 %v7312_v52  ;;  %3839 = vmax.xlane.f32.xlu1 %v7316_v53 }
 0x544   : > { %3841 = vmax.xlane.f32.xlu0 %v7324_v56  ;;  %3843 = vmax.xlane.f32.xlu1 %v7328_v57 }
 0x548   : > { %3845 = vmax.xlane.f32.xlu0 %v7336_v61  ;;  %3847 = vmax.xlane.f32.xlu1 %v7340_v62 }
 0x54c   : > { %3849 = vmax.xlane.f32.xlu0 %v7348_v2  ;;  %3851 = vmax.xlane.f32.xlu1 %v7352_v3 }
 0x599   : > { %v3790_v49 = vpop.xlane.xlu0 %3789  ;;  %v3794_v5 = vpop.xlane.xlu1 %3793 }
 0x59a   : > { %v7357_v6 = vsub.f32 %v7170_v7, %v3790_v49  ;;  %v7360_v11 = vsub.f32 %v7174_v8, %v3794_v5 }
 0x59c   : > { %v3885_v12 = vmul.f32 1.442695, %v7357_v6  ;;  %v3889_v15 = vmul.f32 1.442695, %v7360_v11 }
 0x59d   : > { %v3792_v16 = vpop.xlane.xlu0 %3791  ;;  %v3796_v4 = vpop.xlane.xlu1 %3795 }
 0x59e   : > { %6091 = vpow2.f32 %v3885_v12  ;;  %v7365_v18 = vsub.f32 %v7180_v9, %v3792_v16  ;;  %v7368_v19 = vsub.f32 %v7184_v10, %v3796_v4 }
 0x59f   : > { %6093 = vpow2.f32 %v3889_v15 }
 0x5a0   : > { %v3887_v7 = vmul.f32 1.442695, %v7365_v18  ;;  %v3891_v34 = vmul.f32 1.442695, %v7368_v19 }
 0x5a1   : > { %v3798_v8 = vpop.xlane.xlu0 %3797  ;;  %v3800_v36 = vpop.xlane.xlu1 %3799 }
 0x5a2   : > { %6095 = vpow2.f32 %v3887_v7  ;;  %v7373_v24 = vsub.f32 %v7192_v13, %v3798_v8  ;;  %v7376_v25 = vsub.f32 %v7196_v14, %v3800_v36 }
 0x5a3   : > { %6097 = vpow2.f32 %v3891_v34 }
 0x5a4   : > { %v3893_v9 = vmul.f32 1.442695, %v7373_v24  ;;  %v3895_v10 = vmul.f32 1.442695, %v7376_v25 }
 0x5a5   : > { %v3802_v28 = vpop.xlane.xlu0 %3801  ;;  %v3804_v29 = vpop.xlane.xlu1 %3803 }
 0x5a6   : > { %6099 = vpow2.f32 %v3893_v9  ;;  %v7381_v32 = vsub.f32 %v7204_v60, %v3802_v28  ;;  %v7384_v33 = vsub.f32 %v7208_v17, %v3804_v29 }
 0x5a7   : > { %6101 = vpow2.f32 %v3895_v10 }
 0x5a8   : > { %v3897_v13 = vmul.f32 1.442695, %v7381_v32  ;;  %v3899_v14 = vmul.f32 1.442695, %v7384_v33 }
 0x5a9   : > { %v3806_v0 = vpop.xlane.xlu0 %3805  ;;  %v3808_v38 = vpop.xlane.xlu1 %3807 }
 0x5aa   : > { %6103 = vpow2.f32 %v3897_v13  ;;  %v7389_v41 = vsub.f32 %v7216_v20, %v3806_v0  ;;  %v7392_v42 = vsub.f32 %v7220_v21, %v3808_v38 }
 0x5ab   : > { %v6092_v45 = vpop.eup %6091  ;;  %6105 = vpow2.f32 %v3899_v14 }
 0x5ac   : > { %v3901_v60 = vmul.f32 1.442695, %v7389_v41  ;;  %3949 = vadd.xlane.f32.xlu0 %v6092_v45  ;;  %v3903_v17 = vmul.f32 1.442695, %v7392_v42  ;;  %v6094_v46 = vpop.eup %6093 }
 0x5ad   : > { %v3810_v50 = vpop.xlane.xlu0 %3809  ;;  %v3812_v51 = vpop.xlane.xlu1 %3811 }
 0x5ae   : > { %6107 = vpow2.f32 %v3901_v60  ;;  %v7397_v54 = vsub.f32 %v7228_v22, %v3810_v50  ;;  %v7400_v20 = vsub.f32 %v7232_v23, %v3812_v51 }
 0x5af   : > { %v6096_v55 = vpop.eup %6095  ;;  %6109 = vpow2.f32 %v3903_v17 }
 0x5b0   : > { %v3905_v21 = vmul.f32 1.442695, %v7397_v54  ;;  %3953 = vadd.xlane.f32.xlu0 %v6094_v46  ;;  %3951 = vadd.xlane.f32.xlu1 %v6096_v55  ;;  %v3907_v58 = vmul.f32 1.442695, %v7400_v20  ;;  %v6098_v59 = vpop.eup %6097 }
 0x5b1   : > { %v3814_v63 = vpop.xlane.xlu0 %3813  ;;  %v3816_v1 = vpop.xlane.xlu1 %3815 }
 0x5b2   : > { %6111 = vpow2.f32 %v3905_v21  ;;  %v7405_v49 = vsub.f32 %v7240_v26, %v3814_v63  ;;  %v7408_v22 = vsub.f32 %v7244_v27, %v3816_v1 }
 0x5b3   : > { %v6100_v23 = vpop.eup %6099  ;;  %6113 = vpow2.f32 %v3907_v58 }
 0x5b4   : > { %v3909_v5 = vmul.f32 1.442695, %v7405_v49  ;;  %3955 = vadd.xlane.f32.xlu1 %v6098_v59  ;;  %3957 = vadd.xlane.f32.xlu0 %v6100_v23  ;;  %v3911_v12 = vmul.f32 1.442695, %v7408_v22  ;;  %v6102_v15 = vpop.eup %6101 }
 0x5b5   : > { %v3818_v16 = vpop.xlane.xlu0 %3817  ;;  %v3820_v4 = vpop.xlane.xlu1 %3819 }
 0x5b6   : > { %6115 = vpow2.f32 %v3909_v5  ;;  %v7413_v7 = vsub.f32 %v7252_v30, %v3818_v16  ;;  %v7416_v26 = vsub.f32 %v7256_v31, %v3820_v4 }
 0x5b7   : > { %v6104_v27 = vpop.eup %6103  ;;  %6117 = vpow2.f32 %v3911_v12 }
 0x5b8   : > { %v3913_v34 = vmul.f32 1.442695, %v7413_v7  ;;  %3959 = vadd.xlane.f32.xlu1 %v6102_v15  ;;  %3961 = vadd.xlane.f32.xlu0 %v6104_v27  ;;  %v3915_v8 = vmul.f32 1.442695, %v7416_v26  ;;  %v6106_v36 = vpop.eup %6105 }
 0x5b9   : > { %v3822_v9 = vpop.xlane.xlu0 %3821  ;;  %v3824_v10 = vpop.xlane.xlu1 %3823 }
 0x5ba   : > { %6119 = vpow2.f32 %v3913_v34  ;;  %v7421_v28 = vsub.f32 %v7264_v35, %v3822_v9  ;;  %v7424_v30 = vsub.f32 %v7268_v37, %v3824_v10 }
 0x5bb   : > { %v6108_v31 = vpop.eup %6107  ;;  %6121 = vpow2.f32 %v3915_v8 }
 0x5bc   : > { %v3917_v29 = vmul.f32 1.442695, %v7421_v28  ;;  %3963 = vadd.xlane.f32.xlu1 %v6106_v36  ;;  %3965 = vadd.xlane.f32.xlu0 %v6108_v31  ;;  %v3919_v13 = vmul.f32 1.442695, %v7424_v30  ;;  %v6110_v14 = vpop.eup %6109 }
 0x5bd   : > { %v3826_v0 = vpop.xlane.xlu0 %3825  ;;  %v3828_v38 = vpop.xlane.xlu1 %3827 }
 0x5be   : > { %6123 = vpow2.f32 %v3917_v29  ;;  %v7429_v45 = vsub.f32 %v7276_v39, %v3826_v0  ;;  %v7432_v35 = vsub.f32 %v7280_v40, %v3828_v38 }
 0x5bf   : > { %v6112_v37 = vpop.eup %6111  ;;  %6125 = vpow2.f32 %v3919_v13 }
 0x5c0   : > { %v3921_v60 = vmul.f32 1.442695, %v7429_v45  ;;  %3967 = vadd.xlane.f32.xlu1 %v6110_v14  ;;  %3969 = vadd.xlane.f32.xlu0 %v6112_v37  ;;  %v3923_v17 = vmul.f32 1.442695, %v7432_v35  ;;  %v6114_v46 = vpop.eup %6113 }
 0x5c1   : > { %v3830_v50 = vpop.xlane.xlu0 %3829  ;;  %v3832_v51 = vpop.xlane.xlu1 %3831 }
 0x5c2   : > { %6127 = vpow2.f32 %v3921_v60  ;;  %v7437_v55 = vsub.f32 %v7288_v43, %v3830_v50  ;;  %v7440_v39 = vsub.f32 %v7292_v44, %v3832_v51 }
 0x5c3   : > { %v6116_v40 = vpop.eup %6115  ;;  %6129 = vpow2.f32 %v3923_v17 }
 0x5c4   : > { %v3925_v21 = vmul.f32 1.442695, %v7437_v55  ;;  %3971 = vadd.xlane.f32.xlu1 %v6114_v46  ;;  %3973 = vadd.xlane.f32.xlu0 %v6116_v40  ;;  %v3927_v58 = vmul.f32 1.442695, %v7440_v39  ;;  %v6118_v59 = vpop.eup %6117 }
 0x5c5   : > { %v3834_v63 = vpop.xlane.xlu0 %3833  ;;  %v3836_v1 = vpop.xlane.xlu1 %3835 }
 0x5c6   : > { %6131 = vpow2.f32 %v3925_v21  ;;  %v7445_v23 = vsub.f32 %v7300_v47, %v3834_v63  ;;  %v7448_v43 = vsub.f32 %v7304_v48, %v3836_v1 }
 0x5c7   : > { %v6120_v44 = vpop.eup %6119  ;;  %6133 = vpow2.f32 %v3927_v58 }
 0x5c8   : > { %v3929_v5 = vmul.f32 1.442695, %v7445_v23  ;;  %3975 = vadd.xlane.f32.xlu1 %v6118_v59  ;;  %3977 = vadd.xlane.f32.xlu0 %v6120_v44  ;;  %v3931_v12 = vmul.f32 1.442695, %v7448_v43  ;;  %v6122_v15 = vpop.eup %6121 }
 0x5c9   : > { %v3838_v16 = vpop.xlane.xlu0 %3837  ;;  %v3840_v4 = vpop.xlane.xlu1 %3839 }
 0x5ca   : > { %6135 = vpow2.f32 %v3929_v5  ;;  %v7453_v27 = vsub.f32 %v7312_v52, %v3838_v16  ;;  %v7456_v47 = vsub.f32 %v7316_v53, %v3840_v4 }
 0x5cb   : > { %v6124_v48 = vpop.eup %6123  ;;  %6137 = vpow2.f32 %v3931_v12 }
 0x5cc   : > { %v3933_v34 = vmul.f32 1.442695, %v7453_v27  ;;  %3979 = vadd.xlane.f32.xlu1 %v6122_v15  ;;  %3981 = vadd.xlane.f32.xlu0 %v6124_v48  ;;  %v3935_v8 = vmul.f32 1.442695, %v7456_v47  ;;  %v6126_v36 = vpop.eup %6125 }
 0x5cd   : > { %v3842_v9 = vpop.xlane.xlu0 %3841  ;;  %v3844_v10 = vpop.xlane.xlu1 %3843 }
 0x5ce   : > { %6139 = vpow2.f32 %v3933_v34  ;;  %v7461_v31 = vsub.f32 %v7324_v56, %v3842_v9  ;;  %v7464_v52 = vsub.f32 %v7328_v57, %v3844_v10 }
 0x5cf   : > { %v6128_v53 = vpop.eup %6127  ;;  %6141 = vpow2.f32 %v3935_v8 }
 0x5d0   : > { %v3937_v29 = vmul.f32 1.442695, %v7461_v31  ;;  %3983 = vadd.xlane.f32.xlu1 %v6126_v36  ;;  %3985 = vadd.xlane.f32.xlu0 %v6128_v53  ;;  %v3939_v13 = vmul.f32 1.442695, %v7464_v52  ;;  %v6130_v14 = vpop.eup %6129 }
 0x5d1   : > { %v3846_v0 = vpop.xlane.xlu0 %3845  ;;  %v3848_v38 = vpop.xlane.xlu1 %3847 }
 0x5d2   : > { %6143 = vpow2.f32 %v3937_v29  ;;  %v7469_v37 = vsub.f32 %v7336_v61, %v3846_v0  ;;  %v7472_v56 = vsub.f32 %v7340_v62, %v3848_v38 }
 0x5d3   : > { %v6132_v57 = vpop.eup %6131  ;;  %6145 = vpow2.f32 %v3939_v13 }
 0x5d4   : > { %v3941_v60 = vmul.f32 1.442695, %v7469_v37  ;;  %3987 = vadd.xlane.f32.xlu1 %v6130_v14  ;;  %3989 = vadd.xlane.f32.xlu0 %v6132_v57  ;;  %v3943_v17 = vmul.f32 1.442695, %v7472_v56  ;;  %v6134_v46 = vpop.eup %6133 }
 0x5d5   : > { %v3850_v50 = vpop.xlane.xlu0 %3849  ;;  %v3852_v51 = vpop.xlane.xlu1 %3851 }
 0x5d6   : > { %6147 = vpow2.f32 %v3941_v60  ;;  %v7477_v40 = vsub.f32 %v7348_v2, %v3850_v50  ;;  %v7480_v61 = vsub.f32 %v7352_v3, %v3852_v51 }
 0x5d7   : > { %v6136_v62 = vpop.eup %6135  ;;  %6149 = vpow2.f32 %v3943_v17 }
 0x5d8   : > { %v3945_v21 = vmul.f32 1.442695, %v7477_v40  ;;  %3991 = vadd.xlane.f32.xlu1 %v6134_v46  ;;  %3993 = vadd.xlane.f32.xlu0 %v6136_v62  ;;  %v3947_v58 = vmul.f32 1.442695, %v7480_v61  ;;  %v6138_v59 = vpop.eup %6137 }
 0x5da   : > { %6151 = vpow2.f32 %v3945_v21 }
 0x5db   : > { %v6140_v63 = vpop.eup %6139  ;;  %6153 = vpow2.f32 %v3947_v58 }
 0x5dc   : > { %3995 = vadd.xlane.f32.xlu1 %v6138_v59  ;;  %3997 = vadd.xlane.f32.xlu0 %v6140_v63  ;;  %v6142_v1 = vpop.eup %6141 }
 0x5df   : > { %v6144_v2 = vpop.eup %6143 }
 0x5e0   : > { %3999 = vadd.xlane.f32.xlu1 %v6142_v1  ;;  %4001 = vadd.xlane.f32.xlu0 %v6144_v2  ;;  %v6146_v3 = vpop.eup %6145 }
 0x5e3   : > { %v6148_v44 = vpop.eup %6147 }
 0x5e4   : > { %4003 = vadd.xlane.f32.xlu1 %v6146_v3  ;;  %4005 = vadd.xlane.f32.xlu0 %v6148_v44  ;;  %v6150_v5 = vpop.eup %6149 }
 0x5e7   : > { %v6152_v12 = vpop.eup %6151 }
 0x5e8   : > { %4007 = vadd.xlane.f32.xlu1 %v6150_v5  ;;  %4009 = vadd.xlane.f32.xlu0 %v6152_v12  ;;  %v6154_v15 = vpop.eup %6153 }
 0x5ec   : > { %4011 = vadd.xlane.f32.xlu1 %v6154_v15 }
 0x635   : > { %v3950_v16 = vpop.xlane.xlu0 %3949 }
 0x636   : > { %6155 = vlog2.f32 %v3950_v16 }
 0x639   : > { %v3952_v4 = vpop.xlane.xlu1 %3951  ;;  %v3954_v48 = vpop.xlane.xlu0 %3953 }
 0x63a   : > { %6157 = vlog2.f32 %v3952_v4 }
 0x63b   : > { %6159 = vlog2.f32 %v3954_v48 }
 0x63d   : > { %v3956_v34 = vpop.xlane.xlu1 %3955  ;;  %v3958_v8 = vpop.xlane.xlu0 %3957 }
 0x63e   : > { %6161 = vlog2.f32 %v3956_v34 }
 0x63f   : > { %6163 = vlog2.f32 %v3958_v8 }
 0x641   : > { %v3960_v36 = vpop.xlane.xlu1 %3959  ;;  %v3962_v9 = vpop.xlane.xlu0 %3961 }
 0x642   : > { %6165 = vlog2.f32 %v3960_v36 }
 0x643   : > { %v6156_v10 = vpop.eup %6155  ;;  %6167 = vlog2.f32 %v3962_v9 }
 0x644   : > { %v4014_v53 = vmul.f32 0.6931472, %v6156_v10 }
 0x645   : > { %v3964_v29 = vpop.xlane.xlu1 %3963  ;;  %v3966_v13 = vpop.xlane.xlu0 %3965 }
 0x646   : > { %v4077_v14 = vsub.f32 %v7357_v6, %v4014_v53  ;;  %6169 = vlog2.f32 %v3964_v29 }
 0x647   : > { %v6158_v0 = vpop.eup %6157  ;;  %6171 = vlog2.f32 %v3966_v13 }
 0x648   : > { %v6160_v38 = vpop.eup %6159  ;;  %4109 = vst [vmem:[%s6459_s16] sm:$0xff] %v4077_v14  ;;  %v4141_v57 = vmul.f32 1.442695, %v4077_v14  ;;  %v4016_v60 = vmul.f32 0.6931472, %v6158_v0 }
 0x649   : > { %v4018_v17 = vmul.f32 0.6931472, %v6160_v38  ;;  %v3968_v46 = vpop.xlane.xlu1 %3967  ;;  %v3970_v50 = vpop.xlane.xlu0 %3969 }
 0x64a   : > { %6173 = vpow2.f32 %v4141_v57  ;;  %v4078_v51 = vsub.f32 %v7365_v18, %v4016_v60 }
 0x64b   : > { %v6162_v62 = vpop.eup %6161  ;;  %v4079_v21 = vsub.f32 %v7360_v11, %v4018_v17  ;;  %6175 = vlog2.f32 %v3968_v46 }
 0x64c   : > { %v6164_v6 = vpop.eup %6163  ;;  %4110 = vst [vmem:[%s6459_s16 + $0x8] sm:$0xff] %v4078_v51  ;;  %v4143_v58 = vmul.f32 1.442695, %v4078_v51  ;;  %v4020_v59 = vmul.f32 0.6931472, %v6162_v62  ;;  %6177 = vlog2.f32 %v3970_v50 }
 0x64d   : > { %4111 = vst [vmem:[%s6459_s16 + $0x10] sm:$0xff] %v4079_v21  ;;  %v4145_v63 = vmul.f32 1.442695, %v4079_v21  ;;  %v4022_v1 = vmul.f32 0.6931472, %v6164_v6  ;;  %v3972_v2 = vpop.xlane.xlu1 %3971  ;;  %v3974_v3 = vpop.xlane.xlu0 %3973 }
 0x64e   : > { %6179 = vpow2.f32 %v4143_v58  ;;  %v4080_v44 = vsub.f32 %v7368_v19, %v4020_v59 }
 0x64f   : > { %v6166_v18 = vpop.eup %6165  ;;  %6181 = vpow2.f32 %v4145_v63  ;;  %v4081_v11 = vsub.f32 %v7373_v24, %v4022_v1 }
 0x650   : > { %v6168_v5 = vpop.eup %6167  ;;  %4112 = vst [vmem:[%s6459_s16 + $0x18] sm:$0xff] %v4080_v44  ;;  %v4147_v12 = vmul.f32 1.442695, %v4080_v44  ;;  %v4024_v15 = vmul.f32 0.6931472, %v6166_v18  ;;  %6183 = vlog2.f32 %v3972_v2 }
 0x651   : > { %4113 = vst [vmem:[%s6459_s16 + $0x20] sm:$0xff] %v4081_v11  ;;  %v4149_v16 = vmul.f32 1.442695, %v4081_v11  ;;  %v4026_v4 = vmul.f32 0.6931472, %v6168_v5  ;;  %6185 = vlog2.f32 %v3974_v3  ;;  %v3976_v48 = vpop.xlane.xlu1 %3975  ;;  %v3978_v34 = vpop.xlane.xlu0 %3977 }
 0x652   : > { %6187 = vpow2.f32 %v4147_v12  ;;  %v4082_v19 = vsub.f32 %v7376_v25, %v4024_v15 }
 0x653   : > { %v6170_v8 = vpop.eup %6169  ;;  %6189 = vpow2.f32 %v4149_v16  ;;  %v4083_v24 = vsub.f32 %v7381_v32, %v4026_v4 }
 0x654   : > { %v6172_v36 = vpop.eup %6171  ;;  %4114 = vst [vmem:[%s6459_s16 + $0x28] sm:$0xff] %v4082_v19  ;;  %v4151_v9 = vmul.f32 1.442695, %v4082_v19  ;;  %v4028_v10 = vmul.f32 0.6931472, %v6170_v8  ;;  %6191 = vlog2.f32 %v3976_v48 }
 0x655   : > { %4115 = vst [vmem:[%s6459_s16 + $0x30] sm:$0xff] %v4083_v24  ;;  %v4153_v53 = vmul.f32 1.442695, %v4083_v24  ;;  %v4030_v29 = vmul.f32 0.6931472, %v6172_v36  ;;  %6193 = vlog2.f32 %v3978_v34  ;;  %v3980_v13 = vpop.xlane.xlu1 %3979  ;;  %v3982_v14 = vpop.xlane.xlu0 %3981 }
 0x656   : > { %6195 = vpow2.f32 %v4151_v9  ;;  %v4084_v25 = vsub.f32 %v7384_v33, %v4028_v10 }
 0x657   : > { %v6174_v0 = vpop.eup %6173  ;;  %6197 = vpow2.f32 %v4153_v53  ;;  %v4085_v32 = vsub.f32 %v7389_v41, %v4030_v29 }
 0x658   : > { %v6176_v38 = vpop.eup %6175  ;;  %4205 = vst [vmem:[%s6464_s19] sm:$0xff] %v6174_v0  ;;  %4116 = vst [vmem:[%s6459_s16 + $0x38] sm:$0xff] %v4084_v25  ;;  %v4155_v57 = vmul.f32 1.442695, %v4084_v25  ;;  %6199 = vlog2.f32 %v3980_v13 }
 0x659   : > { %v6178_v60 = vpop.eup %6177  ;;  %4117 = vst [vmem:[%s6459_s16 + $0x40] sm:$0xff] %v4085_v32  ;;  %v4157_v17 = vmul.f32 1.442695, %v4085_v32  ;;  %v4032_v46 = vmul.f32 0.6931472, %v6176_v38  ;;  %6201 = vlog2.f32 %v3982_v14  ;;  %v3984_v50 = vpop.xlane.xlu1 %3983 }
 0x65a   : > { %v3986_v51 = vpop.xlane.xlu0 %3985  ;;  %6203 = vpow2.f32 %v4155_v57  ;;  %v4034_v33 = vmul.f32 0.6931472, %v6178_v60 }
 0x65b   : > { %v6180_v62 = vpop.eup %6179  ;;  %6205 = vpow2.f32 %v4157_v17  ;;  %v4086_v41 = vsub.f32 %v7392_v42, %v4032_v46 }
 0x65c   : > { %v6182_v21 = vpop.eup %6181  ;;  %4206 = vst [vmem:[%s6464_s19 + $0x8] sm:$0xff] %v6180_v62  ;;  %v4087_v6 = vsub.f32 %v7397_v54, %v4034_v33  ;;  %6207 = vlog2.f32 %v3984_v50 }
 0x65d   : > { %v6184_v58 = vpop.eup %6183  ;;  %4207 = vst [vmem:[%s6464_s19 + $0x10] sm:$0xff] %v6182_v21  ;;  %4118 = vst [vmem:[%s6459_s16 + $0x48] sm:$0xff] %v4086_v41  ;;  %v4159_v59 = vmul.f32 1.442695, %v4086_v41  ;;  %6209 = vlog2.f32 %v3986_v51  ;;  %v3988_v63 = vpop.xlane.xlu1 %3987 }
 0x65e   : > { %v3990_v1 = vpop.xlane.xlu0 %3989  ;;  %v6186_v2 = vpop.eup %6185  ;;  %4119 = vst [vmem:[%s6459_s16 + $0x50] sm:$0xff] %v4087_v6  ;;  %v4161_v3 = vmul.f32 1.442695, %v4087_v6  ;;  %v4036_v44 = vmul.f32 0.6931472, %v6184_v58  ;;  %6211 = vlog2.f32 %v3988_v63 }
 0x65f   : > { %v6188_v42 = vpop.eup %6187  ;;  %6213 = vpow2.f32 %v4159_v59  ;;  %v4038_v18 = vmul.f32 0.6931472, %v6186_v2 }
 0x660   : > { %v6190_v54 = vpop.eup %6189  ;;  %4208 = vst [vmem:[%s6464_s19 + $0x18] sm:$0xff] %v6188_v42  ;;  %6215 = vpow2.f32 %v4161_v3  ;;  %v4088_v11 = vsub.f32 %v7400_v20, %v4036_v44 }
 0x661   : > { %v6192_v5 = vpop.eup %6191  ;;  %4209 = vst [vmem:[%s6464_s19 + $0x20] sm:$0xff] %v6190_v54  ;;  %v4089_v12 = vsub.f32 %v7405_v49, %v4038_v18  ;;  %6217 = vlog2.f32 %v3990_v1  ;;  %v3992_v15 = vpop.xlane.xlu1 %3991 }
 0x662   : > { %v3994_v16 = vpop.xlane.xlu0 %3993  ;;  %v6194_v4 = vpop.eup %6193  ;;  %4120 = vst [vmem:[%s6459_s16 + $0x58] sm:$0xff] %v4088_v11  ;;  %v4163_v48 = vmul.f32 1.442695, %v4088_v11  ;;  %v4040_v34 = vmul.f32 0.6931472, %v6192_v5  ;;  %6219 = vlog2.f32 %v3992_v15 }
 0x663   : > { %v6196_v19 = vpop.eup %6195  ;;  %4121 = vst [vmem:[%s6459_s16 + $0x60] sm:$0xff] %v4089_v12  ;;  %v4165_v8 = vmul.f32 1.442695, %v4089_v12  ;;  %v4042_v24 = vmul.f32 0.6931472, %v6194_v4  ;;  %6221 = vlog2.f32 %v3994_v16 }
 0x664   : > { %v6198_v20 = vpop.eup %6197  ;;  %4210 = vst [vmem:[%s6464_s19 + $0x28] sm:$0xff] %v6196_v19  ;;  %6223 = vpow2.f32 %v4163_v48  ;;  %v4090_v49 = vsub.f32 %v7408_v22, %v4040_v34 }
 0x665   : > { %v6200_v36 = vpop.eup %6199  ;;  %4211 = vst [vmem:[%s6464_s19 + $0x30] sm:$0xff] %v6198_v20  ;;  %6225 = vpow2.f32 %v4165_v8  ;;  %v4091_v9 = vsub.f32 %v7413_v7, %v4042_v24  ;;  %v3996_v10 = vpop.xlane.xlu1 %3995 }
 0x666   : > { %v3998_v53 = vpop.xlane.xlu0 %3997  ;;  %v6202_v29 = vpop.eup %6201  ;;  %4122 = vst [vmem:[%s6459_s16 + $0x68] sm:$0xff] %v4090_v49  ;;  %v4167_v13 = vmul.f32 1.442695, %v4090_v49  ;;  %v4044_v14 = vmul.f32 0.6931472, %v6200_v36  ;;  %6227 = vlog2.f32 %v3996_v10 }
 0x667   : > { %v6204_v25 = vpop.eup %6203  ;;  %4123 = vst [vmem:[%s6459_s16 + $0x70] sm:$0xff] %v4091_v9  ;;  %v4169_v0 = vmul.f32 1.442695, %v4091_v9  ;;  %v4046_v32 = vmul.f32 0.6931472, %v6202_v29  ;;  %6229 = vlog2.f32 %v3998_v53 }
 0x668   : > { %v6206_v22 = vpop.eup %6205  ;;  %4212 = vst [vmem:[%s6464_s19 + $0x38] sm:$0xff] %v6204_v25  ;;  %6231 = vpow2.f32 %v4167_v13  ;;  %v4092_v7 = vsub.f32 %v7416_v26, %v4044_v14 }
 0x669   : > { %v6208_v38 = vpop.eup %6207  ;;  %4213 = vst [vmem:[%s6464_s19 + $0x40] sm:$0xff] %v6206_v22  ;;  %6233 = vpow2.f32 %v4169_v0  ;;  %v4093_v57 = vsub.f32 %v7421_v28, %v4046_v32  ;;  %v4000_v60 = vpop.xlane.xlu1 %3999 }
 0x66a   : > { %v4002_v17 = vpop.xlane.xlu0 %4001  ;;  %v6210_v46 = vpop.eup %6209  ;;  %4124 = vst [vmem:[%s6459_s16 + $0x78] sm:$0xff] %v4092_v7  ;;  %v4171_v50 = vmul.f32 1.442695, %v4092_v7  ;;  %v4048_v51 = vmul.f32 0.6931472, %v6208_v38  ;;  %6235 = vlog2.f32 %v4000_v60 }
 0x66b   : > { %v6212_v33 = vpop.eup %6211  ;;  %4125 = vst [vmem:[%s6459_s16 + $0x80] sm:$0xff] %v4093_v57  ;;  %v4173_v62 = vmul.f32 1.442695, %v4093_v57  ;;  %v4050_v41 = vmul.f32 0.6931472, %v6210_v46  ;;  %6237 = vlog2.f32 %v4002_v17 }
 0x66c   : > { %v6214_v26 = vpop.eup %6213  ;;  %6239 = vpow2.f32 %v4171_v50  ;;  %v4094_v28 = vsub.f32 %v7424_v30, %v4048_v51  ;;  %v4052_v21 = vmul.f32 0.6931472, %v6212_v33 }
 0x66d   : > { %v6216_v6 = vpop.eup %6215  ;;  %4214 = vst [vmem:[%s6464_s19 + $0x48] sm:$0xff] %v6214_v26  ;;  %6241 = vpow2.f32 %v4173_v62  ;;  %v4095_v58 = vsub.f32 %v7429_v45, %v4050_v41  ;;  %v4004_v59 = vpop.xlane.xlu1 %4003 }
 0x66e   : > { %v4006_v63 = vpop.xlane.xlu0 %4005  ;;  %v6218_v1 = vpop.eup %6217  ;;  %4215 = vst [vmem:[%s6464_s19 + $0x50] sm:$0xff] %v6216_v6  ;;  %4126 = vst [vmem:[%s6459_s16 + $0x88] sm:$0xff] %v4094_v28  ;;  %v4175_v2 = vmul.f32 1.442695, %v4094_v28  ;;  %v4096_v3 = vsub.f32 %v7432_v35, %v4052_v21  ;;  %6243 = vlog2.f32 %v4004_v59 }
 0x66f   : > { %v6220_v44 = vpop.eup %6219  ;;  %4127 = vst [vmem:[%s6459_s16 + $0x90] sm:$0xff] %v4095_v58  ;;  %v4177_v30 = vmul.f32 1.442695, %v4095_v58  ;;  %v4054_v42 = vmul.f32 0.6931472, %v6218_v1  ;;  %6245 = vlog2.f32 %v4006_v63 }
 0x670   : > { %v6222_v18 = vpop.eup %6221  ;;  %6247 = vpow2.f32 %v4175_v2  ;;  %4128 = vst [vmem:[%s6459_s16 + $0x98] sm:$0xff] %v4096_v3  ;;  %v4179_v45 = vmul.f32 1.442695, %v4096_v3  ;;  %v4056_v54 = vmul.f32 0.6931472, %v6220_v44 }
 0x671   : > { %v6224_v11 = vpop.eup %6223  ;;  %6249 = vpow2.f32 %v4177_v30  ;;  %v4097_v5 = vsub.f32 %v7437_v55, %v4054_v42  ;;  %v4058_v35 = vmul.f32 0.6931472, %v6222_v18  ;;  %v4008_v12 = vpop.xlane.xlu1 %4007 }
 0x672   : > { %v4010_v15 = vpop.xlane.xlu0 %4009  ;;  %v6226_v16 = vpop.eup %6225  ;;  %4216 = vst [vmem:[%s6464_s19 + $0x58] sm:$0xff] %v6224_v11  ;;  %6251 = vpow2.f32 %v4179_v45  ;;  %v4098_v4 = vsub.f32 %v7440_v39, %v4056_v54 }
 0x673   : > { %v6228_v48 = vpop.eup %6227  ;;  %4217 = vst [vmem:[%s6464_s19 + $0x60] sm:$0xff] %v6226_v16  ;;  %4129 = vst [vmem:[%s6459_s16 + $0xa0] sm:$0xff] %v4097_v5  ;;  %v4181_v34 = vmul.f32 1.442695, %v4097_v5  ;;  %v4099_v19 = vsub.f32 %v7445_v23, %v4058_v35  ;;  %6253 = vlog2.f32 %v4008_v12 }
 0x674   : > { %v6230_v8 = vpop.eup %6229  ;;  %4130 = vst [vmem:[%s6459_s16 + $0xa8] sm:$0xff] %v4098_v4  ;;  %v4183_v55 = vmul.f32 1.442695, %v4098_v4  ;;  %v4060_v24 = vmul.f32 0.6931472, %v6228_v48  ;;  %6255 = vlog2.f32 %v4010_v15 }
 0x675   : > { %v6232_v20 = vpop.eup %6231  ;;  %6257 = vpow2.f32 %v4181_v34  ;;  %4131 = vst [vmem:[%s6459_s16 + $0xb0] sm:$0xff] %v4099_v19  ;;  %v4185_v49 = vmul.f32 1.442695, %v4099_v19  ;;  %v4062_v39 = vmul.f32 0.6931472, %v6230_v8  ;;  %v4012_v36 = vpop.xlane.xlu1 %4011 }
 0x676   : > { %v6234_v9 = vpop.eup %6233  ;;  %4218 = vst [vmem:[%s6464_s19 + $0x68] sm:$0xff] %v6232_v20  ;;  %6259 = vpow2.f32 %v4183_v55  ;;  %v4100_v23 = vsub.f32 %v7448_v43, %v4060_v24 }
 0x677   : > { %v6236_v10 = vpop.eup %6235  ;;  %4219 = vst [vmem:[%s6464_s19 + $0x70] sm:$0xff] %v6234_v9  ;;  %6261 = vpow2.f32 %v4185_v49  ;;  %v4101_v53 = vsub.f32 %v7453_v27, %v4062_v39 }
 0x678   : > { %v6238_v29 = vpop.eup %6237  ;;  %4132 = vst [vmem:[%s6459_s16 + $0xb8] sm:$0xff] %v4100_v23  ;;  %v4187_v13 = vmul.f32 1.442695, %v4100_v23  ;;  %v4064_v14 = vmul.f32 0.6931472, %v6236_v10  ;;  %6263 = vlog2.f32 %v4012_v36 }
 0x679   : > { %v6240_v25 = vpop.eup %6239  ;;  %4133 = vst [vmem:[%s6459_s16 + $0xc0] sm:$0xff] %v4101_v53  ;;  %v4189_v0 = vmul.f32 1.442695, %v4101_v53  ;;  %v4066_v32 = vmul.f32 0.6931472, %v6238_v29 }
 0x67a   : > { %v6242_v22 = vpop.eup %6241  ;;  %4220 = vst [vmem:[%s6464_s19 + $0x78] sm:$0xff] %v6240_v25  ;;  %6265 = vpow2.f32 %v4187_v13  ;;  %v4102_v43 = vsub.f32 %v7456_v47, %v4064_v14 }
 0x67b   : > { %v6244_v7 = vpop.eup %6243  ;;  %4221 = vst [vmem:[%s6464_s19 + $0x80] sm:$0xff] %v6242_v22  ;;  %6267 = vpow2.f32 %v4189_v0  ;;  %v4103_v27 = vsub.f32 %v7461_v31, %v4066_v32 }
 0x67c   : > { %v6246_v38 = vpop.eup %6245  ;;  %4134 = vst [vmem:[%s6459_s16 + $0xc8] sm:$0xff] %v4102_v43  ;;  %v4191_v57 = vmul.f32 1.442695, %v4102_v43  ;;  %v4068_v60 = vmul.f32 0.6931472, %v6244_v7 }
 0x67d   : > { %v6248_v17 = vpop.eup %6247  ;;  %4135 = vst [vmem:[%s6459_s16 + $0xd0] sm:$0xff] %v4103_v27  ;;  %v4193_v46 = vmul.f32 1.442695, %v4103_v27  ;;  %v4070_v50 = vmul.f32 0.6931472, %v6246_v38 }
 0x67e   : > { %v6250_v51 = vpop.eup %6249  ;;  %4222 = vst [vmem:[%s6464_s19 + $0x88] sm:$0xff] %v6248_v17  ;;  %6269 = vpow2.f32 %v4191_v57  ;;  %v4104_v47 = vsub.f32 %v7464_v52, %v4068_v60 }
 0x67f   : > { %v6252_v33 = vpop.eup %6251  ;;  %4223 = vst [vmem:[%s6464_s19 + $0x90] sm:$0xff] %v6250_v51  ;;  %6271 = vpow2.f32 %v4193_v46  ;;  %v4105_v31 = vsub.f32 %v7469_v37, %v4070_v50 }
 0x680   : > { %v6254_v62 = vpop.eup %6253  ;;  %4224 = vst [vmem:[%s6464_s19 + $0x98] sm:$0xff] %v6252_v33  ;;  %4136 = vst [vmem:[%s6459_s16 + $0xd8] sm:$0xff] %v4104_v47  ;;  %v4195_v41 = vmul.f32 1.442695, %v4104_v47 }
 0x681   : > { %v6256_v26 = vpop.eup %6255  ;;  %4137 = vst [vmem:[%s6459_s16 + $0xe0] sm:$0xff] %v4105_v31  ;;  %v4197_v28 = vmul.f32 1.442695, %v4105_v31  ;;  %v4072_v21 = vmul.f32 0.6931472, %v6254_v62 }
 0x682   : > { %v6258_v6 = vpop.eup %6257  ;;  %6273 = vpow2.f32 %v4195_v41  ;;  %v4074_v52 = vmul.f32 0.6931472, %v6256_v26 }
 0x683   : > { %v6260_v58 = vpop.eup %6259  ;;  %4225 = vst [vmem:[%s6464_s19 + $0xa0] sm:$0xff] %v6258_v6  ;;  %6275 = vpow2.f32 %v4197_v28  ;;  %v4106_v37 = vsub.f32 %v7472_v56, %v4072_v21 }
 0x684   : > { %v6262_v59 = vpop.eup %6261  ;;  %4226 = vst [vmem:[%s6464_s19 + $0xa8] sm:$0xff] %v6260_v58  ;;  %v4107_v63 = vsub.f32 %v7477_v40, %v4074_v52 }
 0x685   : > { %v6264_v1 = vpop.eup %6263  ;;  %4227 = vst [vmem:[%s6464_s19 + $0xb0] sm:$0xff] %v6262_v59  ;;  %4138 = vst [vmem:[%s6459_s16 + $0xe8] sm:$0xff] %v4106_v37  ;;  %v4199_v2 = vmul.f32 1.442695, %v4106_v37 }
 0x686   : > { %4139 = vst [vmem:[%s6459_s16 + $0xf0] sm:$0xff] %v4107_v63  ;;  %v4201_v3 = vmul.f32 1.442695, %v4107_v63  ;;  %v4076_v44 = vmul.f32 0.6931472, %v6264_v1 }
 0x687   : > { %v6266_v30 = vpop.eup %6265  ;;  %6277 = vpow2.f32 %v4199_v2 }
 0x688   : > { %v6268_v56 = vpop.eup %6267  ;;  %4228 = vst [vmem:[%s6464_s19 + $0xb8] sm:$0xff] %v6266_v30  ;;  %6279 = vpow2.f32 %v4201_v3  ;;  %v4108_v42 = vsub.f32 %v7480_v61, %v4076_v44 }
 0x689   : > { %4229 = vst [vmem:[%s6464_s19 + $0xc0] sm:$0xff] %v6268_v56 }
 0x68a   : > { %4140 = vst [vmem:[%s6459_s16 + $0xf8] sm:$0xff] %v4108_v42  ;;  %v4203_v40 = vmul.f32 1.442695, %v4108_v42 }
 0x68b   : > { %v6270_v18 = vpop.eup %6269 }
 0x68c   : > { %v6272_v45 = vpop.eup %6271  ;;  %4230 = vst [vmem:[%s6464_s19 + $0xc8] sm:$0xff] %v6270_v18  ;;  %6281 = vpow2.f32 %v4203_v40 }
 0x68d   : > { %4231 = vst [vmem:[%s6464_s19 + $0xd0] sm:$0xff] %v6272_v45 }
 0x68f   : > { %v6274_v54 = vpop.eup %6273 }
 0x690   : > { %v6276_v11 = vpop.eup %6275  ;;  %4232 = vst [vmem:[%s6464_s19 + $0xd8] sm:$0xff] %v6274_v54 }
 0x691   : > { %4233 = vst [vmem:[%s6464_s19 + $0xe0] sm:$0xff] %v6276_v11 }
 0x694   : > { %v6278_v5 = vpop.eup %6277 }
 0x695   : > { %v6280_v35 = vpop.eup %6279  ;;  %4234 = vst [vmem:[%s6464_s19 + $0xe8] sm:$0xff] %v6278_v5 }
 0x696   : > { %4235 = vst [vmem:[%s6464_s19 + $0xf0] sm:$0xff] %v6280_v35 }
 0x699   : > { %v6282_v12 = vpop.eup %6281 }
 0x69a   : > { %4236 = vst [vmem:[%s6464_s19 + $0xf8] sm:$0xff] %v6282_v12 }
 0x69b PF: > { %s20_s9 = sadd.s32 1, %s6340_s9   ;;  %s7606_s27 = smov %s6332_s29 }
 0x69c   : > { %p17_p0 = scmp.ge.s32.totalorder %s20_s9, 24   ;;  %s7607_s28 = smov %s6336_s30 }
 0x69d   : > { %s7608_s29 = smov %s7611_s11  ;;  %s7609_s30 = smov %s7615_s12 }
 0x69e   :  { %19 = sbr.rel (!%p17_p0) target bundleno = 3 (0x3), region = 120 }
 0x6a3   :  { %4288 = vsyncpa [#allocation6], 1 }
 0x6a4   :  { %4290 = vsyncpa [#allocation6 + $0x1], 1 }

</bundles_post_ra>
